<compile_context>
chip_gen: v7x
topology: tpu7x:2x2x1
jax: 0.10.0
libtpu: 0.0.40
codegen_flags: <defaults>
</compile_context>

<pallas_src>
import functools

import jax
import jax.numpy as jnp
from jax import lax
from jax.experimental import pallas as pl
from jax.experimental.pallas import tpu as pltpu


# ----------------------------------------------------------------------------- helpers
def _erf(x):
    # Abramowitz & Stegun 7.1.26 rational approximation, |err| < 1.5e-7.
    a1, a2, a3, a4, a5 = 0.254829592, -0.284496736, 1.421413741, -1.453152027, 1.061405429
    p = 0.3275911
    sgn = jnp.where(x >= 0.0, 1.0, -1.0)
    ax = jnp.abs(x)
    t = 1.0 / (1.0 + p * ax)
    poly = ((((a5 * t + a4) * t + a3) * t + a2) * t + a1) * t
    return sgn * (1.0 - poly * jnp.exp(-ax * ax))


def _gelu_exact(x):
    # matches torch.nn.GELU() (approximate='none') up to the erf approximation above
    return 0.5 * x * (1.0 + _erf(x * 0.7071067811865476))


def _rmsnorm(x, g):
    # torch: x / (||x||_2 * dim**-0.5).clamp(min=1e-8) * g
    dim = x.shape[-1]
    norm = jnp.sqrt(jnp.sum(x * x, axis=-1, keepdims=True)) * (dim ** -0.5)
    return x / jnp.maximum(norm, 1e-8) * g


# ------------------------------------------------------------------ fused whole-model kernel
def _atc_stack_kernel(x_ref, convw_ref, convb_ref, g_ref, wf_ref, bf_ref, wo_ref, bo_ref,
                      wff_ref, bff_ref, cos_ref, sins_ref, mask_ref,
                      gF_ref, wlog_ref, blog_ref, out_ref, x_sc,
                      *, heads, dim_head, conv_depth):
    l = pl.program_id(1)                      # layer index ("arbitrary" axis)
    n, dim = x_sc.shape
    attn_inner = heads * dim_head
    half = dim_head // 2
    scale = dim_head ** -0.5
    bf16 = jnp.bfloat16

    # Load the batch element's activation into the resident VMEM carry at layer 0.
    @pl.when(l == 0)
    def _():
        x_sc[...] = x_ref[...].astype(jnp.float32)

    x = x_sc[...]                             # (n, dim) f32

    # ---------------- ConvolutionLanguageBlock: conv_depth x (Conv1d k=3 pad=1 + GELU)
    # Conv sees (channels=n, length=dim).  im2col: stack [x[:,l-1], x[:,l], x[:,l+1]]
    # into (3C, L) and contract once against the (O, 3C) im2col weight.
    zcol = jnp.zeros((n, 1), jnp.float32)
    h = x
    for ci in range(conv_depth):
        hp = jnp.concatenate([zcol, h[:, :dim - 1]], axis=1)   # tap k=0 (prev col)
        hn = jnp.concatenate([h[:, 1:], zcol], axis=1)         # tap k=2 (next col)
        xc = jnp.concatenate([hp, h, hn], axis=0).astype(bf16)  # (3C, L)
        acc = jnp.dot(convw_ref[ci], xc,
                      preferred_element_type=jnp.float32) + convb_ref[ci]
        h = _gelu_exact(acc)
    # TODO(synk): nn.Dropout(0.1) inside the conv block omitted (inference mode).
    # block-internal residual (h + x) plus Transformer residual (+ x)
    x = h + x + x

    # ---------------- ParallelTransformerBlock (+ Transformer residual)
    xn = _rmsnorm(x, g_ref[...])
    proj = jnp.dot(xn.astype(bf16), wf_ref[...],
                   preferred_element_type=jnp.float32) + bf_ref[...]   # (n, fused)

    q = proj[:, :attn_inner]                                   # (n, h*d)
    k = proj[:, attn_inner:attn_inner + dim_head]              # (n, d)   multi-query K
    v = proj[:, attn_inner + dim_head:attn_inner + 2 * dim_head]   # (n, d)
    ff = proj[:, attn_inner + 2 * dim_head:]                   # (n, ff_inner)

    cos = cos_ref[...]                                         # (n, d)
    sins = sins_ref[...]                                       # (n, d), sign pre-folded

    def rope(t):                                               # apply_rotary_pos_emb
        return t * cos + pltpu.roll(t, shift=half, axis=1) * sins

    k_r = rope(k).astype(bf16)                                 # (n, d)
    # head-batched Q: (heads*n, d) — one matmul instead of `heads` tiny ones
    q_h = (jnp.concatenate(
        [rope(q[:, i * dim_head:(i + 1) * dim_head]) for i in range(heads)],
        axis=0) * scale).astype(bf16)

    # sim = Q @ K^T without materializing the transpose
    sim = lax.dot_general(q_h, k_r, (((1,), (1,)), ((), ())),
                          preferred_element_type=jnp.float32)   # (heads*n, n)
    sim = jnp.where(mask_ref[...] != 0.0, -1e30, sim)           # causal mask (triu(1))
    sim = sim - jnp.max(sim, axis=-1, keepdims=True)
    p = jnp.exp(sim)
    attn = p * pl.reciprocal(jnp.sum(p, axis=-1, keepdims=True), approx=True)
    out_h = jnp.dot(attn.astype(bf16), v.astype(bf16),
                    preferred_element_type=jnp.float32)         # (heads*n, d)
    attn_cat = jnp.concatenate(
        [out_h[i * n:(i + 1) * n, :] for i in range(heads)], axis=1)   # (n, h*d)

    attn_out = jnp.dot(attn_cat.astype(bf16), wo_ref[...],
                       preferred_element_type=jnp.float32) + bo_ref[...]
    ff_out = jnp.dot(_gelu_exact(ff).astype(bf16), wff_ref[...],
                     preferred_element_type=jnp.float32) + bff_ref[...]

    x = attn_out + ff_out + x                                   # PTB output + residual
    x_sc[...] = x                                               # carry to next layer

    # ---------------- final RMSNorm + logits head, only after the last layer
    @pl.when(l == pl.num_programs(1) - 1)
    def _():
        xf = _rmsnorm(x, gF_ref[...])
        out_ref[...] = (jnp.dot(xf.astype(bf16), wlog_ref[...],
                                preferred_element_type=jnp.float32)
                        + blog_ref[...]).astype(out_ref.dtype)


# ----------------------------------------------------------------------------- model glue
def atc_transformer_forward(tokens, packed, *, heads, dim_head, conv_depth):
    # embedding lookup (glue — gather stays in XLA)
    x = jnp.take(packed["emb"], tokens, axis=0).astype(jnp.float32)    # (B, N, D)
    B, n, dim = x.shape
    assert n == dim, "PyTorch module feeds (B,N,D) straight to Conv1d(in_channels=D) -> needs N == D"

    depth, _, fused = packed["wf"].shape
    attn_inner = heads * dim_head
    ff_inner = packed["wff"].shape[1]
    V = packed["w_logits"].shape[1]
    half = dim_head // 2

    # rotary tables + causal mask: shape-only constants, folded by XLA at trace time and
    # kept VMEM-resident inside the kernel (constant index_map).
    inv_freq = 1.0 / (10000.0 ** (jnp.arange(0, dim_head, 2, dtype=jnp.float32) / dim_head))
    freqs = jnp.arange(n, dtype=jnp.float32)[:, None] * inv_freq[None, :]
    pos = jnp.concatenate([freqs, freqs], axis=-1)               # (n, dim_head)
    cos = jnp.cos(pos)
    sign = jnp.concatenate([-jnp.ones((half,), jnp.float32), jnp.ones((half,), jnp.float32)])
    sins = jnp.sin(pos) * sign[None, :]                          # sign folded into sin table
    causal = (jnp.arange(n)[None, :] > jnp.arange(n)[:, None]).astype(jnp.float32)
    mask = jnp.tile(causal, (heads, 1))                          # (heads*n, n)

    kern = functools.partial(_atc_stack_kernel, heads=heads, dim_head=dim_head,
                             conv_depth=conv_depth)

    return pl.pallas_call(
        kern,
        out_shape=jax.ShapeDtypeStruct((B, n, V), jnp.float32),
        grid=(B, depth),
        in_specs=[
            pl.BlockSpec((None, n, dim), lambda b, l: (b, 0, 0)),                        # x
            pl.BlockSpec((None, conv_depth, dim, 3 * dim), lambda b, l: (l, 0, 0, 0)),   # convw (im2col)
            pl.BlockSpec((None, conv_depth, dim, 1), lambda b, l: (l, 0, 0, 0)),         # convb
            pl.BlockSpec((None, 1, dim), lambda b, l: (l, 0, 0)),                        # rmsnorm g
            pl.BlockSpec((None, dim, fused), lambda b, l: (l, 0, 0)),                    # wf
            pl.BlockSpec((None, 1, fused), lambda b, l: (l, 0, 0)),                      # bf
            pl.BlockSpec((None, attn_inner, dim), lambda b, l: (l, 0, 0)),               # wo
            pl.BlockSpec((None, 1, dim), lambda b, l: (l, 0, 0)),                        # bo
            pl.BlockSpec((None, ff_inner, dim), lambda b, l: (l, 0, 0)),                 # wff
            pl.BlockSpec((None, 1, dim), lambda b, l: (l, 0, 0)),                        # bff
            pl.BlockSpec((n, dim_head), lambda b, l: (0, 0)),                            # cos
            pl.BlockSpec((n, dim_head), lambda b, l: (0, 0)),                            # sin * sign
            pl.BlockSpec((heads * n, n), lambda b, l: (0, 0)),                           # causal mask
            pl.BlockSpec((1, dim), lambda b, l: (0, 0)),                                 # final g
            pl.BlockSpec((dim, V), lambda b, l: (0, 0)),                                 # w_logits
            pl.BlockSpec((1, V), lambda b, l: (0, 0)),                                   # b_logits
        ],
        out_specs=pl.BlockSpec((None, n, V), lambda b, l: (b, 0, 0)),
        scratch_shapes=[pltpu.VMEM((n, dim), jnp.float32)],        # activation carry
        compiler_params=pltpu.CompilerParams(
            dimension_semantics=("parallel", "arbitrary")),
    )(x, packed["convw"], packed["convb"], packed["g"], packed["wf"], packed["bf"],
      packed["wo"], packed["bo"], packed["wff"], packed["bff"],
      cos, sins, mask, packed["final_g"], packed["w_logits"], packed["b_logits"])


# ----------------------------------------------------------------------------- params
def init_params(key, *, dim, depth, num_tokens, dim_head, heads, ff_mult):
    keys = iter(jax.random.split(key, 1024))

    def nrm(shape, scale=0.02):
        return scale * jax.random.normal(next(keys), shape, jnp.float32)

    attn_inner = dim_head * heads
    ff_inner = dim * ff_mult
    fused = attn_inner + 2 * dim_head + ff_inner

    params = {"emb": nrm((num_tokens, dim))}
    layers = []
    for _ in range(depth):
        # ConvolutionLanguageBlock(dim, dim, 3, padding=1, depth=depth): PyTorch (O, C, K)
        conv_layers = [(nrm((dim, dim, 3), 0.05), nrm((dim,), 0.01)) for _ in range(depth)]
        ptb = dict(
            g=jnp.ones((dim,), jnp.float32),
            wf=nrm((dim, fused)), bf=nrm((fused,), 0.01),
            wo=nrm((attn_inner, dim)), bo=nrm((dim,), 0.01),
            wff=nrm((ff_inner, dim)), bff=nrm((dim,), 0.01),
        )
        layers.append((conv_layers, ptb))
    params["layers"] = layers
    params["final_g"] = jnp.ones((dim,), jnp.float32)
    params["w_logits"] = nrm((dim, num_tokens))
    params["b_logits"] = nrm((num_tokens,), 0.01)
    return params


def pack_params(params, *, dim):
    """Stack per-layer weights, im2col the conv weights, cast matmul weights to bf16."""
    layers = params["layers"]
    conv_depth = len(layers[0][0])
    bf16 = jnp.bfloat16

    # conv weight (O, C, K) -> im2col (O, K*C) so xcat rows are [prev | center | next]
    convw = jnp.stack([
        jnp.stack([jnp.transpose(w, (0, 2, 1)).reshape(dim, 3 * dim) for (w, _) in cls])
        for (cls, _) in layers])                                       # (depth, cd, O, 3C)
    convb = jnp.stack([
        jnp.stack([b.reshape(dim, 1) for (_, b) in cls]) for (cls, _) in layers])

    g = jnp.stack([ptb["g"].reshape(1, dim) for (_, ptb) in layers])
    wf = jnp.stack([ptb["wf"] for (_, ptb) in layers])
    bf = jnp.stack([ptb["bf"].reshape(1, -1) for (_, ptb) in layers])
    wo = jnp.stack([ptb["wo"] for (_, ptb) in layers])
    bo = jnp.stack([ptb["bo"].reshape(1, dim) for (_, ptb) in layers])
    wff = jnp.stack([ptb["wff"] for (_, ptb) in layers])
    bff = jnp.stack([ptb["bff"].reshape(1, dim) for (_, ptb) in layers])

    packed = dict(
        emb=params["emb"],
        convw=convw.astype(bf16), convb=convb,
        g=g, wf=wf.astype(bf16), bf=bf,
        wo=wo.astype(bf16), bo=bo,
        wff=wff.astype(bf16), bff=bff,
        final_g=params["final_g"].reshape(1, dim),
        w_logits=params["w_logits"].astype(bf16),
        b_logits=params["b_logits"].reshape(1, -1),
    )
    return packed, conv_depth


if __name__ == "__main__":
    dim = 32           # feature dim (and therefore required sequence length)
    depth = 2
    num_tokens = 64
    dim_head = 8
    heads = 4
    ff_mult = 2
    B, N = 2, dim      # seq length must equal dim (see assert above)

    key = jax.random.PRNGKey(0)
    k_param, k_tok = jax.random.split(key)
    params = init_params(k_param, dim=dim, depth=depth, num_tokens=num_tokens,
                         dim_head=dim_head, heads=heads, ff_mult=ff_mult)
    packed, conv_depth = pack_params(params, dim=dim)
    tokens = jax.random.randint(k_tok, (B, N), 0, num_tokens, dtype=jnp.int32)

    fwd = jax.jit(functools.partial(atc_transformer_forward, heads=heads,
                                    dim_head=dim_head, conv_depth=conv_depth))
    logits = fwd(tokens, packed)
    jax.block_until_ready(logits)
    assert logits.shape == (B, N, num_tokens)
    print("KERNEL_OK")
</pallas_src>

<mosaic_0001>
module attributes {stable_mosaic.version = 11 : i64} {
  func.func @_atc_stack_kernel(%arg0: i32, %arg1: i32, %arg2: memref<1x32x32xf32, #tpu.memory_space<vmem>>, %arg3: memref<1x2x32x96xbf16, #tpu.memory_space<vmem>>, %arg4: memref<1x2x32x1xf32, #tpu.memory_space<vmem>>, %arg5: memref<1x1x32xf32, #tpu.memory_space<vmem>>, %arg6: memref<1x32x112xbf16, #tpu.memory_space<vmem>>, %arg7: memref<1x1x112xf32, #tpu.memory_space<vmem>>, %arg8: memref<1x32x32xbf16, #tpu.memory_space<vmem>>, %arg9: memref<1x1x32xf32, #tpu.memory_space<vmem>>, %arg10: memref<1x64x32xbf16, #tpu.memory_space<vmem>>, %arg11: memref<1x1x32xf32, #tpu.memory_space<vmem>>, %arg12: memref<32x8xf32, #tpu.memory_space<vmem>>, %arg13: memref<32x8xf32, #tpu.memory_space<vmem>>, %arg14: memref<128x32xf32, #tpu.memory_space<vmem>>, %arg15: memref<1x32xf32, #tpu.memory_space<vmem>>, %arg16: memref<32x64xbf16, #tpu.memory_space<vmem>>, %arg17: memref<1x64xf32, #tpu.memory_space<vmem>>, %arg18: memref<1x32x64xf32, #tpu.memory_space<vmem>>, %arg19: memref<32x32xf32, #tpu.memory_space<vmem>>) attributes {dimension_semantics = [#tpu.dimension_semantics<parallel>, #tpu.dimension_semantics<arbitrary>], iteration_bounds = array<i64: 2, 2>, scalar_prefetch = 0 : i64, scratch_operands = 1 : i64, tpu.core_type = #tpu.core_type<tc>, window_params = [{transform_indices = @transform_0, window_bounds = array<i64: 1, 32, 32>}, {transform_indices = @transform_1, window_bounds = array<i64: 1, 2, 32, 96>}, {transform_indices = @transform_2, window_bounds = array<i64: 1, 2, 32, 1>}, {transform_indices = @transform_3, window_bounds = array<i64: 1, 1, 32>}, {transform_indices = @transform_4, window_bounds = array<i64: 1, 32, 112>}, {transform_indices = @transform_5, window_bounds = array<i64: 1, 1, 112>}, {transform_indices = @transform_6, window_bounds = array<i64: 1, 32, 32>}, {transform_indices = @transform_7, window_bounds = array<i64: 1, 1, 32>}, {transform_indices = @transform_8, window_bounds = array<i64: 1, 64, 32>}, {transform_indices = @transform_9, window_bounds = array<i64: 1, 1, 32>}, {pipeline_mode = #tpu.pipeline_mode<synchronous>, transform_indices = @transform_10, window_bounds = array<i64: 32, 8>}, {pipeline_mode = #tpu.pipeline_mode<synchronous>, transform_indices = @transform_11, window_bounds = array<i64: 32, 8>}, {pipeline_mode = #tpu.pipeline_mode<synchronous>, transform_indices = @transform_12, window_bounds = array<i64: 128, 32>}, {pipeline_mode = #tpu.pipeline_mode<synchronous>, transform_indices = @transform_13, window_bounds = array<i64: 1, 32>}, {pipeline_mode = #tpu.pipeline_mode<synchronous>, transform_indices = @transform_14, window_bounds = array<i64: 32, 64>}, {pipeline_mode = #tpu.pipeline_mode<synchronous>, transform_indices = @transform_15, window_bounds = array<i64: 1, 64>}, {transform_indices = @transform_16, window_bounds = array<i64: 1, 32, 64>}]} {
    %c0_i32 = arith.constant 0 : i32
    %0 = arith.cmpi eq, %arg1, %c0_i32 : i32
    %1 = arith.extui %0 : i1 to i32
    %c0_i32_0 = arith.constant 0 : i32
    %2 = arith.cmpi ne, %1, %c0_i32_0 : i32
    scf.if %2 {
      %c0_114 = arith.constant 0 : index
      %c0_115 = arith.constant 0 : index
      %c0_116 = arith.constant 0 : index
      %259 = vector.load %arg2[%c0_114, %c0_115, %c0_116] : memref<1x32x32xf32, #tpu.memory_space<vmem>>, vector<1x32x32xf32>
      %260 = vector.shape_cast %259 : vector<1x32x32xf32> to vector<32x32xf32>
      %c0_117 = arith.constant 0 : index
      %c0_118 = arith.constant 0 : index
      %261 = vector.load %arg19[%c0_117, %c0_118] : memref<32x32xf32, #tpu.memory_space<vmem>>, vector<32x32xf32>
      tpu.vector_store %arg19[%c0_117, %c0_118], %260 {strides = array<i32>} : memref<32x32xf32, #tpu.memory_space<vmem>>, vector<32x32xf32>,
    } else {
    }
    %c0 = arith.constant 0 : index
    %c0_1 = arith.constant 0 : index
    %3 = vector.load %arg19[%c0, %c0_1] : memref<32x32xf32, #tpu.memory_space<vmem>>, vector<32x32xf32>
    %cst = arith.constant 0.000000e+00 : f32
    %4 = vector.broadcast %cst : f32 to vector<32x1xf32>
    %5 = vector.extract_strided_slice %3 {offsets = [0, 0], sizes = [32, 31], strides = [1, 1]} : vector<32x32xf32> to vector<32x31xf32>
    %6 = tpu.concatenate %4, %5 in 1 : vector<32x1xf32>, vector<32x31xf32> -> vector<32x32xf32>
    %7 = vector.extract_strided_slice %3 {offsets = [0, 1], sizes = [32, 31], strides = [1, 1]} : vector<32x32xf32> to vector<32x31xf32>
    %8 = tpu.concatenate %7, %4 in 1 : vector<32x31xf32>, vector<32x1xf32> -> vector<32x32xf32>
    %9 = tpu.concatenate %6, %3, %8 in 0 : vector<32x32xf32>, vector<32x32xf32>, vector<32x32xf32> -> vector<96x32xf32>
    %10 = arith.truncf %9 : vector<96x32xf32> to vector<96x32xbf16>
    %c0_2 = arith.constant 0 : index
    %c0_3 = arith.constant 0 : index
    %c0_4 = arith.constant 0 : index
    %c0_5 = arith.constant 0 : index
    %11 = vector.load %arg3[%c0_2, %c0_3, %c0_4, %c0_5] : memref<1x2x32x96xbf16, #tpu.memory_space<vmem>>, vector<1x1x32x96xbf16>
    %12 = vector.shape_cast %11 : vector<1x1x32x96xbf16> to vector<32x96xbf16>
    %cst_6 = arith.constant dense<0.000000e+00> : vector<32x32xf32>
    %13 = tpu.matmul %12, %10, %cst_6 {dimension_numbers = #tpu.dot_dimension_numbers<[1], [0], [0], [1], [0, 0, 1, 1], [], []>} : vector<32x96xbf16>, vector<96x32xbf16>, vector<32x32xf32> -> vector<32x32xf32>
    %c0_7 = arith.constant 0 : index
    %c0_8 = arith.constant 0 : index
    %c0_9 = arith.constant 0 : index
    %c0_10 = arith.constant 0 : index
    %14 = vector.load %arg4[%c0_7, %c0_8, %c0_9, %c0_10] : memref<1x2x32x1xf32, #tpu.memory_space<vmem>>, vector<1x1x32x1xf32>
    %15 = vector.shape_cast %14 : vector<1x1x32x1xf32> to vector<32x1xf32>
    %16 = vector.broadcast %15 : vector<32x1xf32> to vector<32x32xf32>
    %17 = arith.addf %13, %16 : vector<32x32xf32>
    %cst_11 = arith.constant 5.000000e-01 : f32
    %18 = vector.broadcast %cst_11 : f32 to vector<32x32xf32>
    %19 = arith.mulf %18, %17 : vector<32x32xf32>
    %cst_12 = arith.constant 0.707106769 : f32
    %20 = vector.broadcast %cst_12 : f32 to vector<32x32xf32>
    %21 = arith.mulf %17, %20 : vector<32x32xf32>
    %cst_13 = arith.constant 0.000000e+00 : f32
    %22 = vector.broadcast %cst_13 : f32 to vector<32x32xf32>
    %23 = arith.cmpf oge, %21, %22 : vector<32x32xf32>
    %cst_14 = arith.constant 1.000000e+00 : f32
    %cst_15 = arith.constant -1.000000e+00 : f32
    %24 = vector.broadcast %cst_14 : f32 to vector<32x32xf32>
    %25 = vector.broadcast %cst_15 : f32 to vector<32x32xf32>
    %26 = arith.select %23, %24, %25 : vector<32x32xi1>, vector<32x32xf32>
    %27 = math.absf %21 : vector<32x32xf32>
    %cst_16 = arith.constant 0.327591091 : f32
    %28 = vector.broadcast %cst_16 : f32 to vector<32x32xf32>
    %29 = arith.mulf %28, %27 : vector<32x32xf32>
    %cst_17 = arith.constant 1.000000e+00 : f32
    %30 = vector.broadcast %cst_17 : f32 to vector<32x32xf32>
    %31 = arith.addf %30, %29 : vector<32x32xf32>
    %cst_18 = arith.constant 1.000000e+00 : f32
    %32 = vector.broadcast %cst_18 : f32 to vector<32x32xf32>
    %33 = arith.divf %32, %31 : vector<32x32xf32>
    %cst_19 = arith.constant 1.06140542 : f32
    %34 = vector.broadcast %cst_19 : f32 to vector<32x32xf32>
    %35 = arith.mulf %34, %33 : vector<32x32xf32>
    %cst_20 = arith.constant -1.45315206 : f32
    %36 = vector.broadcast %cst_20 : f32 to vector<32x32xf32>
    %37 = arith.addf %35, %36 : vector<32x32xf32>
    %38 = arith.mulf %37, %33 : vector<32x32xf32>
    %cst_21 = arith.constant 1.42141378 : f32
    %39 = vector.broadcast %cst_21 : f32 to vector<32x32xf32>
    %40 = arith.addf %38, %39 : vector<32x32xf32>
    %41 = arith.mulf %40, %33 : vector<32x32xf32>
    %cst_22 = arith.constant -0.284496725 : f32
    %42 = vector.broadcast %cst_22 : f32 to vector<32x32xf32>
    %43 = arith.addf %41, %42 : vector<32x32xf32>
    %44 = arith.mulf %43, %33 : vector<32x32xf32>
    %cst_23 = arith.constant 0.254829586 : f32
    %45 = vector.broadcast %cst_23 : f32 to vector<32x32xf32>
    %46 = arith.addf %44, %45 : vector<32x32xf32>
    %47 = arith.mulf %46, %33 : vector<32x32xf32>
    %cst_24 = arith.constant 0.000000e+00 : f32
    %48 = vector.broadcast %cst_24 : f32 to vector<32x32xf32>
    %49 = arith.subf %48, %27 : vector<32x32xf32>
    %50 = arith.mulf %49, %27 : vector<32x32xf32>
    %51 = math.exp %50 : vector<32x32xf32>
    %52 = arith.mulf %47, %51 : vector<32x32xf32>
    %cst_25 = arith.constant 1.000000e+00 : f32
    %53 = vector.broadcast %cst_25 : f32 to vector<32x32xf32>
    %54 = arith.subf %53, %52 : vector<32x32xf32>
    %55 = arith.mulf %26, %54 : vector<32x32xf32>
    %cst_26 = arith.constant 1.000000e+00 : f32
    %56 = vector.broadcast %cst_26 : f32 to vector<32x32xf32>
    %57 = arith.addf %56, %55 : vector<32x32xf32>
    %58 = arith.mulf %19, %57 : vector<32x32xf32>
    %59 = vector.extract_strided_slice %58 {offsets = [0, 0], sizes = [32, 31], strides = [1, 1]} : vector<32x32xf32> to vector<32x31xf32>
    %60 = tpu.concatenate %4, %59 in 1 : vector<32x1xf32>, vector<32x31xf32> -> vector<32x32xf32>
    %61 = vector.extract_strided_slice %58 {offsets = [0, 1], sizes = [32, 31], strides = [1, 1]} : vector<32x32xf32> to vector<32x31xf32>
    %62 = tpu.concatenate %61, %4 in 1 : vector<32x31xf32>, vector<32x1xf32> -> vector<32x32xf32>
    %63 = tpu.concatenate %60, %58, %62 in 0 : vector<32x32xf32>, vector<32x32xf32>, vector<32x32xf32> -> vector<96x32xf32>
    %64 = arith.truncf %63 : vector<96x32xf32> to vector<96x32xbf16>
    %c0_27 = arith.constant 0 : index
    %c1 = arith.constant 1 : index
    %c0_28 = arith.constant 0 : index
    %c0_29 = arith.constant 0 : index
    %65 = vector.load %arg3[%c0_27, %c1, %c0_28, %c0_29] : memref<1x2x32x96xbf16, #tpu.memory_space<vmem>>, vector<1x1x32x96xbf16>
    %66 = vector.shape_cast %65 : vector<1x1x32x96xbf16> to vector<32x96xbf16>
    %cst_30 = arith.constant dense<0.000000e+00> : vector<32x32xf32>
    %67 = tpu.matmul %66, %64, %cst_30 {dimension_numbers = #tpu.dot_dimension_numbers<[1], [0], [0], [1], [0, 0, 1, 1], [], []>} : vector<32x96xbf16>, vector<96x32xbf16>, vector<32x32xf32> -> vector<32x32xf32>
    %c0_31 = arith.constant 0 : index
    %c1_32 = arith.constant 1 : index
    %c0_33 = arith.constant 0 : index
    %c0_34 = arith.constant 0 : index
    %68 = vector.load %arg4[%c0_31, %c1_32, %c0_33, %c0_34] : memref<1x2x32x1xf32, #tpu.memory_space<vmem>>, vector<1x1x32x1xf32>
    %69 = vector.shape_cast %68 : vector<1x1x32x1xf32> to vector<32x1xf32>
    %70 = vector.broadcast %69 : vector<32x1xf32> to vector<32x32xf32>
    %71 = arith.addf %67, %70 : vector<32x32xf32>
    %cst_35 = arith.constant 5.000000e-01 : f32
    %72 = vector.broadcast %cst_35 : f32 to vector<32x32xf32>
    %73 = arith.mulf %72, %71 : vector<32x32xf32>
    %cst_36 = arith.constant 0.707106769 : f32
    %74 = vector.broadcast %cst_36 : f32 to vector<32x32xf32>
    %75 = arith.mulf %71, %74 : vector<32x32xf32>
    %cst_37 = arith.constant 0.000000e+00 : f32
    %76 = vector.broadcast %cst_37 : f32 to vector<32x32xf32>
    %77 = arith.cmpf oge, %75, %76 : vector<32x32xf32>
    %cst_38 = arith.constant 1.000000e+00 : f32
    %cst_39 = arith.constant -1.000000e+00 : f32
    %78 = vector.broadcast %cst_38 : f32 to vector<32x32xf32>
    %79 = vector.broadcast %cst_39 : f32 to vector<32x32xf32>
    %80 = arith.select %77, %78, %79 : vector<32x32xi1>, vector<32x32xf32>
    %81 = math.absf %75 : vector<32x32xf32>
    %cst_40 = arith.constant 0.327591091 : f32
    %82 = vector.broadcast %cst_40 : f32 to vector<32x32xf32>
    %83 = arith.mulf %82, %81 : vector<32x32xf32>
    %cst_41 = arith.constant 1.000000e+00 : f32
    %84 = vector.broadcast %cst_41 : f32 to vector<32x32xf32>
    %85 = arith.addf %84, %83 : vector<32x32xf32>
    %cst_42 = arith.constant 1.000000e+00 : f32
    %86 = vector.broadcast %cst_42 : f32 to vector<32x32xf32>
    %87 = arith.divf %86, %85 : vector<32x32xf32>
    %cst_43 = arith.constant 1.06140542 : f32
    %88 = vector.broadcast %cst_43 : f32 to vector<32x32xf32>
    %89 = arith.mulf %88, %87 : vector<32x32xf32>
    %cst_44 = arith.constant -1.45315206 : f32
    %90 = vector.broadcast %cst_44 : f32 to vector<32x32xf32>
    %91 = arith.addf %89, %90 : vector<32x32xf32>
    %92 = arith.mulf %91, %87 : vector<32x32xf32>
    %cst_45 = arith.constant 1.42141378 : f32
    %93 = vector.broadcast %cst_45 : f32 to vector<32x32xf32>
    %94 = arith.addf %92, %93 : vector<32x32xf32>
    %95 = arith.mulf %94, %87 : vector<32x32xf32>
    %cst_46 = arith.constant -0.284496725 : f32
    %96 = vector.broadcast %cst_46 : f32 to vector<32x32xf32>
    %97 = arith.addf %95, %96 : vector<32x32xf32>
    %98 = arith.mulf %97, %87 : vector<32x32xf32>
    %cst_47 = arith.constant 0.254829586 : f32
    %99 = vector.broadcast %cst_47 : f32 to vector<32x32xf32>
    %100 = arith.addf %98, %99 : vector<32x32xf32>
    %101 = arith.mulf %100, %87 : vector<32x32xf32>
    %cst_48 = arith.constant 0.000000e+00 : f32
    %102 = vector.broadcast %cst_48 : f32 to vector<32x32xf32>
    %103 = arith.subf %102, %81 : vector<32x32xf32>
    %104 = arith.mulf %103, %81 : vector<32x32xf32>
    %105 = math.exp %104 : vector<32x32xf32>
    %106 = arith.mulf %101, %105 : vector<32x32xf32>
    %cst_49 = arith.constant 1.000000e+00 : f32
    %107 = vector.broadcast %cst_49 : f32 to vector<32x32xf32>
    %108 = arith.subf %107, %106 : vector<32x32xf32>
    %109 = arith.mulf %80, %108 : vector<32x32xf32>
    %cst_50 = arith.constant 1.000000e+00 : f32
    %110 = vector.broadcast %cst_50 : f32 to vector<32x32xf32>
    %111 = arith.addf %110, %109 : vector<32x32xf32>
    %112 = arith.mulf %73, %111 : vector<32x32xf32>
    %113 = arith.addf %112, %3 : vector<32x32xf32>
    %114 = arith.addf %113, %3 : vector<32x32xf32>
    %c0_51 = arith.constant 0 : index
    %c0_52 = arith.constant 0 : index
    %c0_53 = arith.constant 0 : index
    %115 = vector.load %arg5[%c0_51, %c0_52, %c0_53] : memref<1x1x32xf32, #tpu.memory_space<vmem>>, vector<1x1x32xf32>
    %116 = vector.shape_cast %115 : vector<1x1x32xf32> to vector<1x32xf32>
    %117 = arith.mulf %114, %114 : vector<32x32xf32>
    %cst_54 = arith.constant dense<0.000000e+00> : vector<32xf32>
    %118 = vector.multi_reduction <add>, %117, %cst_54 [1] : vector<32x32xf32> to vector<32xf32>
    %119 = vector.shape_cast %118 : vector<32xf32> to vector<32x1xf32>
    %120 = math.sqrt %119 : vector<32x1xf32>
    %cst_55 = arith.constant 0.176776692 : f32
    %121 = vector.broadcast %cst_55 : f32 to vector<32x1xf32>
    %122 = arith.mulf %120, %121 : vector<32x1xf32>
    %cst_56 = arith.constant 9.99999993E-9 : f32
    %123 = vector.broadcast %cst_56 : f32 to vector<32x1xf32>
    %124 = arith.maximumf %122, %123 : vector<32x1xf32>
    %125 = vector.broadcast %124 : vector<32x1xf32> to vector<32x32xf32>
    %126 = arith.divf %114, %125 : vector<32x32xf32>
    %127 = vector.broadcast %116 : vector<1x32xf32> to vector<32x32xf32>
    %128 = arith.mulf %126, %127 : vector<32x32xf32>
    %129 = arith.truncf %128 : vector<32x32xf32> to vector<32x32xbf16>
    %c0_57 = arith.constant 0 : index
    %c0_58 = arith.constant 0 : index
    %c0_59 = arith.constant 0 : index
    %130 = vector.load %arg6[%c0_57, %c0_58, %c0_59] : memref<1x32x112xbf16, #tpu.memory_space<vmem>>, vector<1x32x112xbf16>
    %131 = vector.shape_cast %130 : vector<1x32x112xbf16> to vector<32x112xbf16>
    %cst_60 = arith.constant dense<0.000000e+00> : vector<32x112xf32>
    %132 = tpu.matmul %129, %131, %cst_60 {dimension_numbers = #tpu.dot_dimension_numbers<[1], [0], [0], [1], [0, 0, 1, 1], [], []>} : vector<32x32xbf16>, vector<32x112xbf16>, vector<32x112xf32> -> vector<32x112xf32>
    %c0_61 = arith.constant 0 : index
    %c0_62 = arith.constant 0 : index
    %c0_63 = arith.constant 0 : index
    %133 = vector.load %arg7[%c0_61, %c0_62, %c0_63] : memref<1x1x112xf32, #tpu.memory_space<vmem>>, vector<1x1x112xf32>
    %134 = vector.shape_cast %133 : vector<1x1x112xf32> to vector<1x112xf32>
    %135 = vector.broadcast %134 : vector<1x112xf32> to vector<32x112xf32>
    %136 = arith.addf %132, %135 : vector<32x112xf32>
    %137 = vector.extract_strided_slice %136 {offsets = [0, 0], sizes = [32, 32], strides = [1, 1]} : vector<32x112xf32> to vector<32x32xf32>
    %138 = vector.extract_strided_slice %136 {offsets = [0, 32], sizes = [32, 8], strides = [1, 1]} : vector<32x112xf32> to vector<32x8xf32>
    %139 = vector.extract_strided_slice %136 {offsets = [0, 40], sizes = [32, 8], strides = [1, 1]} : vector<32x112xf32> to vector<32x8xf32>
    %140 = vector.extract_strided_slice %136 {offsets = [0, 48], sizes = [32, 64], strides = [1, 1]} : vector<32x112xf32> to vector<32x64xf32>
    %c0_64 = arith.constant 0 : index
    %c0_65 = arith.constant 0 : index
    %141 = vector.load %arg12[%c0_64, %c0_65] : memref<32x8xf32, #tpu.memory_space<vmem>>, vector<32x8xf32>
    %c0_66 = arith.constant 0 : index
    %c0_67 = arith.constant 0 : index
    %142 = vector.load %arg13[%c0_66, %c0_67] : memref<32x8xf32, #tpu.memory_space<vmem>>, vector<32x8xf32>
    %143 = arith.mulf %138, %141 : vector<32x8xf32>
    %c4_i32 = arith.constant 4 : i32
    %144 = tpu.dynamic_rotate %138 by %c4_i32 dim 1 : vector<32x8xf32>, i32 -> vector<32x8xf32>
    %145 = arith.mulf %144, %142 : vector<32x8xf32>
    %146 = arith.addf %143, %145 : vector<32x8xf32>
    %147 = arith.truncf %146 : vector<32x8xf32> to vector<32x8xbf16>
    %148 = vector.extract_strided_slice %137 {offsets = [0, 0], sizes = [32, 8], strides = [1, 1]} : vector<32x32xf32> to vector<32x8xf32>
    %149 = arith.mulf %148, %141 : vector<32x8xf32>
    %c4_i32_68 = arith.constant 4 : i32
    %150 = tpu.dynamic_rotate %148 by %c4_i32_68 dim 1 : vector<32x8xf32>, i32 -> vector<32x8xf32>
    %151 = arith.mulf %150, %142 : vector<32x8xf32>
    %152 = arith.addf %149, %151 : vector<32x8xf32>
    %153 = vector.extract_strided_slice %137 {offsets = [0, 8], sizes = [32, 8], strides = [1, 1]} : vector<32x32xf32> to vector<32x8xf32>
    %154 = arith.mulf %153, %141 : vector<32x8xf32>
    %c4_i32_69 = arith.constant 4 : i32
    %155 = tpu.dynamic_rotate %153 by %c4_i32_69 dim 1 : vector<32x8xf32>, i32 -> vector<32x8xf32>
    %156 = arith.mulf %155, %142 : vector<32x8xf32>
    %157 = arith.addf %154, %156 : vector<32x8xf32>
    %158 = vector.extract_strided_slice %137 {offsets = [0, 16], sizes = [32, 8], strides = [1, 1]} : vector<32x32xf32> to vector<32x8xf32>
    %159 = arith.mulf %158, %141 : vector<32x8xf32>
    %c4_i32_70 = arith.constant 4 : i32
    %160 = tpu.dynamic_rotate %158 by %c4_i32_70 dim 1 : vector<32x8xf32>, i32 -> vector<32x8xf32>
    %161 = arith.mulf %160, %142 : vector<32x8xf32>
    %162 = arith.addf %159, %161 : vector<32x8xf32>
    %163 = vector.extract_strided_slice %137 {offsets = [0, 24], sizes = [32, 8], strides = [1, 1]} : vector<32x32xf32> to vector<32x8xf32>
    %164 = arith.mulf %163, %141 : vector<32x8xf32>
    %c4_i32_71 = arith.constant 4 : i32
    %165 = tpu.dynamic_rotate %163 by %c4_i32_71 dim 1 : vector<32x8xf32>, i32 -> vector<32x8xf32>
    %166 = arith.mulf %165, %142 : vector<32x8xf32>
    %167 = arith.addf %164, %166 : vector<32x8xf32>
    %168 = tpu.concatenate %152, %157, %162, %167 in 0 : vector<32x8xf32>, vector<32x8xf32>, vector<32x8xf32>, vector<32x8xf32> -> vector<128x8xf32>
    %cst_72 = arith.constant 0.353553385 : f32
    %169 = vector.broadcast %cst_72 : f32 to vector<128x8xf32>
    %170 = arith.mulf %168, %169 : vector<128x8xf32>
    %171 = arith.truncf %170 : vector<128x8xf32> to vector<128x8xbf16>
    %cst_73 = arith.constant dense<0.000000e+00> : vector<128x32xf32>
    %172 = tpu.matmul %171, %147, %cst_73 {dimension_numbers = #tpu.dot_dimension_numbers<[1], [1], [0], [0], [0, 0, 1, 0], [], []>} : vector<128x8xbf16>, vector<32x8xbf16>, vector<128x32xf32> -> vector<128x32xf32>
    %c0_74 = arith.constant 0 : index
    %c0_75 = arith.constant 0 : index
    %173 = vector.load %arg14[%c0_74, %c0_75] : memref<128x32xf32, #tpu.memory_space<vmem>>, vector<128x32xf32>
    %cst_76 = arith.constant 0.000000e+00 : f32
    %174 = vector.broadcast %cst_76 : f32 to vector<128x32xf32>
    %175 = arith.cmpf one, %173, %174 : vector<128x32xf32>
    %cst_77 = arith.constant -1.000000e+30 : f32
    %176 = vector.broadcast %cst_77 : f32 to vector<128x32xf32>
    %177 = arith.select %175, %176, %172 : vector<128x32xi1>, vector<128x32xf32>
    %cst_78 = arith.constant dense<0xFF800000> : vector<128xf32>
    %178 = vector.multi_reduction <maximumf>, %177, %cst_78 [1] : vector<128x32xf32> to vector<128xf32>
    %179 = vector.shape_cast %178 : vector<128xf32> to vector<128x1xf32>
    %180 = vector.broadcast %179 : vector<128x1xf32> to vector<128x32xf32>
    %181 = arith.subf %177, %180 : vector<128x32xf32>
    %182 = math.exp %181 : vector<128x32xf32>
    %cst_79 = arith.constant dense<0.000000e+00> : vector<128xf32>
    %183 = vector.multi_reduction <add>, %182, %cst_79 [1] : vector<128x32xf32> to vector<128xf32>
    %184 = vector.shape_cast %183 : vector<128xf32> to vector<128x1xf32>
    %185 = tpu.reciprocal %184 {approx = true} : vector<128x1xf32> -> vector<128x1xf32>
    %186 = vector.broadcast %185 : vector<128x1xf32> to vector<128x32xf32>
    %187 = arith.mulf %182, %186 : vector<128x32xf32>
    %188 = arith.truncf %187 : vector<128x32xf32> to vector<128x32xbf16>
    %189 = arith.truncf %139 : vector<32x8xf32> to vector<32x8xbf16>
    %cst_80 = arith.constant dense<0.000000e+00> : vector<128x8xf32>
    %190 = tpu.matmul %188, %189, %cst_80 {dimension_numbers = #tpu.dot_dimension_numbers<[1], [0], [0], [1], [0, 0, 1, 1], [], []>} : vector<128x32xbf16>, vector<32x8xbf16>, vector<128x8xf32> -> vector<128x8xf32>
    %191 = vector.extract_strided_slice %190 {offsets = [0, 0], sizes = [32, 8], strides = [1, 1]} : vector<128x8xf32> to vector<32x8xf32>
    %192 = vector.extract_strided_slice %190 {offsets = [32, 0], sizes = [32, 8], strides = [1, 1]} : vector<128x8xf32> to vector<32x8xf32>
    %193 = vector.extract_strided_slice %190 {offsets = [64, 0], sizes = [32, 8], strides = [1, 1]} : vector<128x8xf32> to vector<32x8xf32>
    %194 = vector.extract_strided_slice %190 {offsets = [96, 0], sizes = [32, 8], strides = [1, 1]} : vector<128x8xf32> to vector<32x8xf32>
    %195 = tpu.concatenate %191, %192, %193, %194 in 1 : vector<32x8xf32>, vector<32x8xf32>, vector<32x8xf32>, vector<32x8xf32> -> vector<32x32xf32>
    %196 = arith.truncf %195 : vector<32x32xf32> to vector<32x32xbf16>
    %c0_81 = arith.constant 0 : index
    %c0_82 = arith.constant 0 : index
    %c0_83 = arith.constant 0 : index
    %197 = vector.load %arg8[%c0_81, %c0_82, %c0_83] : memref<1x32x32xbf16, #tpu.memory_space<vmem>>, vector<1x32x32xbf16>
    %198 = vector.shape_cast %197 : vector<1x32x32xbf16> to vector<32x32xbf16>
    %cst_84 = arith.constant dense<0.000000e+00> : vector<32x32xf32>
    %199 = tpu.matmul %196, %198, %cst_84 {dimension_numbers = #tpu.dot_dimension_numbers<[1], [0], [0], [1], [0, 0, 1, 1], [], []>} : vector<32x32xbf16>, vector<32x32xbf16>, vector<32x32xf32> -> vector<32x32xf32>
    %c0_85 = arith.constant 0 : index
    %c0_86 = arith.constant 0 : index
    %c0_87 = arith.constant 0 : index
    %200 = vector.load %arg9[%c0_85, %c0_86, %c0_87] : memref<1x1x32xf32, #tpu.memory_space<vmem>>, vector<1x1x32xf32>
    %201 = vector.shape_cast %200 : vector<1x1x32xf32> to vector<1x32xf32>
    %202 = vector.broadcast %201 : vector<1x32xf32> to vector<32x32xf32>
    %203 = arith.addf %199, %202 : vector<32x32xf32>
    %cst_88 = arith.constant 5.000000e-01 : f32
    %204 = vector.broadcast %cst_88 : f32 to vector<32x64xf32>
    %205 = arith.mulf %204, %140 : vector<32x64xf32>
    %cst_89 = arith.constant 0.707106769 : f32
    %206 = vector.broadcast %cst_89 : f32 to vector<32x64xf32>
    %207 = arith.mulf %140, %206 : vector<32x64xf32>
    %cst_90 = arith.constant 0.000000e+00 : f32
    %208 = vector.broadcast %cst_90 : f32 to vector<32x64xf32>
    %209 = arith.cmpf oge, %207, %208 : vector<32x64xf32>
    %cst_91 = arith.constant 1.000000e+00 : f32
    %cst_92 = arith.constant -1.000000e+00 : f32
    %210 = vector.broadcast %cst_91 : f32 to vector<32x64xf32>
    %211 = vector.broadcast %cst_92 : f32 to vector<32x64xf32>
    %212 = arith.select %209, %210, %211 : vector<32x64xi1>, vector<32x64xf32>
    %213 = math.absf %207 : vector<32x64xf32>
    %cst_93 = arith.constant 0.327591091 : f32
    %214 = vector.broadcast %cst_93 : f32 to vector<32x64xf32>
    %215 = arith.mulf %214, %213 : vector<32x64xf32>
    %cst_94 = arith.constant 1.000000e+00 : f32
    %216 = vector.broadcast %cst_94 : f32 to vector<32x64xf32>
    %217 = arith.addf %216, %215 : vector<32x64xf32>
    %cst_95 = arith.constant 1.000000e+00 : f32
    %218 = vector.broadcast %cst_95 : f32 to vector<32x64xf32>
    %219 = arith.divf %218, %217 : vector<32x64xf32>
    %cst_96 = arith.constant 1.06140542 : f32
    %220 = vector.broadcast %cst_96 : f32 to vector<32x64xf32>
    %221 = arith.mulf %220, %219 : vector<32x64xf32>
    %cst_97 = arith.constant -1.45315206 : f32
    %222 = vector.broadcast %cst_97 : f32 to vector<32x64xf32>
    %223 = arith.addf %221, %222 : vector<32x64xf32>
    %224 = arith.mulf %223, %219 : vector<32x64xf32>
    %cst_98 = arith.constant 1.42141378 : f32
    %225 = vector.broadcast %cst_98 : f32 to vector<32x64xf32>
    %226 = arith.addf %224, %225 : vector<32x64xf32>
    %227 = arith.mulf %226, %219 : vector<32x64xf32>
    %cst_99 = arith.constant -0.284496725 : f32
    %228 = vector.broadcast %cst_99 : f32 to vector<32x64xf32>
    %229 = arith.addf %227, %228 : vector<32x64xf32>
    %230 = arith.mulf %229, %219 : vector<32x64xf32>
    %cst_100 = arith.constant 0.254829586 : f32
    %231 = vector.broadcast %cst_100 : f32 to vector<32x64xf32>
    %232 = arith.addf %230, %231 : vector<32x64xf32>
    %233 = arith.mulf %232, %219 : vector<32x64xf32>
    %cst_101 = arith.constant 0.000000e+00 : f32
    %234 = vector.broadcast %cst_101 : f32 to vector<32x64xf32>
    %235 = arith.subf %234, %213 : vector<32x64xf32>
    %236 = arith.mulf %235, %213 : vector<32x64xf32>
    %237 = math.exp %236 : vector<32x64xf32>
    %238 = arith.mulf %233, %237 : vector<32x64xf32>
    %cst_102 = arith.constant 1.000000e+00 : f32
    %239 = vector.broadcast %cst_102 : f32 to vector<32x64xf32>
    %240 = arith.subf %239, %238 : vector<32x64xf32>
    %241 = arith.mulf %212, %240 : vector<32x64xf32>
    %cst_103 = arith.constant 1.000000e+00 : f32
    %242 = vector.broadcast %cst_103 : f32 to vector<32x64xf32>
    %243 = arith.addf %242, %241 : vector<32x64xf32>
    %244 = arith.mulf %205, %243 : vector<32x64xf32>
    %245 = arith.truncf %244 : vector<32x64xf32> to vector<32x64xbf16>
    %c0_104 = arith.constant 0 : index
    %c0_105 = arith.constant 0 : index
    %c0_106 = arith.constant 0 : index
    %246 = vector.load %arg10[%c0_104, %c0_105, %c0_106] : memref<1x64x32xbf16, #tpu.memory_space<vmem>>, vector<1x64x32xbf16>
    %247 = vector.shape_cast %246 : vector<1x64x32xbf16> to vector<64x32xbf16>
    %cst_107 = arith.constant dense<0.000000e+00> : vector<32x32xf32>
    %248 = tpu.matmul %245, %247, %cst_107 {dimension_numbers = #tpu.dot_dimension_numbers<[1], [0], [0], [1], [0, 0, 1, 1], [], []>} : vector<32x64xbf16>, vector<64x32xbf16>, vector<32x32xf32> -> vector<32x32xf32>
    %c0_108 = arith.constant 0 : index
    %c0_109 = arith.constant 0 : index
    %c0_110 = arith.constant 0 : index
    %249 = vector.load %arg11[%c0_108, %c0_109, %c0_110] : memref<1x1x32xf32, #tpu.memory_space<vmem>>, vector<1x1x32xf32>
    %250 = vector.shape_cast %249 : vector<1x1x32xf32> to vector<1x32xf32>
    %251 = vector.broadcast %250 : vector<1x32xf32> to vector<32x32xf32>
    %252 = arith.addf %248, %251 : vector<32x32xf32>
    %253 = arith.addf %203, %252 : vector<32x32xf32>
    %254 = arith.addf %253, %114 : vector<32x32xf32>
    %c0_111 = arith.constant 0 : index
    %c0_112 = arith.constant 0 : index
    %255 = vector.load %arg19[%c0_111, %c0_112] : memref<32x32xf32, #tpu.memory_space<vmem>>, vector<32x32xf32>
    tpu.vector_store %arg19[%c0_111, %c0_112], %254 {strides = array<i32>} : memref<32x32xf32, #tpu.memory_space<vmem>>, vector<32x32xf32>,
    %c1_i32 = arith.constant 1 : i32
    %256 = arith.cmpi eq, %arg1, %c1_i32 : i32
    %257 = arith.extui %256 : i1 to i32
    %c0_i32_113 = arith.constant 0 : i32
    %258 = arith.cmpi ne, %257, %c0_i32_113 : i32
    scf.if %258 {
      %c0_114 = arith.constant 0 : index
      %c0_115 = arith.constant 0 : index
      %259 = vector.load %arg15[%c0_114, %c0_115] : memref<1x32xf32, #tpu.memory_space<vmem>>, vector<1x32xf32>
      %260 = arith.mulf %254, %254 : vector<32x32xf32>
      %cst_116 = arith.constant dense<0.000000e+00> : vector<32xf32>
      %261 = vector.multi_reduction <add>, %260, %cst_116 [1] : vector<32x32xf32> to vector<32xf32>
      %262 = vector.shape_cast %261 : vector<32xf32> to vector<32x1xf32>
      %263 = math.sqrt %262 : vector<32x1xf32>
      %cst_117 = arith.constant 0.176776692 : f32
      %264 = vector.broadcast %cst_117 : f32 to vector<32x1xf32>
      %265 = arith.mulf %263, %264 : vector<32x1xf32>
      %cst_118 = arith.constant 9.99999993E-9 : f32
      %266 = vector.broadcast %cst_118 : f32 to vector<32x1xf32>
      %267 = arith.maximumf %265, %266 : vector<32x1xf32>
      %268 = vector.broadcast %267 : vector<32x1xf32> to vector<32x32xf32>
      %269 = arith.divf %254, %268 : vector<32x32xf32>
      %270 = vector.broadcast %259 : vector<1x32xf32> to vector<32x32xf32>
      %271 = arith.mulf %269, %270 : vector<32x32xf32>
      %272 = arith.truncf %271 : vector<32x32xf32> to vector<32x32xbf16>
      %c0_119 = arith.constant 0 : index
      %c0_120 = arith.constant 0 : index
      %273 = vector.load %arg16[%c0_119, %c0_120] : memref<32x64xbf16, #tpu.memory_space<vmem>>, vector<32x64xbf16>
      %cst_121 = arith.constant dense<0.000000e+00> : vector<32x64xf32>
      %274 = tpu.matmul %272, %273, %cst_121 {dimension_numbers = #tpu.dot_dimension_numbers<[1], [0], [0], [1], [0, 0, 1, 1], [], []>} : vector<32x32xbf16>, vector<32x64xbf16>, vector<32x64xf32> -> vector<32x64xf32>
      %c0_122 = arith.constant 0 : index
      %c0_123 = arith.constant 0 : index
      %275 = vector.load %arg17[%c0_122, %c0_123] : memref<1x64xf32, #tpu.memory_space<vmem>>, vector<1x64xf32>
      %276 = vector.broadcast %275 : vector<1x64xf32> to vector<32x64xf32>
      %277 = arith.addf %274, %276 : vector<32x64xf32>
      %c0_124 = arith.constant 0 : index
      %c0_125 = arith.constant 0 : index
      %c0_126 = arith.constant 0 : index
      %278 = vector.load %arg18[%c0_124, %c0_125, %c0_126] : memref<1x32x64xf32, #tpu.memory_space<vmem>>, vector<1x32x64xf32>
      %279 = vector.shape_cast %278 : vector<1x32x64xf32> to vector<32x64xf32>
      %280 = vector.shape_cast %277 : vector<32x64xf32> to vector<1x32x64xf32>
      tpu.vector_store %arg18[%c0_124, %c0_125, %c0_126], %280 {strides = array<i32>} : memref<1x32x64xf32, #tpu.memory_space<vmem>>, vector<1x32x64xf32>,
    } else {
    }
    return
  }
  func.func @transform_0(%arg0: i32, %arg1: i32) -> (i32, i32, i32) {
    %c0_i32 = arith.constant 0 : i32
    %c0_i32_0 = arith.constant 0 : i32
    %c0_i32_1 = arith.constant 0 : i32
    return %arg0, %c0_i32, %c0_i32_0 : i32, i32, i32
  }
  func.func @transform_1(%arg0: i32, %arg1: i32) -> (i32, i32, i32, i32) {
    %c0_i32 = arith.constant 0 : i32
    %c0_i32_0 = arith.constant 0 : i32
    %c0_i32_1 = arith.constant 0 : i32
    %c0_i32_2 = arith.constant 0 : i32
    return %arg1, %c0_i32, %c0_i32_0, %c0_i32_1 : i32, i32, i32, i32
  }
  func.func @transform_2(%arg0: i32, %arg1: i32) -> (i32, i32, i32, i32) {
    %c0_i32 = arith.constant 0 : i32
    %c0_i32_0 = arith.constant 0 : i32
    %c0_i32_1 = arith.constant 0 : i32
    %c0_i32_2 = arith.constant 0 : i32
    return %arg1, %c0_i32, %c0_i32_0, %c0_i32_1 : i32, i32, i32, i32
  }
  func.func @transform_3(%arg0: i32, %arg1: i32) -> (i32, i32, i32) {
    %c0_i32 = arith.constant 0 : i32
    %c0_i32_0 = arith.constant 0 : i32
    %c0_i32_1 = arith.constant 0 : i32
    return %arg1, %c0_i32, %c0_i32_0 : i32, i32, i32
  }
  func.func @transform_4(%arg0: i32, %arg1: i32) -> (i32, i32, i32) {
    %c0_i32 = arith.constant 0 : i32
    %c0_i32_0 = arith.constant 0 : i32
    %c0_i32_1 = arith.constant 0 : i32
    return %arg1, %c0_i32, %c0_i32_0 : i32, i32, i32
  }
  func.func @transform_5(%arg0: i32, %arg1: i32) -> (i32, i32, i32) {
    %c0_i32 = arith.constant 0 : i32
    %c0_i32_0 = arith.constant 0 : i32
    %c0_i32_1 = arith.constant 0 : i32
    return %arg1, %c0_i32, %c0_i32_0 : i32, i32, i32
  }
  func.func @transform_6(%arg0: i32, %arg1: i32) -> (i32, i32, i32) {
    %c0_i32 = arith.constant 0 : i32
    %c0_i32_0 = arith.constant 0 : i32
    %c0_i32_1 = arith.constant 0 : i32
    return %arg1, %c0_i32, %c0_i32_0 : i32, i32, i32
  }
  func.func @transform_7(%arg0: i32, %arg1: i32) -> (i32, i32, i32) {
    %c0_i32 = arith.constant 0 : i32
    %c0_i32_0 = arith.constant 0 : i32
    %c0_i32_1 = arith.constant 0 : i32
    return %arg1, %c0_i32, %c0_i32_0 : i32, i32, i32
  }
  func.func @transform_8(%arg0: i32, %arg1: i32) -> (i32, i32, i32) {
    %c0_i32 = arith.constant 0 : i32
    %c0_i32_0 = arith.constant 0 : i32
    %c0_i32_1 = arith.constant 0 : i32
    return %arg1, %c0_i32, %c0_i32_0 : i32, i32, i32
  }
  func.func @transform_9(%arg0: i32, %arg1: i32) -> (i32, i32, i32) {
    %c0_i32 = arith.constant 0 : i32
    %c0_i32_0 = arith.constant 0 : i32
    %c0_i32_1 = arith.constant 0 : i32
    return %arg1, %c0_i32, %c0_i32_0 : i32, i32, i32
  }
  func.func @transform_10(%arg0: i32, %arg1: i32) -> (i32, i32) {
    %c0_i32 = arith.constant 0 : i32
    %c0_i32_0 = arith.constant 0 : i32
    %c0_i32_1 = arith.constant 0 : i32
    return %c0_i32, %c0_i32_0 : i32, i32
  }
  func.func @transform_11(%arg0: i32, %arg1: i32) -> (i32, i32) {
    %c0_i32 = arith.constant 0 : i32
    %c0_i32_0 = arith.constant 0 : i32
    %c0_i32_1 = arith.constant 0 : i32
    return %c0_i32, %c0_i32_0 : i32, i32
  }
  func.func @transform_12(%arg0: i32, %arg1: i32) -> (i32, i32) {
    %c0_i32 = arith.constant 0 : i32
    %c0_i32_0 = arith.constant 0 : i32
    %c0_i32_1 = arith.constant 0 : i32
    return %c0_i32, %c0_i32_0 : i32, i32
  }
  func.func @transform_13(%arg0: i32, %arg1: i32) -> (i32, i32) {
    %c0_i32 = arith.constant 0 : i32
    %c0_i32_0 = arith.constant 0 : i32
    %c0_i32_1 = arith.constant 0 : i32
    return %c0_i32, %c0_i32_0 : i32, i32
  }
  func.func @transform_14(%arg0: i32, %arg1: i32) -> (i32, i32) {
    %c0_i32 = arith.constant 0 : i32
    %c0_i32_0 = arith.constant 0 : i32
    %c0_i32_1 = arith.constant 0 : i32
    return %c0_i32, %c0_i32_0 : i32, i32
  }
  func.func @transform_15(%arg0: i32, %arg1: i32) -> (i32, i32) {
    %c0_i32 = arith.constant 0 : i32
    %c0_i32_0 = arith.constant 0 : i32
    %c0_i32_1 = arith.constant 0 : i32
    return %c0_i32, %c0_i32_0 : i32, i32
  }
  func.func @transform_16(%arg0: i32, %arg1: i32) -> (i32, i32, i32) {
    %c0_i32 = arith.constant 0 : i32
    %c0_i32_0 = arith.constant 0 : i32
    %c0_i32_1 = arith.constant 0 : i32
    return %arg0, %c0_i32, %c0_i32_0 : i32, i32, i32
  }
}

</mosaic_0001>

<bundles_post_ra>
// kernel: atc_transformer_forward.1
= control target key start
LH: loop header
LB: loop body
LE: loop exit
PB: predicated region body
PF: predicated region fallthrough
CT: control target
= control target key end

     0   :  { %s4962_s0 = inlined_call_operand.vmem [shape: f32[2,32,32], index: 0, kind: input, shape index: {}]   ;;  %s4963_s1 = inlined_call_operand.vmem [shape: bf16[2,2,32,96], index: 1, kind: input, shape index: {}]   ;;  %s4964_s2 = inlined_call_operand.vmem [shape: f32[2,2,32,1], index: 2, kind: input, shape index: {}]   ;;  %s4965_s3 = inlined_call_operand.vmem [shape: f32[2,1,32], index: 3, kind: input, shape index: {}]   ;;  %s4966_s4 = inlined_call_operand.vmem [shape: bf16[2,32,112], index: 4, kind: input, shape index: {}]   ;;  %s4967_s5 = inlined_call_operand.vmem [shape: f32[2,1,112], index: 5, kind: input, shape index: {}]   ;;  %s4968_s6 = inlined_call_operand.vmem [shape: bf16[2,32,32], index: 6, kind: input, shape index: {}]   ;;  %s4969_s7 = inlined_call_operand.vmem [shape: f32[2,1,32], index: 7, kind: input, shape index: {}]   ;;  %s4970_s8 = inlined_call_operand.vmem [shape: bf16[2,64,32], index: 8, kind: input, shape index: {}]   ;;  %s4971_s9 = inlined_call_operand.vmem [shape: f32[2,1,32], index: 9, kind: input, shape index: {}]   ;;  %s4972_s10 = inlined_call_operand.vmem [shape: f32[32,8], index: 10, kind: input, shape index: {}]   ;;  %s4973_s11 = inlined_call_operand.vmem [shape: f32[32,8], index: 11, kind: input, shape index: {}]   ;;  %s4974_s12 = inlined_call_operand.vmem [shape: f32[128,32], index: 12, kind: input, shape index: {}]   ;;  %s4975_s13 = inlined_call_operand.vmem [shape: f32[1,32], index: 13, kind: input, shape index: {}]   ;;  %s4976_s14 = inlined_call_operand.vmem [shape: bf16[32,64], index: 14, kind: input, shape index: {}]   ;;  %s4977_s15 = inlined_call_operand.vmem [shape: f32[1,64], index: 15, kind: input, shape index: {}]   ;;  %s4978_s16 = inlined_call_operand.hbm [shape: f32[2,32,64], index: 16, kind: output, shape index: {}]  }
   0x1   :  { %4996 = sst [smem:[#allocation18_spill]] %s4962_s0 }
   0x2   :  { %4997 = sst [smem:[#allocation19_spill]] %s4963_s1 }
   0x3   :  { %4998 = sst [smem:[#allocation20_spill]] %s4964_s2 }
   0x4   :  { %4999 = sst [smem:[#allocation21_spill]] %s4972_s10 }
   0x5   :  { %5000 = sst [smem:[#allocation22_spill]] %s4974_s12 }
   0x6   :  { %5001 = sst [smem:[#allocation23_spill]] %s4975_s13 }
   0x7   :  { %5002 = sst [smem:[#allocation24_spill]] %s4976_s14 }
   0x8   :  { %5003 = sst [smem:[#allocation25_spill]] %s4977_s15 }
   0x9   :  { %5004 = sst [smem:[#allocation26_spill]] %s4978_s16 }
   0xa   :  { %21 = vsyncpa [#allocation4], 0 }
   0xb   :  { %23 = vsyncpa [#allocation4 + $0x1], 0  ;;  %s3843_s21 = smov 0   ;;  %s3845_s22 = smov 0  }
   0xc   :  { %s3847_s23 = smov 0   ;;  %s3849_s24 = smov 0  }
   0xd   :  { %s3851_s25 = smov 0   ;;  %s3853_s26 = smov 0  }
   0xe   :  { %s3855_s27 = smov 0   ;;  %s3857_s28 = smov 0  }
   0xf LB: > { %5005 = sst [smem:[#allocation6_spill]] %s3707_s21  ;;  %s3024_s29 = sadd.s32 4294967295, %s3735_s28   ;;  %s3735_s28 = sphi %s3857_s28, %s29_s28   ;;  %s3731_s27 = sphi %s3855_s27, %s5046_s27   ;;  %s3727_s26 = sphi %s3853_s26, %s5045_s26   ;;  %s3723_s25 = sphi %s3851_s25, %s5044_s25   ;;  %s3719_s24 = sphi %s3849_s24, %s5043_s24   ;;  %s3715_s23 = sphi %s3847_s23, %s5042_s23   ;;  %s3711_s22 = sphi %s3845_s22, %s5041_s22   ;;  %s3707_s21 = sphi %s3843_s21, %s5040_s21  }
  0x10   : > { %5006 = sst [smem:[#allocation7_spill]] %s3711_s22  ;;  %s3025_s30 = sadd.s32 4294967294, %s3735_s28  }
  0x11   : > { %5007 = sst [smem:[#allocation8_spill]] %s3715_s23  ;;  %s38_s0 = sadd.s32 1, %s3727_s26 }
  0x12   : > { %5008 = sst [smem:[#allocation9_spill]] %s3723_s25  ;;  %p39_p0 = scmp.ge.s32.totalorder %s38_s0, 2 }
  0x13   : > { %5009 = sst [smem:[#allocation10_spill]] %s3727_s26  ;;  %s41_s17 = sadd.s32 1, %s3731_s27 }
  0x14   : > { %5010 = sst [smem:[#allocation11_spill]] %s3731_s27  ;;  %p444_p1 = scmp.ne.s32.totalorder %s3715_s23, %s3711_s22 }
  0x15   : > { %5011 = sst [smem:[#allocation12_spill]] %s3735_s28  ;;  %p445_p2 = scmp.eq.s32.totalorder %s3024_s29, 3 }
  0x16   : > { %s5048_s0 = smov (%p39_p0, %s38_s0), 0  ;;  %s5050_s17 = smov (!%p39_p0, %s41_s17), %s3731_s27 }
  0x17   : > { %5012 = sst [smem:[#allocation13_spill]] %s5048_s0  ;;  %p3892_p3 = por %p445_p2, %p444_p1 }
  0x18   : > { %p450_p4 = scmp.ne.s32.totalorder %s3711_s22, %s3707_s21  ;;  %p43_p5 = scmp.ge.s32.totalorder %s5050_s17, 2 }
  0x19   : > { %s5013_s18 = scalar_select %p3892_p3, 1, 0 }
  0x1a   : > { %p451_p6 = scmp.eq.s32.totalorder %s3025_s30, 3  ;;  %p3028_p7 = scmp.ge.s32.totalorder %s3735_s28, 1 }
  0x1b   : > { %5014 = sst [smem:[#allocation14_spill]] %s5013_s18  ;;  %p559_p8 = scmp.lt.s32.totalorder %s3735_s28, 5 }
  0x1c   : > { %s5052_s17 = smov (%p43_p5, %s5050_s17), 0  ;;  %p3902_p9 = por %p451_p6, %p450_p4 }
  0x1d   : > { %5015 = sst [smem:[#allocation15_spill]] %s5052_s17  ;;  %p560_p10 = pnand %p3028_p7, %p559_p8 }
  0x1e   : > { %s5016_s19 = scalar_select %p3902_p9, 1, 0 }
  0x1f   : > { %s431_s20 = ssub.s32 %s3731_s27, %s5052_s17  ;;  %s434_s29 = sadd.s32 1, %s3715_s23 }
  0x20   : > { %5017 = sst [smem:[#allocation16_spill]] %s5016_s19  ;;  %p432_p11 = scmp.eq.s32.totalorder %s431_s20, 0 }
  0x21   : > { %563 = sbr.rel (%p560_p10) target bundleno = 3483 (0xd9b), region = 84  ;;  %s4988_s30 = sand.u32 (!%p560_p10), 1, %s3711_s22  }
  0x22   : > { %s3910_s0 = scalar_select %p432_p11, %s3715_s23, %s434_s29  }
  0x23   : > { %p646_p12 = scmp.lt.s32.totalorder (!%p560_p10), %s3723_s25, 1  ;;  %s3029_s26 = sshll.u32 (!%p560_p10), %s4988_s30, 5 }
  0x24   : > { %5018 = sst [smem:[#allocation17_spill]] %s3910_s0  ;;  %p651_p13 = scmp.lt.s32.totalorder (!%p560_p10), %s3719_s24, 1 }
  0x25   : > { %s5019_s27 = sld [smem:[#allocation18_spill]] (!%p560_p10)  ;;  %s5020_s1 = sld [smem:[#allocation19_spill]] (!%p560_p10) }
  0x26   : > { %s5021_s2 = sld [smem:[#allocation20_spill]] (!%p560_p10)  ;;  %s3968_s29 = scalar_lea.vmem (!%p560_p10), [#allocation3], %s3029_s26 }
  0x27   : > { %p3042_p0 = scmp.ne.s32.totalorder (!%p560_p10), %s3719_s24, 0 }
  0x28   : > { %s647_s21 = scalar_select %p646_p12, %s3723_s25, 1 }
  0x29   : > { %s3919_s19 = scalar_select %p651_p13, %s3719_s24, 1 }
  0x2a   : > { %s3137_s20 = sshll.u32 %s647_s21, 5  ;;  %692 = sbr.rel (%p3042_p0) target bundleno = 49 (0x31), region = 88  ;;  %vm697_vm0 = vcmask (!%p3042_p0), 261120  }
  0x2b   : > { %s650_s0 = scalar_lea.vmem %s5019_s27, %s3137_s20  ;;  %s3138_s23 = sshll.u32 %s3919_s19, 5 }
  0x2c   : > { %s3928_s30 = scalar_lea.vmem %s5020_s1, %s3138_s23  ;;  %s3139_s18 = sshll.u32 %s3919_s19, 6  ;;  %v693_v0 = vld [vmem:[%s650_s0] sm:$0xff] (!%p3042_p0)  ;;  %v694_v1 = vld [vmem:[%s650_s0 + $0x8] sm:$0xff] (!%p3042_p0)  ;;  %v695_v2 = vld [vmem:[%s650_s0 + $0x10] sm:$0xff] (!%p3042_p0) }
  0x2d   : > { %s3934_s15 = scalar_lea.vmem %s5021_s2, %s3139_s18  ;;  %s3140_s12 = sshll.u32 %s3919_s19, 4  ;;  %698 = vst.msk [vmem:[#allocation2] sm:$0xff] (!%p3042_p0), %vm697_vm0, %v693_v0  ;;  %699 = vst.msk [vmem:[#allocation2 + $0x8] sm:$0xff] (!%p3042_p0), %vm697_vm0, %v694_v1  ;;  %v696_v3 = vld [vmem:[%s650_s0 + $0x18] sm:$0xff] (!%p3042_p0) }
  0x2e   : > { %s671_s27 = scalar_lea.vmem %s4967_s5, %s3919_s19  ;;  %s3948_s16 = scalar_lea.vmem %s4966_s4, %s3140_s12  ;;  %700 = vst.msk [vmem:[#allocation2 + $0x10] sm:$0xff] (!%p3042_p0), %vm697_vm0, %v695_v2  ;;  %701 = vst.msk [vmem:[#allocation2 + $0x18] sm:$0xff] (!%p3042_p0), %vm697_vm0, %v696_v3 }
  0x2f   : > { %s3953_s22 = scalar_lea.vmem %s4968_s6, %s3140_s12  ;;  %s679_s13 = scalar_lea.vmem %s4969_s7, %s3919_s19 }
  0x30   : > { %s3962_s2 = scalar_lea.vmem %s4970_s8, %s3138_s23  ;;  %s687_s20 = scalar_lea.vmem %s4971_s9, %s3919_s19 }
  0x31 PF: > { %s3737_s1 = smov 1   ;;  %s3738_s12 = smov 127   ;;  %v3483_v10 = vld [vmem:[%s3928_s30] sm:$0xff]   ;;  %vm788_vm1 = vcmask 785408   ;;  %v755_v11 = vld [vmem:[%s3934_s15 + $0x8] sm:$0xff]  ;;  %v3739_v13 = vmov 0  }
  0x32   : > { %3210 = vmatprep.mubr.msk.bf16.mxu0 %vm788_vm1, %v3483_v10  ;;  %v754_v12 = vld [vmem:[%s3934_s15] sm:$0xff]  ;;  %3432 = vset.pattern.permute.xlu1 %v3739_v13  ;;  %v756_v14 = vld [vmem:[%s3934_s15 + $0x10] sm:$0xff]  ;;  %v757_v15 = vld [vmem:[%s3934_s15 + $0x18] sm:$0xff]  ;;  %vm722_vm2 = vcmask 7168   ;;  %vm739_vm5 = vcmask 252928   ;;  %vm1210_vm15 = vcmask 261120   ;;  %s5026_s26 = scalar_lea.vmem %s4965_s3, %s3919_s19 }
  0x33   : > { %3431 = vset.pattern.permute.xlu0 %v3739_v13  ;;  %vm3045_vm3 = vmneg %vm722_vm2  ;;  %v3484_v36 = vld [vmem:[%s3928_s30 + $0x8] sm:$0xff]   ;;  %v3486_v19 = vld [vmem:[%s3928_s30 + $0x18] sm:$0xff]   ;;  %s3741_s21 = smov 96   ;;  %s3744_s28 = smov 104  }
  0x34   : > { %v3971_v4 = vld [vmem:[#allocation2] sm:$0xff]  ;;  %v3973_v5 = vld [vmem:[#allocation2 + $0x8] sm:$0xff]  ;;  %vm3993_vm4 = vmpackc.low %vm3045_vm3, %vm3045_vm3  ;;  %s3745_s25 = smov 8   ;;  %s5027_s18 = sld [smem:[#allocation21_spill]] }
  0x35   : > { %v3975_v6 = vld [vmem:[#allocation2 + $0x10] sm:$0xff]  ;;  %v3411_v7 = vpack.i.bf16 %v3973_v5, %v3971_v4  ;;  %v3979_v8 = vld [vmem:[#allocation2 + $0x18] sm:$0xff]  ;;  %v746_v26 = vpack.c.bf16 %v3973_v5, %v3971_v4  ;;  %vm4009_vm6 = vmpackc.low %vm739_vm5, %vm739_vm5  ;;  %s3747_s14 = smov 32   ;;  %s3748_s0 = smov 28  }
  0x36   : > { %v3416_v9 = vpack.i.bf16 %v3979_v8, %v3975_v6  ;;  %v747_v29 = vpack.c.bf16 %v3979_v8, %v3975_v6  ;;  %s3751_s10 = smov 24   ;;  %s3753_s17 = smov 124  }
  0x37   : > { %3412 = vrot.lane.b32.xlu0 %v3411_v7, %s3737_s1  ;;  %3422 = vrot.lane.b32.xlu1 %v3411_v7, %s3738_s12  ;;  %p3125_p1 = scmp.ne.s32.totalorder %s3719_s24, 1 }
  0x3b   : > { %3417 = vrot.lane.b32.xlu0 %v3416_v9, %s3737_s1  ;;  %3427 = vrot.lane.b32.xlu1 %v3416_v9, %s3738_s12 }
  0x3f   : > { %765 = vperm.xlu1 %3432, %v755_v11   ;;  %760 = vperm.xlu0 %3431, %v754_v12  }
  0x43   : > { %770 = vperm.xlu1 %3432, %v756_v14   ;;  %775 = vperm.xlu0 %3431, %v757_v15  }
  0xa9   : > { %v3413_v16 = vpop.permute.xlu0 %3412  ;;  %v3423_v24 = vpop.permute.xlu1 %3422 }
  0xaa   : > { %v3415_v17 = vunpack.i.h.bf16 %v3413_v16  ;;  %v3414_v18 = vunpack.i.l.bf16 %v3413_v16  ;;  %v3425_v27 = vunpack.i.h.bf16 %v3423_v24  ;;  %v3424_v28 = vunpack.i.l.bf16 %v3423_v24 }
  0xac   : > { %v3048_v20 = vpack.c.bf16 %v3415_v17, %v3414_v18  ;;  %v3056_v31 = vpack.c.bf16 %v3425_v27, %v3424_v28 }
  0xad   : > { %v3418_v21 = vpop.permute.xlu0 %3417  ;;  %v3428_v30 = vpop.permute.xlu1 %3427 }
  0xae   : > { %v3420_v22 = vunpack.i.h.bf16 %v3418_v21  ;;  %v3419_v23 = vunpack.i.l.bf16 %v3418_v21  ;;  %3198 = vmatprep.subr.msk.bf16.mxu0 %vm3993_vm4, %v3048_v20  ;;  %v3430_v32 = vunpack.i.h.bf16 %v3428_v30  ;;  %v3429_v33 = vunpack.i.l.bf16 %v3428_v30 }
  0xaf   : > { %3199 = vmatpush3.bf16.msk.msra.mxu0 %vm3993_vm4, %v3048_v20 }
  0xb0   : > { %v3053_v25 = vpack.c.bf16 %v3420_v22, %v3419_v23  ;;  %v3059_v35 = vpack.c.bf16 %v3430_v32, %v3429_v33 }
  0xb2   : > { %3200 = vmatprep.subr.msk.bf16.mxu0 %vm3993_vm4, %v3053_v25 }
  0xb3   : > { %3201 = vmatpush3.bf16.msk.msra.mxu0 %vm3993_vm4, %v3053_v25 }
  0xb4   : > { %3202 = vmatprep.subr.bf16.mxu0 %v746_v26 }
  0xb7   : > { %3203 = vmatpush3.bf16.msra.mxu0 %v746_v26 }
  0xb8   : > { %3204 = vmatprep.subr.bf16.mxu0 %v747_v29 }
  0xbb   : > { %3205 = vmatpush3.bf16.msra.mxu0 %v747_v29 }
  0xbc   : > { %3206 = vmatprep.subr.msk.bf16.mxu0 %vm4009_vm6, %v3056_v31 }
  0xbe   : > { %v766_v37 = vpop.permute.xlu1 %765  ;;  %v761_v38 = vpop.permute.xlu0 %760 }
  0xbf   : > { %3207 = vmatpush3.bf16.msk.msra.mxu0 %vm4009_vm6, %v3056_v31 }
  0xc0   : > { %3208 = vmatprep.subr.msk.bf16.mxu0 %vm4009_vm6, %v3059_v35 }
  0xc2   : > { %v771_v39 = vpop.permute.xlu1 %770  ;;  %v776_v41 = vpop.permute.xlu0 %775 }
  0xc3   : > { %3209 = vmatpush3.bf16.msk.msra.mxu0 %vm4009_vm6, %v3059_v35 }
  0xc6   : > { %3211 = vmatmul.mubr.msk.bf16.vlgmr.msra.gmra.mrb[0].mxu0 %vm788_vm1, %v3484_v36 }
 0x199   : > { %v3212_v40 = vpop.f32.mrb[0].mxu0 }
 0x19a   : > { %v4023_v42 = vadd.f32 %v3212_v40, %v771_v39  ;;  %v829_v43 = vpop.f32.mrb[1].mxu0 }
 0x19b   : > { %v4025_v44 = vadd.f32 %v829_v43, %v761_v38  ;;  %v3213_v45 = vpop.f32.mrb[2].mxu0 }
 0x19c   : > { %v4028_v46 = vmul.f32 0.70710677, %v4023_v42  ;;  %v4030_v47 = vadd.f32 %v3213_v45, %v776_v41  ;;  %v832_v48 = vpop.f32.mrb[3].mxu0 }
 0x19d   : > { %v4033_v49 = vmul.f32 0.70710677, %v4025_v44  ;;  %v4039_v52 = vadd.f32 %v832_v48, %v766_v37 }
 0x19e   : > { %v862_v50 = vand.u32 2147483647, %v4028_v46  ;;  %v4037_v51 = vmul.f32 0.70710677, %v4030_v47  ;;  %vm854_vm7 = vcmp.ge.f32.partialorder %v4028_v46, 0.0 }
 0x19f   : > { %v860_v53 = vand.u32 2147483647, %v4033_v49  ;;  %v4044_v58 = vmul.f32 0.70710677, %v4039_v52  ;;  %vm852_vm8 = vcmp.ge.f32.partialorder %v4033_v49, 0.0 }
 0x1a0   : > { %v866_v54 = vmul.f32 0.3275911, %v862_v50  ;;  %v863_v56 = vand.u32 2147483647, %v4037_v51  ;;  %v918_v1 = vsub.f32 0.0, %v862_v50  ;;  %vm855_vm9 = vcmp.ge.f32.partialorder %v4037_v51, 0.0 }
 0x1a1   : > { %v864_v55 = vmul.f32 0.3275911, %v860_v53  ;;  %v861_v61 = vand.u32 2147483647, %v4044_v58  ;;  %v916_v2 = vsub.f32 0.0, %v860_v53  ;;  %vm853_vm10 = vcmp.ge.f32.partialorder %v4044_v58, 0.0 }
 0x1a2   : > { %v870_v57 = vadd.f32 1.0, %v866_v54  ;;  %v867_v60 = vmul.f32 0.3275911, %v863_v56  ;;  %v922_v7 = vmul.f32 %v918_v1, %v862_v50  ;;  %v919_v9 = vsub.f32 0.0, %v863_v56 }
 0x1a3   : > { %v868_v59 = vadd.f32 1.0, %v864_v55  ;;  %v865_v63 = vmul.f32 0.3275911, %v861_v61  ;;  %v920_v12 = vmul.f32 %v916_v2, %v860_v53  ;;  %v917_v14 = vsub.f32 0.0, %v861_v61 }
 0x1a4   : > { %3495 = vrcp.f32 %v870_v57  ;;  %v871_v62 = vadd.f32 1.0, %v867_v60  ;;  %v928_v17 = vmul.f32 1.442695, %v922_v7  ;;  %v923_v20 = vmul.f32 %v919_v9, %v863_v56 }
 0x1a5   : > { %3497 = vrcp.f32 %v868_v59  ;;  %v869_v0 = vadd.f32 1.0, %v865_v63  ;;  %v924_v22 = vmul.f32 1.442695, %v920_v12  ;;  %v921_v26 = vmul.f32 %v917_v14, %v861_v61 }
 0x1a6   : > { %3499 = vrcp.f32 %v871_v62  ;;  %v930_v31 = vmul.f32 1.442695, %v923_v20  ;;  %v3740_v14 = vmov -1.0   ;;  %v847_v51 = vmul.f32 0.5, %v4030_v47 }
 0x1a7   : > { %3501 = vrcp.f32 %v869_v0  ;;  %v926_v37 = vmul.f32 1.442695, %v921_v26 }
 0x1a8   : > { %3503 = vpow2.f32 %v928_v17 }
 0x1a9   : > { %3505 = vpow2.f32 %v924_v22 }
 0x1aa   : > { %3507 = vpow2.f32 %v930_v31  ;;  %v844_v31 = vmul.f32 0.5, %v4025_v44  ;;  %v3068_v44 = vld [vmem:[%s3934_s15 + $0x28] sm:$0xff] }
 0x1ab   : > { %3509 = vpow2.f32 %v926_v37 }
 0x1ae   : > { %v3496_v3 = vpop.eup %3495 }
 0x1af   : > { %v3498_v10 = vpop.eup %3497  ;;  %v882_v11 = vmul.f32 1.0614054, %v3496_v3 }
 0x1b0   : > { %v880_v13 = vmul.f32 1.0614054, %v3498_v10  ;;  %v3500_v16 = vpop.eup %3499 }
 0x1b1   : > { %v886_v15 = vadd.f32 -1.4531521, %v882_v11  ;;  %v883_v23 = vmul.f32 1.0614054, %v3500_v16  ;;  %v3502_v24 = vpop.eup %3501 }
 0x1b2   : > { %v884_v18 = vadd.f32 -1.4531521, %v880_v13  ;;  %v881_v29 = vmul.f32 1.0614054, %v3502_v24  ;;  %v3504_v61 = vpop.eup %3503 }
 0x1b3   : > { %v890_v21 = vmul.f32 %v3496_v3, %v886_v15  ;;  %v887_v28 = vadd.f32 -1.4531521, %v883_v23  ;;  %v3506_v63 = vpop.eup %3505  ;;  %v856_v15 = vsel %vm852_vm8, 1.0, %v3740_v14  ;;  %vm1401_vm8 = vcmask 1047616  }
 0x1b4   : > { %v888_v25 = vmul.f32 %v3498_v10, %v884_v18  ;;  %v885_v35 = vadd.f32 -1.4531521, %v881_v29  ;;  %v3508_v13 = vpop.eup %3507  ;;  %v846_v29 = vmul.f32 0.5, %v4023_v42 }
 0x1b5   : > { %v894_v27 = vadd.f32 1.4214138, %v890_v21  ;;  %v891_v33 = vmul.f32 %v3500_v16, %v887_v28  ;;  %v3510_v20 = vpop.eup %3509  ;;  %v857_v28 = vsel %vm853_vm10, 1.0, %v3740_v14 }
 0x1b6   : > { %v892_v30 = vadd.f32 1.4214138, %v888_v25  ;;  %v889_v40 = vmul.f32 %v3502_v24, %v885_v35 }
 0x1b7   : > { %v898_v32 = vmul.f32 %v3496_v3, %v894_v27  ;;  %v895_v39 = vadd.f32 1.4214138, %v891_v33  ;;  %v845_v33 = vmul.f32 0.5, %v4039_v52  ;;  %v3070_v52 = vld [vmem:[%s3934_s15 + $0x38] sm:$0xff] }
 0x1b8   : > { %v896_v36 = vmul.f32 %v3498_v10, %v892_v30  ;;  %v893_v48 = vadd.f32 1.4214138, %v889_v40  ;;  %v3067_v40 = vld [vmem:[%s3934_s15 + $0x20] sm:$0xff] }
 0x1b9   : > { %v902_v38 = vadd.f32 -0.28449672, %v898_v32  ;;  %v899_v45 = vmul.f32 %v3500_v16, %v895_v39 }
 0x1ba   : > { %v900_v41 = vadd.f32 -0.28449672, %v896_v36  ;;  %v897_v55 = vmul.f32 %v3502_v24, %v893_v48 }
 0x1bb   : > { %v906_v43 = vmul.f32 %v3496_v3, %v902_v38  ;;  %v903_v54 = vadd.f32 -0.28449672, %v899_v45 }
 0x1bc   : > { %v904_v50 = vmul.f32 %v3498_v10, %v900_v41  ;;  %v901_v60 = vadd.f32 -0.28449672, %v897_v55  ;;  %v3069_v41 = vld [vmem:[%s3934_s15 + $0x30] sm:$0xff]  ;;  %s5030_s15 = sld [smem:[#allocation23_spill]] (!%p3125_p1) }
 0x1bd   : > { %v910_v53 = vadd.f32 0.2548296, %v906_v43  ;;  %v907_v59 = vmul.f32 %v3500_v16, %v903_v54  ;;  %v3485_v43 = vld [vmem:[%s3928_s30 + $0x10] sm:$0xff]   ;;  %s3749_s30 = smov 16  }
 0x1be   : > { %v908_v56 = vadd.f32 0.2548296, %v904_v50  ;;  %v905_v2 = vmul.f32 %v3502_v24, %v901_v60  ;;  %3226 = vmatprep.mubr.msk.bf16.mxu1 %vm788_vm1, %v3485_v43 }
 0x1bf   : > { %v914_v57 = vmul.f32 %v3496_v3, %v910_v53  ;;  %v911_v1 = vadd.f32 0.2548296, %v907_v59  ;;  %v858_v3 = vsel %vm854_vm7, 1.0, %v3740_v14 }
 0x1c0   : > { %v912_v62 = vmul.f32 %v3498_v10, %v908_v56  ;;  %v909_v12 = vadd.f32 0.2548296, %v905_v2 }
 0x1c1   : > { %v934_v0 = vmul.f32 %v3504_v61, %v914_v57  ;;  %v915_v11 = vmul.f32 %v3500_v16, %v911_v1  ;;  %v859_v16 = vsel %vm855_vm9, 1.0, %v3740_v14  ;;  %vm1826_vm9 = vcmask 64512  }
 0x1c2   : > { %v932_v7 = vmul.f32 %v3506_v63, %v912_v62  ;;  %v913_v10 = vmul.f32 %v3502_v24, %v909_v12 }
 0x1c3   : > { %v938_v9 = vsub.f32 1.0, %v934_v0  ;;  %v935_v46 = vmul.f32 %v3508_v13, %v915_v11 }
 0x1c4   : > { %v936_v17 = vsub.f32 1.0, %v932_v7  ;;  %v933_v22 = vmul.f32 %v3510_v20, %v913_v10 }
 0x1c5   : > { %v942_v18 = vmul.f32 %v938_v9, %v858_v3  ;;  %v939_v21 = vsub.f32 1.0, %v935_v46 }
 0x1c6   : > { %v940_v49 = vmul.f32 %v936_v17, %v856_v15  ;;  %v937_v26 = vsub.f32 1.0, %v933_v22 }
 0x1c7   : > { %v946_v23 = vadd.f32 1.0, %v942_v18  ;;  %v943_v25 = vmul.f32 %v939_v21, %v859_v16 }
 0x1c8   : > { %v944_v27 = vadd.f32 1.0, %v940_v49  ;;  %v941_v24 = vmul.f32 %v937_v26, %v857_v28 }
 0x1c9   : > { %v947_v30 = vadd.f32 1.0, %v943_v25  ;;  %v950_v58 = vmul.f32 %v946_v23, %v846_v29 }
 0x1ca   : > { %v945_v35 = vadd.f32 1.0, %v941_v24  ;;  %v948_v36 = vmul.f32 %v944_v27, %v844_v31 }
 0x1cb   : > { %v951_v32 = vmul.f32 %v947_v30, %v847_v51 }
 0x1cc   : > { %v949_v37 = vmul.f32 %v945_v35, %v845_v33 }
 0x1cd   : > { %v3438_v38 = vpack.i.bf16 %v951_v32, %v950_v58  ;;  %v991_v42 = vpack.c.bf16 %v951_v32, %v950_v58 }
 0x1ce   : > { %v3433_v47 = vpack.i.bf16 %v949_v37, %v948_v36  ;;  %v990_v39 = vpack.c.bf16 %v949_v37, %v948_v36 }
 0x1cf   : > { %3439 = vrot.lane.b32.xlu0 %v3438_v38, %s3737_s1 }
 0x1d0   : > { %3434 = vrot.lane.b32.xlu1 %v3433_v47, %s3737_s1  ;;  %s3746_s1 = smov 4  }
 0x1d3   : > { %3449 = vrot.lane.b32.xlu0 %v3438_v38, %s3738_s12 }
 0x1d4   : > { %3444 = vrot.lane.b32.xlu1 %v3433_v47, %s3738_s12 }
 0x1d7   : > { %1011 = vperm.xlu0 %3431, %v3068_v44  }
 0x1d8   : > { %1006 = vperm.xlu1 %3432, %v3067_v40  }
 0x1db   : > { %1021 = vperm.xlu0 %3431, %v3070_v52  }
 0x1dc   : > { %1016 = vperm.xlu1 %3432, %v3069_v41  }
 0x241   : > { %v3440_v45 = vpop.permute.xlu0 %3439 }
 0x242   : > { %v3435_v48 = vpop.permute.xlu1 %3434  ;;  %v3442_v50 = vunpack.i.h.bf16 %v3440_v45  ;;  %v3441_v53 = vunpack.i.l.bf16 %v3440_v45 }
 0x243   : > { %v3437_v54 = vunpack.i.h.bf16 %v3435_v48  ;;  %v3436_v55 = vunpack.i.l.bf16 %v3435_v48 }
 0x244   : > { %v3081_v57 = vpack.c.bf16 %v3442_v50, %v3441_v53 }
 0x245   : > { %v3076_v56 = vpack.c.bf16 %v3437_v54, %v3436_v55  ;;  %v3450_v62 = vpop.permute.xlu0 %3449 }
 0x246   : > { %v3445_v59 = vpop.permute.xlu1 %3444  ;;  %v3452_v63 = vunpack.i.h.bf16 %v3450_v62  ;;  %v3451_v0 = vunpack.i.l.bf16 %v3450_v62 }
 0x247   : > { %3214 = vmatprep.subr.msk.bf16.mxu1 %vm3993_vm4, %v3076_v56  ;;  %v3447_v60 = vunpack.i.h.bf16 %v3445_v59  ;;  %v3446_v61 = vunpack.i.l.bf16 %v3445_v59 }
 0x248   : > { %3215 = vmatpush3.bf16.msk.msra.mxu1 %vm3993_vm4, %v3076_v56  ;;  %v3087_v2 = vpack.c.bf16 %v3452_v63, %v3451_v0 }
 0x249   : > { %3216 = vmatprep.subr.msk.bf16.mxu1 %vm3993_vm4, %v3081_v57  ;;  %v3084_v1 = vpack.c.bf16 %v3447_v60, %v3446_v61 }
 0x24c   : > { %3217 = vmatpush3.bf16.msk.msra.mxu1 %vm3993_vm4, %v3081_v57 }
 0x24d   : > { %3218 = vmatprep.subr.bf16.mxu1 %v990_v39 }
 0x250   : > { %3219 = vmatpush3.bf16.msra.mxu1 %v990_v39 }
 0x251   : > { %3220 = vmatprep.subr.bf16.mxu1 %v991_v42 }
 0x254   : > { %3221 = vmatpush3.bf16.msra.mxu1 %v991_v42 }
 0x255   : > { %3222 = vmatprep.subr.msk.bf16.mxu1 %vm4009_vm6, %v3084_v1 }
 0x256   : > { %v1012_v9 = vpop.permute.xlu0 %1011 }
 0x257   : > { %v1007_v7 = vpop.permute.xlu1 %1006 }
 0x258   : > { %3223 = vmatpush3.bf16.msk.msra.mxu1 %vm4009_vm6, %v3084_v1 }
 0x259   : > { %3224 = vmatprep.subr.msk.bf16.mxu1 %vm4009_vm6, %v3087_v2 }
 0x25a   : > { %v1022_v15 = vpop.permute.xlu0 %1021 }
 0x25b   : > { %v1017_v11 = vpop.permute.xlu1 %1016 }
 0x25c   : > { %3225 = vmatpush3.bf16.msk.msra.mxu1 %vm4009_vm6, %v3087_v2 }
 0x25f   : > { %3227 = vmatmul.mubr.msk.bf16.vlgmr.msra.gmra.mrb[0].mxu1 %vm788_vm1, %v3486_v19 }
 0x332   : > { %v3228_v12 = vpop.f32.mrb[0].mxu1 }
 0x333   : > { %v4087_v13 = vadd.f32 %v3228_v12, %v1017_v11  ;;  %v1074_v3 = vpop.f32.mrb[1].mxu1 }
 0x334   : > { %v4089_v17 = vadd.f32 %v1074_v3, %v1007_v7  ;;  %v3229_v18 = vpop.f32.mrb[2].mxu1 }
 0x335   : > { %v4092_v46 = vmul.f32 0.70710677, %v4087_v13  ;;  %v4094_v10 = vadd.f32 %v3229_v18, %v1022_v15  ;;  %v1077_v34 = vpop.f32.mrb[3].mxu1 }
 0x336   : > { %v4097_v20 = vmul.f32 0.70710677, %v4089_v17  ;;  %v4103_v22 = vadd.f32 %v1077_v34, %v1012_v9 }
 0x337   : > { %v1107_v49 = vand.u32 2147483647, %v4092_v46  ;;  %v4101_v21 = vmul.f32 0.70710677, %v4094_v10  ;;  %vm1099_vm11 = vcmp.ge.f32.partialorder %v4092_v46, 0.0 }
 0x338   : > { %v1105_v16 = vand.u32 2147483647, %v4097_v20  ;;  %v4108_v28 = vmul.f32 0.70710677, %v4103_v22  ;;  %vm1097_vm12 = vcmp.ge.f32.partialorder %v4097_v20, 0.0 }
 0x339   : > { %v1111_v23 = vmul.f32 0.3275911, %v1107_v49  ;;  %v1108_v26 = vand.u32 2147483647, %v4101_v21  ;;  %v1163_v32 = vsub.f32 0.0, %v1107_v49  ;;  %vm1100_vm13 = vcmp.ge.f32.partialorder %v4101_v21, 0.0 }
 0x33a   : > { %v1109_v25 = vmul.f32 0.3275911, %v1105_v16  ;;  %v1106_v30 = vand.u32 2147483647, %v4108_v28  ;;  %v1161_v33 = vsub.f32 0.0, %v1105_v16  ;;  %vm1098_vm14 = vcmp.ge.f32.partialorder %v4108_v28, 0.0 }
 0x33b   : > { %v1115_v27 = vadd.f32 1.0, %v1111_v23  ;;  %v1112_v51 = vmul.f32 0.3275911, %v1108_v26  ;;  %v1167_v36 = vmul.f32 %v1163_v32, %v1107_v49  ;;  %v1164_v37 = vsub.f32 0.0, %v1108_v26 }
 0x33c   : > { %v1113_v29 = vadd.f32 1.0, %v1109_v25  ;;  %v1110_v31 = vmul.f32 0.3275911, %v1106_v30  ;;  %v1165_v47 = vmul.f32 %v1161_v33, %v1105_v16  ;;  %v1162_v44 = vsub.f32 0.0, %v1106_v30 }
 0x33d   : > { %3511 = vrcp.f32 %v1115_v27  ;;  %v1116_v24 = vadd.f32 1.0, %v1112_v51  ;;  %v1173_v41 = vmul.f32 1.442695, %v1167_v36  ;;  %v1168_v45 = vmul.f32 %v1164_v37, %v1108_v26 }
 0x33e   : > { %3513 = vrcp.f32 %v1113_v29  ;;  %v1114_v58 = vadd.f32 1.0, %v1110_v31  ;;  %v1169_v50 = vmul.f32 1.442695, %v1165_v47  ;;  %v1166_v56 = vmul.f32 %v1162_v44, %v1106_v30 }
 0x33f   : > { %3515 = vrcp.f32 %v1116_v24  ;;  %v1175_v62 = vmul.f32 1.442695, %v1168_v45  ;;  %v1102_v21 = vsel %vm1098_vm14, 1.0, %v3740_v14 }
 0x340   : > { %3517 = vrcp.f32 %v1114_v58  ;;  %v1171_v19 = vmul.f32 1.442695, %v1166_v56 }
 0x341   : > { %3519 = vpow2.f32 %v1173_v41 }
 0x342   : > { %3521 = vpow2.f32 %v1169_v50 }
 0x343   : > { %3523 = vpow2.f32 %v1175_v62 }
 0x344   : > { %3525 = vpow2.f32 %v1171_v19 }
 0x347   : > { %v3512_v35 = vpop.eup %3511 }
 0x348   : > { %v3514_v38 = vpop.eup %3513  ;;  %v1127_v42 = vmul.f32 1.0614054, %v3512_v35 }
 0x349   : > { %v1125_v39 = vmul.f32 1.0614054, %v3514_v38  ;;  %v3516_v52 = vpop.eup %3515 }
 0x34a   : > { %v1131_v40 = vadd.f32 -1.4531521, %v1127_v42  ;;  %v1128_v53 = vmul.f32 1.0614054, %v3516_v52  ;;  %v3518_v54 = vpop.eup %3517 }
 0x34b   : > { %v1129_v43 = vadd.f32 -1.4531521, %v1125_v39  ;;  %v1126_v60 = vmul.f32 1.0614054, %v3518_v54  ;;  %v3520_v51 = vpop.eup %3519  ;;  %v1103_v39 = vsel %vm1099_vm11, 1.0, %v3740_v14 }
 0x34c   : > { %v1135_v48 = vmul.f32 %v3512_v35, %v1131_v40  ;;  %v1132_v59 = vadd.f32 -1.4531521, %v1128_v53  ;;  %v3522_v24 = vpop.eup %3521  ;;  %v1104_v53 = vsel %vm1100_vm13, 1.0, %v3740_v14 }
 0x34d   : > { %v1133_v55 = vmul.f32 %v3514_v38, %v1129_v43  ;;  %v1130_v1 = vadd.f32 -1.4531521, %v1126_v60  ;;  %v3524_v47 = vpop.eup %3523  ;;  %v1092_v60 = vmul.f32 0.5, %v4094_v10 }
 0x34e   : > { %v1139_v57 = vadd.f32 1.4214138, %v1135_v48  ;;  %v1136_v0 = vmul.f32 %v3516_v52, %v1132_v59  ;;  %v3526_v41 = vpop.eup %3525 }
 0x34f   : > { %v1137_v61 = vadd.f32 1.4214138, %v1133_v55  ;;  %v1134_v11 = vmul.f32 %v3518_v54, %v1130_v1  ;;  %v1091_v55 = vmul.f32 0.5, %v4087_v13 }
 0x350   : > { %v1143_v63 = vmul.f32 %v3512_v35, %v1139_v57  ;;  %v1140_v9 = vadd.f32 1.4214138, %v1136_v0 }
 0x351   : > { %v1141_v2 = vmul.f32 %v3514_v38, %v1137_v61  ;;  %v1138_v18 = vadd.f32 1.4214138, %v1134_v11 }
 0x352   : > { %v1147_v7 = vadd.f32 -0.28449672, %v1143_v63  ;;  %v1144_v15 = vmul.f32 %v3516_v52, %v1140_v9 }
 0x353   : > { %v1145_v12 = vadd.f32 -0.28449672, %v1141_v2  ;;  %v1142_v23 = vmul.f32 %v3518_v54, %v1138_v18 }
 0x354   : > { %v1151_v3 = vmul.f32 %v3512_v35, %v1147_v7  ;;  %v1148_v16 = vadd.f32 -0.28449672, %v1144_v15 }
 0x355   : > { %v1149_v34 = vmul.f32 %v3514_v38, %v1145_v12  ;;  %v1146_v29 = vadd.f32 -0.28449672, %v1142_v23 }
 0x356   : > { %v1155_v49 = vadd.f32 0.2548296, %v1151_v3  ;;  %v1152_v27 = vmul.f32 %v3516_v52, %v1148_v16 }
 0x357   : > { %v1153_v25 = vadd.f32 0.2548296, %v1149_v34  ;;  %v1150_v32 = vmul.f32 %v3518_v54, %v1146_v29  ;;  %v3487_v34 = vld [vmem:[%s3948_s16] sm:$0xff]  }
 0x358   : > { %v1159_v26 = vmul.f32 %v3512_v35, %v1155_v49  ;;  %v1156_v58 = vadd.f32 0.2548296, %v1152_v27  ;;  %v1101_v35 = vsel %vm1097_vm12, 1.0, %v3740_v14  ;;  %v3488_v49 = vld [vmem:[%s3948_s16 + $0x8] sm:$0xff]   ;;  %3230 = vmatprep.subr.bf16.mxu0 %v3487_v34  ;;  %s3743_s16 = smov 112  }
 0x359   : > { %v1157_v30 = vmul.f32 %v3514_v38, %v1153_v25  ;;  %v1154_v42 = vadd.f32 0.2548296, %v1150_v32  ;;  %3231 = vmatpush3.bf16.msra.mxu0 %v3487_v34 }
 0x35a   : > { %v1179_v31 = vmul.f32 %v3520_v51, %v1159_v26  ;;  %v1160_v37 = vmul.f32 %v3516_v52, %v1156_v58  ;;  %v1089_v52 = vmul.f32 0.5, %v4089_v17  ;;  %v1090_v17 = vmul.f32 0.5, %v4103_v22  ;;  %3232 = vmatprep.subr.bf16.mxu0 %v3488_v49 }
 0x35b   : > { %v1177_v33 = vmul.f32 %v3522_v24, %v1157_v30  ;;  %v1158_v38 = vmul.f32 %v3518_v54, %v1154_v42 }
 0x35c   : > { %v1183_v36 = vsub.f32 1.0, %v1179_v31  ;;  %v1180_v46 = vmul.f32 %v3524_v47, %v1160_v37 }
 0x35d   : > { %v1181_v44 = vsub.f32 1.0, %v1177_v33  ;;  %v1178_v48 = vmul.f32 %v3526_v41, %v1158_v38  ;;  %3233 = vmatpush3.bf16.msra.mxu0 %v3488_v49 }
 0x35e   : > { %v1187_v40 = vmul.f32 %v1183_v36, %v1103_v39  ;;  %v1184_v45 = vsub.f32 1.0, %v1180_v46 }
 0x35f   : > { %v1185_v43 = vmul.f32 %v1181_v44, %v1101_v35  ;;  %v1182_v57 = vsub.f32 1.0, %v1178_v48 }
 0x360   : > { %v1191_v20 = vadd.f32 1.0, %v1187_v40  ;;  %v1188_v56 = vmul.f32 %v1184_v45, %v1104_v53 }
 0x361   : > { %v1189_v50 = vadd.f32 1.0, %v1185_v43  ;;  %v1186_v62 = vmul.f32 %v1182_v57, %v1102_v21  ;;  %v3091_v21 = vld [vmem:[%s5026_s26] ss:$0 sm:$0xff] }
 0x362   : > { %v1195_v54 = vmul.f32 %v1191_v20, %v1091_v55  ;;  %v1192_v61 = vadd.f32 1.0, %v1188_v56 }
 0x363   : > { %v1193_v59 = vmul.f32 %v1189_v50, %v1089_v52  ;;  %v1190_v0 = vadd.f32 1.0, %v1186_v62 }
 0x364   : > { %v1196_v63 = vmul.f32 %v1192_v61, %v1092_v60  ;;  %v1199_v13 = vadd.f32 %v1195_v54, %v3975_v6 }
 0x365   : > { %v1197_v28 = vadd.f32 %v1193_v59, %v3971_v4  ;;  %v1194_v19 = vmul.f32 %v1190_v0, %v1090_v17 }
 0x366   : > { %v1200_v2 = vadd.f32 %v1196_v63, %v3979_v8  ;;  %v4142_v12 = vadd.f32 %v1199_v13, %v3975_v6 }
 0x367   : > { %v4125_v1 = vadd.f32 %v1197_v28, %v3971_v4  ;;  %v1198_v7 = vadd.f32 %v1194_v19, %v3973_v5  ;;  %v3092_v19 = vld [vmem:[%s671_s27] ss:$0 sm:$0xff]  ;;  %s3742_s27 = smov 120  }
 0x368   : > { %v4133_v9 = vadd.f32 %v1200_v2, %v3979_v8  ;;  %v1208_v18 = vmul.f32 %v4142_v12, %v4142_v12 }
 0x369   : > { %v1206_v10 = vmul.f32 %v4125_v1, %v4125_v1  ;;  %v4137_v4 = vadd.f32 %v1198_v7, %v3973_v5 }
 0x36a   : > { %v1209_v11 = vmul.f32 %v4133_v9, %v4133_v9  ;;  %v1217_v5 = vsel %vm1210_vm15, %v1208_v18, 0.0 }
 0x36b   : > { %v1211_v22 = vsel %vm1210_vm15, %v1206_v10, 0.0  ;;  %v1207_v3 = vmul.f32 %v4137_v4, %v4137_v4 }
 0x36c   : > { %1212 = vadd.xlane.f32.xlu1 %v1211_v22  ;;  %v1220_v15 = vsel %vm1210_vm15, %v1209_v11, 0.0 }
 0x36d   : > { %v1214_v8 = vsel %vm1210_vm15, %v1207_v3, 0.0 }
 0x36e   : > { %1215 = vadd.xlane.f32.xlu0 %v1214_v8 }
 0x370   : > { %1221 = vadd.xlane.f32.xlu1 %v1220_v15 }
 0x372   : > { %1218 = vadd.xlane.f32.xlu0 %v1217_v5 }
 0x3f9   : > { %v1213_v6 = vpop.xlane.xlu1 %1212 }
 0x3fa   : > { %3527 = vrsqrt.f32 %v1213_v6  ;;  %vm1225_vm0 = vcmp.eq.f32.partialorder %v1213_v6, inf  ;;  %v1228_v29 = vand.u32 2147483648, %v1213_v6  ;;  %vm1227_vm1 = vcmp.eq.f32.partialorder %v1213_v6, 0.0 }
 0x3fb   : > { %v1216_v23 = vpop.xlane.xlu0 %1215 }
 0x3fc   : > { %vm1232_vm4 = vcmp.eq.f32.partialorder %v1216_v23, inf  ;;  %v1235_v42 = vand.u32 2147483648, %v1216_v23  ;;  %vm1234_vm5 = vcmp.eq.f32.partialorder %v1216_v23, 0.0 }
 0x3fd   : > { %v1222_v16 = vpop.xlane.xlu1 %1221 }
 0x3fe   : > { %3529 = vrsqrt.f32 %v1222_v16  ;;  %vm1246_vm2 = vcmp.eq.f32.partialorder %v1222_v16, inf  ;;  %vm1248_vm3 = vcmp.eq.f32.partialorder %v1222_v16, 0.0  ;;  %v1249_v36 = vand.u32 2147483648, %v1222_v16 }
 0x3ff   : > { %3531 = vrsqrt.f32 %v1216_v23  ;;  %v1219_v25 = vpop.xlane.xlu0 %1218 }
 0x400   : > { %3533 = vrsqrt.f32 %v1219_v25  ;;  %vm1239_vm6 = vcmp.eq.f32.partialorder %v1219_v25, inf  ;;  %v1242_v20 = vand.u32 2147483648, %v1219_v25  ;;  %vm1241_vm7 = vcmp.eq.f32.partialorder %v1219_v25, 0.0 }
 0x404   : > { %v3528_v26 = vpop.eup %3527 }
 0x405   : > { %v1224_v27 = vmul.f32 %v3528_v26, %v1213_v6 }
 0x407   : > { %v1226_v51 = vsel %vm1225_vm0, %v1213_v6, %v1224_v27 }
 0x408   : > { %v3530_v30 = vpop.eup %3529  ;;  %v1229_v24 = vsel %vm1227_vm1, %v1228_v29, %v1226_v51 }
 0x409   : > { %v3532_v31 = vpop.eup %3531  ;;  %v1251_v58 = vmul.f32 0.17677669, %v1229_v24  ;;  %v1245_v32 = vmul.f32 %v3530_v30, %v1222_v16 }
 0x40a   : > { %v1231_v33 = vmul.f32 %v3532_v31, %v1216_v23  ;;  %v3534_v44 = vpop.eup %3533 }
 0x40b   : > { %v1255_v37 = vmax.f32 %v1251_v58, 1e-08  ;;  %v1247_v47 = vsel %vm1246_vm2, %v1222_v16, %v1245_v32  ;;  %v1238_v41 = vmul.f32 %v3534_v44, %v1219_v25 }
 0x40c   : > { %v1233_v39 = vsel %vm1232_vm4, %v1216_v23, %v1231_v33  ;;  %v1250_v35 = vsel %vm1248_vm3, %v1249_v36, %v1247_v47  ;;  %v1361_v33 = vld [vmem:[%s4973_s11] sm:$0xff]  ;;  %v1362_v36 = vld [vmem:[%s4973_s11 + $0x8] sm:$0xff] }
 0x40d   : > { %v1236_v40 = vsel %vm1234_vm5, %v1235_v42, %v1233_v39  ;;  %v1254_v46 = vmul.f32 0.17677669, %v1250_v35  ;;  %3535 = vrcp.f32 %v1255_v37  ;;  %v1240_v48 = vsel %vm1239_vm6, %v1219_v25, %v1238_v41  ;;  %v1363_v37 = vld [vmem:[%s4973_s11 + $0x10] sm:$0xff]  ;;  %v1364_v42 = vld [vmem:[%s4973_s11 + $0x18] sm:$0xff] }
 0x40e   : > { %v1252_v38 = vmul.f32 0.17677669, %v1236_v40  ;;  %v1243_v52 = vsel %vm1241_vm7, %v1242_v20, %v1240_v48 }
 0x40f   : > { %v1258_v43 = vmax.f32 %v1254_v46, 1e-08  ;;  %v1253_v50 = vmul.f32 0.17677669, %v1243_v52 }
 0x410   : > { %v1256_v45 = vmax.f32 %v1252_v38, 1e-08 }
 0x411   : > { %3537 = vrcp.f32 %v1258_v43  ;;  %v1257_v53 = vmax.f32 %v1253_v50, 1e-08 }
 0x412   : > { %3539 = vrcp.f32 %v1256_v45 }
 0x413   : > { %3541 = vrcp.f32 %v1257_v53 }
 0x417   : > { %v3536_v55 = vpop.eup %3535 }
 0x418   : > { %v1260_v57 = vmul.f32 %v3536_v55, %v4125_v1 }
 0x41a   : > { %v1273_v60 = vmul.f32 %v3091_v21, %v1260_v57 }
 0x41b   : > { %v3538_v56 = vpop.eup %3537 }
 0x41c   : > { %v3540_v59 = vpop.eup %3539  ;;  %v1266_v62 = vmul.f32 %v3538_v56, %v4133_v9 }
 0x41d   : > { %v1262_v54 = vmul.f32 %v3540_v59, %v4137_v4  ;;  %v3542_v28 = vpop.eup %3541 }
 0x41e   : > { %v1264_v17 = vmul.f32 %v3542_v28, %v4142_v12  ;;  %v1276_v13 = vmul.f32 %v3091_v21, %v1266_v62 }
 0x41f   : > { %v1274_v61 = vmul.f32 %v3091_v21, %v1262_v54 }
 0x420   : > { %v1275_v0 = vmul.f32 %v3091_v21, %v1264_v17 }
 0x421   : > { %v1277_v63 = vpack.c.bf16 %v1274_v61, %v1273_v60 }
 0x422   : > { %v1278_v2 = vpack.c.bf16 %v1276_v13, %v1275_v0 }
 0x423   : > { %3234 = vmatprep.mubr.msk.bf16.mxu0 %vm1210_vm15, %v1277_v63 }
 0x424   : > { %3235 = vmatmul.mubr.msk.bf16.vlgmr.msra.gmra.mrb[4].mxu0 %vm1210_vm15, %v1278_v2 }
 0x4f7   : > { %v3236_v10 = vpop.f32.mrb[4].mxu0 }
 0x4f8   : > { %v1342_v7 = vpop.f32.mrb[5].mxu0  ;;  %v4179_v18 = vadd.f32 %v3236_v10, %v3092_v19  ;;  %v4343_v10 = vld [vmem:[%s5027_s18 + $0x8] sm:$0xff] }
 0x4f9   : > { %v4169_v22 = vadd.f32 %v3092_v19, %v1342_v7  ;;  %v3237_v11 = vpop.f32.mrb[6].mxu0 }
 0x4fa   : > { %v1345_v3 = vpop.f32.mrb[7].mxu0  ;;  %v4175_v8 = vadd.f32 %v3237_v11, %v3092_v19 }
 0x4fb   : > { %v4171_v15 = vadd.f32 %v3092_v19, %v1345_v3  ;;  %1389 = vrot.lane.b32.xlu0 %v4169_v22, %s3741_s21  ;;  %v4354_v3 = vld [vmem:[%s5027_s18] sm:$0xff] }
 0x4fd   : > { %1391 = vrot.lane.b32.xlu1 %v4171_v15, %s3741_s21 }
 0x4ff   : > { %1395 = vrot.lane.b32.xlu0 %v4175_v8, %s3741_s21 }
 0x501   : > { %1393 = vrot.lane.b32.xlu1 %v4179_v18, %s3741_s21 }
 0x503   : > { %1538 = vrot.lane.b32.xlu0 %v4171_v15, %s3742_s27 }
 0x505   : > { %1536 = vrot.lane.b32.xlu1 %v4169_v22, %s3742_s27 }
 0x507   : > { %1542 = vrot.lane.b32.xlu0 %v4175_v8, %s3742_s27 }
 0x509   : > { %1540 = vrot.lane.b32.xlu1 %v4179_v18, %s3742_s27 }
 0x50b   : > { %1614 = vrot.lane.b32.xlu0 %v4171_v15, %s3743_s16 }
 0x50d   : > { %1612 = vrot.lane.b32.xlu1 %v4169_v22, %s3743_s16 }
 0x50f   : > { %1618 = vrot.lane.b32.xlu0 %v4175_v8, %s3743_s16 }
 0x511   : > { %1616 = vrot.lane.b32.xlu1 %v4179_v18, %s3743_s16 }
 0x513   : > { %1690 = vrot.lane.b32.xlu0 %v4171_v15, %s3744_s28 }
 0x515   : > { %1688 = vrot.lane.b32.xlu1 %v4169_v22, %s3744_s28 }
 0x517   : > { %1694 = vrot.lane.b32.xlu0 %v4175_v8, %s3744_s28 }
 0x519   : > { %1692 = vrot.lane.b32.xlu1 %v4179_v18, %s3744_s28 }
 0x56d   : > { %v4209_v5 = vpop.permute.xlu0 %1389 }
 0x56e   : > { %1402 = vrot.lane.b32.xlu1 %v4209_v5, %s3745_s25 }
 0x56f   : > { %v4213_v34 = vpop.permute.xlu1 %1391 }
 0x570   : > { %1405 = vrot.lane.b32.xlu0 %v4213_v34, %s3745_s25 }
 0x571   : > { %v4217_v49 = vpop.permute.xlu0 %1395 }
 0x573   : > { %v4219_v6 = vpop.permute.xlu1 %1393 }
 0x574   : > { %1408 = vrot.lane.b32.xlu1 %v4219_v6, %s3745_s25  ;;  %1411 = vrot.lane.b32.xlu0 %v4217_v49, %s3745_s25 }
 0x575   : > { %v4225_v16 = vpop.permute.xlu0 %1538 }
 0x577   : > { %v4227_v23 = vpop.permute.xlu1 %1536 }
 0x578   : > { %1548 = vrot.lane.b32.xlu1 %v4227_v23, %s3745_s25  ;;  %1551 = vrot.lane.b32.xlu0 %v4225_v16, %s3745_s25 }
 0x579   : > { %v4233_v25 = vpop.permute.xlu0 %1542 }
 0x57b   : > { %v4235_v26 = vpop.permute.xlu1 %1540 }
 0x57c   : > { %1554 = vrot.lane.b32.xlu1 %v4235_v26, %s3745_s25  ;;  %1557 = vrot.lane.b32.xlu0 %v4233_v25, %s3745_s25 }
 0x57d   : > { %v4241_v27 = vpop.permute.xlu0 %1614 }
 0x57f   : > { %v4243_v29 = vpop.permute.xlu1 %1612 }
 0x580   : > { %1624 = vrot.lane.b32.xlu1 %v4243_v29, %s3745_s25  ;;  %1627 = vrot.lane.b32.xlu0 %v4241_v27, %s3745_s25 }
 0x581   : > { %v4249_v51 = vpop.permute.xlu0 %1618 }
 0x583   : > { %v4251_v30 = vpop.permute.xlu1 %1616 }
 0x584   : > { %1630 = vrot.lane.b32.xlu1 %v4251_v30, %s3745_s25  ;;  %1633 = vrot.lane.b32.xlu0 %v4249_v51, %s3745_s25 }
 0x585   : > { %v4257_v24 = vpop.permute.xlu0 %1690 }
 0x587   : > { %v4259_v31 = vpop.permute.xlu1 %1688 }
 0x588   : > { %1700 = vrot.lane.b32.xlu1 %v4259_v31, %s3745_s25  ;;  %1703 = vrot.lane.b32.xlu0 %v4257_v24, %s3745_s25 }
 0x589   : > { %v4265_v58 = vpop.permute.xlu0 %1694 }
 0x58b   : > { %v4267_v32 = vpop.permute.xlu1 %1692 }
 0x58c   : > { %1706 = vrot.lane.b32.xlu1 %v4267_v32, %s3745_s25  ;;  %1709 = vrot.lane.b32.xlu0 %v4265_v58, %s3745_s25 }
 0x590   : > { %1430 = vrot.lane.b32.xlu1 %v1361_v33, %s3746_s1  ;;  %1432 = vrot.lane.b32.xlu0 %v1362_v36, %s3746_s1 }
 0x594   : > { %1434 = vrot.lane.b32.xlu1 %v1363_v37, %s3746_s1  ;;  %1436 = vrot.lane.b32.xlu0 %v1364_v42, %s3746_s1  ;;  %v4365_v37 = vld [vmem:[%s5027_s18 + $0x10] sm:$0xff]  ;;  %v4370_v42 = vld [vmem:[%s5027_s18 + $0x18] sm:$0xff] }
 0x598   : > { %1472 = vrot.lane.b32.xlu1 %v4169_v22, %s3745_s25  ;;  %1475 = vrot.lane.b32.xlu0 %v4171_v15, %s3745_s25 }
 0x5e0   : > { %v1403_v47 = vpop.permute.xlu1 %1402 }
 0x5e1   : > { %v1404_v43 = vsel %vm1401_vm8, %v1403_v47, %v4209_v5 }
 0x5e2   : > { %v1406_v39 = vpop.permute.xlu0 %1405 }
 0x5e3   : > { %v1407_v20 = vsel %vm1401_vm8, %v1406_v39, %v4213_v34 }
 0x5e6   : > { %v1409_v35 = vpop.permute.xlu1 %1408  ;;  %v1412_v44 = vpop.permute.xlu0 %1411 }
 0x5e7   : > { %v1410_v40 = vsel %vm1401_vm8, %v1409_v35, %v4219_v6  ;;  %v1413_v46 = vsel %vm1401_vm8, %v1412_v44, %v4217_v49 }
 0x5e8   : > { %1418 = vrot.lane.b32.xlu1 %v1410_v40, %s3745_s25  ;;  %1420 = vrot.lane.b32.xlu0 %v1413_v46, %s3745_s25 }
 0x5ea   : > { %v1549_v38 = vpop.permute.xlu1 %1548  ;;  %v1552_v41 = vpop.permute.xlu0 %1551 }
 0x5eb   : > { %v1550_v53 = vsel %vm1401_vm8, %v1549_v38, %v4227_v23  ;;  %v1553_v13 = vsel %vm1401_vm8, %v1552_v41, %v4225_v16 }
 0x5ec   : > { %1414 = vrot.lane.b32.xlu1 %v1404_v43, %s3745_s25  ;;  %1416 = vrot.lane.b32.xlu0 %v1407_v20, %s3745_s25 }
 0x5ee   : > { %v1555_v45 = vpop.permute.xlu1 %1554  ;;  %v1558_v48 = vpop.permute.xlu0 %1557 }
 0x5ef   : > { %v1559_v55 = vsel %vm1401_vm8, %v1558_v48, %v4233_v25  ;;  %v1556_v59 = vsel %vm1401_vm8, %v1555_v45, %v4235_v26 }
 0x5f0   : > { %1478 = vrot.lane.b32.xlu1 %v4179_v18, %s3745_s25  ;;  %1481 = vrot.lane.b32.xlu0 %v4175_v8, %s3745_s25 }
 0x5f2   : > { %v1625_v52 = vpop.permute.xlu1 %1624  ;;  %v1628_v50 = vpop.permute.xlu0 %1627 }
 0x5f3   : > { %v1626_v61 = vsel %vm1401_vm8, %v1625_v52, %v4243_v29  ;;  %v1629_v33 = vsel %vm1401_vm8, %v1628_v50, %v4241_v27 }
 0x5f4   : > { %1560 = vrot.lane.b32.xlu1 %v1550_v53, %s3745_s25  ;;  %1566 = vrot.lane.b32.xlu0 %v1559_v55, %s3745_s25 }
 0x5f6   : > { %v1631_v56 = vpop.permute.xlu1 %1630  ;;  %v1634_v57 = vpop.permute.xlu0 %1633 }
 0x5f7   : > { %v1635_v21 = vsel %vm1401_vm8, %v1634_v57, %v4249_v51  ;;  %v1632_v63 = vsel %vm1401_vm8, %v1631_v56, %v4251_v30 }
 0x5f8   : > { %1564 = vrot.lane.b32.xlu1 %v1556_v59, %s3745_s25  ;;  %1642 = vrot.lane.b32.xlu0 %v1635_v21, %s3745_s25 }
 0x5fa   : > { %v1701_v54 = vpop.permute.xlu1 %1700  ;;  %v1704_v60 = vpop.permute.xlu0 %1703 }
 0x5fb   : > { %v1702_v0 = vsel %vm1401_vm8, %v1701_v54, %v4259_v31  ;;  %v1705_v35 = vsel %vm1401_vm8, %v1704_v60, %v4257_v24 }
 0x5fc   : > { %1636 = vrot.lane.b32.xlu1 %v1626_v61, %s3745_s25 }
 0x5fe   : > { %v1707_v62 = vpop.permute.xlu1 %1706  ;;  %v1710_v28 = vpop.permute.xlu0 %1709 }
 0x5ff   : > { %v1711_v17 = vsel %vm1401_vm8, %v1710_v28, %v4265_v58  ;;  %v1708_v19 = vsel %vm1401_vm8, %v1707_v62, %v4267_v32 }
 0x600   : > { %1640 = vrot.lane.b32.xlu1 %v1632_v63, %s3745_s25  ;;  %1718 = vrot.lane.b32.xlu0 %v1711_v17, %s3745_s25 }
 0x602   : > { %v4334_v2 = vpop.permute.xlu1 %1430  ;;  %v4345_v7 = vpop.permute.xlu0 %1432 }
 0x604   : > { %1712 = vrot.lane.b32.xlu1 %v1702_v0, %s3745_s25  ;;  %1562 = vrot.lane.b32.xlu0 %v1553_v13, %s3745_s25 }
 0x606   : > { %v4349_v11 = vpop.permute.xlu1 %1434  ;;  %v4360_v36 = vpop.permute.xlu0 %1436 }
 0x608   : > { %1716 = vrot.lane.b32.xlu1 %v1708_v19, %s3745_s25  ;;  %1371 = vrot.lane.b32.xlu0 %v4343_v10, %s3747_s14 }
 0x60a   : > { %v1473_v47 = vpop.permute.xlu1 %1472  ;;  %v1476_v44 = vpop.permute.xlu0 %1475 }
 0x60b   : > { %v1474_v39 = vsel %vm1401_vm8, %v1473_v47, %v4169_v22  ;;  %v1477_v40 = vsel %vm1401_vm8, %v1476_v44, %v4171_v15 }
 0x60c   : > { %1369 = vrot.lane.b32.xlu1 %v4354_v3, %s3747_s14  ;;  %1638 = vrot.lane.b32.xlu0 %v1629_v33, %s3745_s25 }
 0x610   : > { %1373 = vrot.lane.b32.xlu1 %v4365_v37, %s3747_s14  ;;  %1375 = vrot.lane.b32.xlu0 %v4370_v42, %s3747_s14  ;;  %s3750_s14 = smov 12  }
 0x614   : > { %1484 = vrot.lane.b32.xlu1 %v1474_v39, %s3745_s25  ;;  %1714 = vrot.lane.b32.xlu0 %v1705_v35, %s3745_s25 }
 0x618   : > { %1486 = vrot.lane.b32.xlu0 %v1477_v40, %s3745_s25 }
 0x65a   : > { %v1419_v46 = vpop.permute.xlu1 %1418  ;;  %v1421_v38 = vpop.permute.xlu0 %1420 }
 0x65b   : > { %v1424_v55 = vsel %vm1401_vm8, %v1419_v46, %v4219_v6  ;;  %v1425_v56 = vsel %vm1401_vm8, %v1421_v38, %v4217_v49 }
 0x65c   : > { %v1444_v57 = vmul.f32 %v4349_v11, %v1424_v55  ;;  %v1445_v59 = vmul.f32 %v4360_v36, %v1425_v56 }
 0x65e   : > { %v1415_v41 = vpop.permute.xlu1 %1414  ;;  %v1417_v43 = vpop.permute.xlu0 %1416 }
 0x65f   : > { %v1422_v54 = vsel %vm1401_vm8, %v1415_v41, %v4209_v5  ;;  %v1423_v6 = vsel %vm1401_vm8, %v1417_v43, %v4213_v34 }
 0x660   : > { %v1442_v49 = vmul.f32 %v4334_v2, %v1422_v54  ;;  %v1443_v61 = vmul.f32 %v4345_v7, %v1423_v6 }
 0x662   : > { %v1479_v20 = vpop.permute.xlu1 %1478  ;;  %v1482_v45 = vpop.permute.xlu0 %1481 }
 0x663   : > { %v1480_v48 = vsel %vm1401_vm8, %v1479_v20, %v4179_v18  ;;  %v1483_v52 = vsel %vm1401_vm8, %v1482_v45, %v4175_v8 }
 0x664   : > { %1488 = vrot.lane.b32.xlu1 %v1480_v48, %s3745_s25  ;;  %1490 = vrot.lane.b32.xlu0 %v1483_v52, %s3745_s25 }
 0x666   : > { %v1567_v50 = vpop.permute.xlu0 %1566  ;;  %v1561_v53 = vpop.permute.xlu1 %1560 }
 0x667   : > { %v1571_v28 = vsel %vm1401_vm8, %v1567_v50, %v4233_v25  ;;  %v1568_v17 = vsel %vm1401_vm8, %v1561_v53, %v4227_v23 }
 0x668   : > { %1520 = vrot.lane.b32.xlu1 %v4354_v3, %s3745_s25  ;;  %1522 = vrot.lane.b32.xlu0 %v4343_v10, %s3745_s25  ;;  %v1575_v5 = vmul.f32 %v1571_v28, %v4360_v36  ;;  %v1572_v13 = vmul.f32 %v1568_v17, %v4334_v2 }
 0x66a   : > { %v1643_v21 = vpop.permute.xlu0 %1642  ;;  %v1565_v60 = vpop.permute.xlu1 %1564 }
 0x66b   : > { %v1570_v63 = vsel %vm1401_vm8, %v1565_v60, %v4235_v26  ;;  %v1647_v19 = vsel %vm1401_vm8, %v1643_v21, %v4249_v51 }
 0x66c   : > { %1524 = vrot.lane.b32.xlu1 %v4365_v37, %s3745_s25  ;;  %1526 = vrot.lane.b32.xlu0 %v4370_v42, %s3745_s25  ;;  %v1574_v34 = vmul.f32 %v1570_v63, %v4349_v11  ;;  %v1651_v23 = vmul.f32 %v1647_v19, %v4360_v36 }
 0x66e   : > { %v1637_v25 = vpop.permute.xlu1 %1636 }
 0x66f   : > { %v1644_v33 = vsel %vm1401_vm8, %v1637_v25, %v4243_v29 }
 0x670   : > { %1454 = vrot.lane.b32.xlu1 %v1444_v57, %s3748_s0  ;;  %1456 = vrot.lane.b32.xlu0 %v1445_v59, %s3748_s0  ;;  %v1648_v51 = vmul.f32 %v1644_v33, %v4334_v2 }
 0x672   : > { %v1719_v62 = vpop.permute.xlu0 %1718  ;;  %v1641_v39 = vpop.permute.xlu1 %1640 }
 0x673   : > { %v1646_v40 = vsel %vm1401_vm8, %v1641_v39, %v4251_v30  ;;  %v1723_v52 = vsel %vm1401_vm8, %v1719_v62, %v4265_v58 }
 0x674   : > { %1450 = vrot.lane.b32.xlu1 %v1442_v49, %s3748_s0  ;;  %1452 = vrot.lane.b32.xlu0 %v1443_v61, %s3748_s0  ;;  %v1650_v29 = vmul.f32 %v1646_v40, %v4349_v11  ;;  %s5031_s0 = sld [smem:[#allocation25_spill]] (!%p3125_p1) }
 0x676   : > { %v1563_v0 = vpop.permute.xlu0 %1562  ;;  %v1713_v38 = vpop.permute.xlu1 %1712 }
 0x677   : > { %v1569_v47 = vsel %vm1401_vm8, %v1563_v0, %v4225_v16  ;;  %v1720_v30 = vsel %vm1401_vm8, %v1713_v38, %v4259_v31 }
 0x678   : > { %1584 = vrot.lane.b32.xlu1 %v1574_v34, %s3746_s1  ;;  %1586 = vrot.lane.b32.xlu0 %v1575_v5, %s3746_s1  ;;  %v1573_v44 = vmul.f32 %v1569_v47, %v4345_v7  ;;  %v1724_v45 = vmul.f32 %v1720_v30, %v4334_v2 }
 0x67a   : > { %v1372_v26 = vpop.permute.xlu0 %1371 }
 0x67b   : > { %v1382_v5 = vmul.f32 %v1372_v26, %v4171_v15 }
 0x67c   : > { %1580 = vrot.lane.b32.xlu1 %v1572_v13, %s3746_s1  ;;  %1598 = vrot.lane.b32.xlu0 %v4343_v10, %s3749_s30 }
 0x67e   : > { %v1639_v35 = vpop.permute.xlu0 %1638 }
 0x67f   : > { %v1645_v46 = vsel %vm1401_vm8, %v1639_v35, %v4241_v27  ;;  %v1717_v27 = vpop.permute.xlu1 %1716 }
 0x680   : > { %1596 = vrot.lane.b32.xlu1 %v4354_v3, %s3749_s30  ;;  %1602 = vrot.lane.b32.xlu0 %v4370_v42, %s3749_s30  ;;  %v1649_v41 = vmul.f32 %v1645_v46, %v4345_v7  ;;  %v1722_v31 = vsel %vm1401_vm8, %v1717_v27, %v4267_v32 }
 0x681   : > { %v1726_v50 = vmul.f32 %v1722_v31, %v4349_v11 }
 0x682   : > { %v1376_v16 = vpop.permute.xlu0 %1375 }
 0x683   : > { %v1370_v53 = vpop.permute.xlu1 %1369  ;;  %v1384_v49 = vmul.f32 %v1376_v16, %v4175_v8 }
 0x684   : > { %1600 = vrot.lane.b32.xlu1 %v4365_v37, %s3749_s30  ;;  %1662 = vrot.lane.b32.xlu0 %v1651_v23, %s3750_s14  ;;  %v1381_v34 = vmul.f32 %v1370_v53, %v4169_v22 }
 0x686   : > { %v1715_v43 = vpop.permute.xlu0 %1714 }
 0x687   : > { %v1721_v20 = vsel %vm1401_vm8, %v1715_v43, %v4257_v24  ;;  %v1727_v24 = vmul.f32 %v1723_v52, %v4360_v36  ;;  %v1374_v55 = vpop.permute.xlu1 %1373 }
 0x688   : > { %1656 = vrot.lane.b32.xlu1 %v1648_v51, %s3750_s14  ;;  %1582 = vrot.lane.b32.xlu0 %v1573_v44, %s3746_s1  ;;  %v1725_v48 = vmul.f32 %v1721_v20, %v4345_v7  ;;  %s3752_s1 = smov 20   ;;  %v1383_v32 = vmul.f32 %v1374_v55, %v4179_v18 }
 0x68a   : > { %v1487_v57 = vpop.permute.xlu0 %1486 }
 0x68b   : > { %v1485_v56 = vpop.permute.xlu1 %1484  ;;  %v1493_v0 = vsel %vm1401_vm8, %v1487_v57, %v4171_v15 }
 0x68c   : > { %1660 = vrot.lane.b32.xlu1 %v1650_v29, %s3750_s14  ;;  %1674 = vrot.lane.b32.xlu0 %v4343_v10, %s3751_s10  ;;  %v1497_v33 = vmul.f32 %v1493_v0, %v4345_v7  ;;  %v1492_v39 = vsel %vm1401_vm8, %v1485_v56, %v4169_v22 }
 0x68d   : > { %v1496_v44 = vmul.f32 %v1492_v39, %v4334_v2 }
 0x690   : > { %1672 = vrot.lane.b32.xlu1 %v4354_v3, %s3751_s10  ;;  %1658 = vrot.lane.b32.xlu0 %v1649_v41, %s3750_s14 }
 0x694   : > { %1676 = vrot.lane.b32.xlu1 %v4365_v37, %s3751_s10  ;;  %1678 = vrot.lane.b32.xlu0 %v4370_v42, %s3751_s10 }
 0x698   : > { %1732 = vrot.lane.b32.xlu1 %v1724_v45, %s3752_s1  ;;  %1734 = vrot.lane.b32.xlu0 %v1725_v48, %s3752_s1 }
 0x69c   : > { %1736 = vrot.lane.b32.xlu1 %v1726_v50, %s3752_s1  ;;  %1738 = vrot.lane.b32.xlu0 %v1727_v24, %s3752_s1 }
 0x6d6   : > { %v1489_v59 = vpop.permute.xlu1 %1488  ;;  %v1491_v21 = vpop.permute.xlu0 %1490 }
 0x6d7   : > { %v1495_v26 = vsel %vm1401_vm8, %v1491_v21, %v4175_v8  ;;  %v1494_v7 = vsel %vm1401_vm8, %v1489_v59, %v4179_v18 }
 0x6d8   : > { %v1499_v40 = vmul.f32 %v1495_v26, %v4360_v36  ;;  %v1498_v46 = vmul.f32 %v1494_v7, %v4349_v11 }
 0x6da   : > { %v1521_v54 = vpop.permute.xlu1 %1520  ;;  %v1523_v58 = vpop.permute.xlu0 %1522 }
 0x6db   : > { %v1532_v43 = vmul.f32 %v1521_v54, %v4169_v22  ;;  %v1533_v36 = vmul.f32 %v1523_v58, %v4171_v15 }
 0x6de   : > { %v1525_v6 = vpop.permute.xlu1 %1524  ;;  %v1527_v60 = vpop.permute.xlu0 %1526 }
 0x6df   : > { %v1534_v2 = vmul.f32 %v1525_v6, %v4179_v18  ;;  %v1535_v24 = vmul.f32 %v1527_v60, %v4175_v8 }
 0x6e2   : > { %v1455_v61 = vpop.permute.xlu1 %1454  ;;  %v1457_v62 = vpop.permute.xlu0 %1456 }
 0x6e3   : > { %v1464_v28 = vadd.f32 %v1455_v61, %v1383_v32  ;;  %v1465_v63 = vadd.f32 %v1457_v62, %v1384_v49 }
 0x6e5   : > { %v1467_v17 = vpack.c.bf16 %v1465_v63, %v1464_v28 }
 0x6e6   : > { %v1451_v13 = vpop.permute.xlu1 %1450  ;;  %v1453_v25 = vpop.permute.xlu0 %1452 }
 0x6e7   : > { %v1462_v19 = vadd.f32 %v1451_v13, %v1381_v34  ;;  %v1463_v23 = vadd.f32 %v1453_v25, %v1382_v5  ;;  %1824 = vrot.lane.b32.xlu0 %v1467_v17, %s3741_s21 }
 0x6e9   : > { %v1466_v47 = vpack.c.bf16 %v1463_v23, %v1462_v19 }
 0x6ea   : > { %v1585_v35 = vpop.permute.xlu1 %1584  ;;  %v1587_v51 = vpop.permute.xlu0 %1586 }
 0x6eb   : > { %1506 = vrot.lane.b32.xlu0 %v1497_v33, %s3753_s17  ;;  %1822 = vrot.lane.b32.xlu1 %v1466_v47, %s3741_s21  ;;  %v1594_v45 = vadd.f32 %v1585_v35, %v1534_v2  ;;  %v1595_v56 = vadd.f32 %v1587_v51, %v1535_v24  ;;  %v1469_v51 = vmul.f32 %v4343_v10, %v4171_v15 }
 0x6ec   : > { %v1470_v10 = vmul.f32 %v4365_v37, %v4179_v18 }
 0x6ee   : > { %v1581_v29 = vpop.permute.xlu1 %1580  ;;  %v1599_v16 = vpop.permute.xlu0 %1598 }
 0x6ef   : > { %1510 = vrot.lane.b32.xlu0 %v1499_v40, %s3753_s17  ;;  %1504 = vrot.lane.b32.xlu1 %v1496_v44, %s3753_s17  ;;  %v1592_v30 = vadd.f32 %v1581_v29, %v1532_v43  ;;  %v1609_v59 = vmul.f32 %v1599_v16, %v4171_v15  ;;  %v1468_v40 = vmul.f32 %v4354_v3, %v4169_v22 }
 0x6f2   : > { %v1597_v38 = vpop.permute.xlu1 %1596  ;;  %v1603_v41 = vpop.permute.xlu0 %1602 }
 0x6f3   : > { %1508 = vrot.lane.b32.xlu1 %v1498_v46, %s3753_s17  ;;  %v1608_v31 = vmul.f32 %v1597_v38, %v4169_v22  ;;  %v1611_v60 = vmul.f32 %v1603_v41, %v4175_v8  ;;  %v1471_v41 = vmul.f32 %v4370_v42, %v4175_v8  ;;  %s3754_s17 = smov 88  }
 0x6f6   : > { %v1601_v20 = vpop.permute.xlu1 %1600  ;;  %v1663_v27 = vpop.permute.xlu0 %1662 }
 0x6f7   : > { %1752 = vrot.lane.b32.xlu1 %v1592_v30, %s3742_s27  ;;  %v1610_v57 = vmul.f32 %v1601_v20, %v4179_v18  ;;  %v1671_v61 = vadd.f32 %v1663_v27, %v1611_v60 }
 0x6fa   : > { %v1657_v48 = vpop.permute.xlu1 %1656  ;;  %v1583_v52 = vpop.permute.xlu0 %1582 }
 0x6fb   : > { %v1593_v11 = vadd.f32 %v1583_v52, %v1533_v36  ;;  %1756 = vrot.lane.b32.xlu1 %v1594_v45, %s3742_s27  ;;  %v1668_v50 = vadd.f32 %v1657_v48, %v1608_v31 }
 0x6fd   : > { %1754 = vrot.lane.b32.xlu0 %v1593_v11, %s3742_s27 }
 0x6fe   : > { %v1661_v53 = vpop.permute.xlu1 %1660  ;;  %v1675_v55 = vpop.permute.xlu0 %1674 }
 0x6ff   : > { %1768 = vrot.lane.b32.xlu1 %v1668_v50, %s3743_s16  ;;  %v1670_v21 = vadd.f32 %v1661_v53, %v1610_v57  ;;  %v1685_v62 = vmul.f32 %v1675_v55, %v4171_v15 }
 0x701   : > { %1758 = vrot.lane.b32.xlu0 %v1595_v56, %s3742_s27 }
 0x702   : > { %v1673_v54 = vpop.permute.xlu1 %1672  ;;  %v1659_v58 = vpop.permute.xlu0 %1658 }
 0x703   : > { %v1669_v6 = vadd.f32 %v1659_v58, %v1609_v59  ;;  %1772 = vrot.lane.b32.xlu1 %v1670_v21, %s3743_s16  ;;  %v1684_v28 = vmul.f32 %v1673_v54, %v4169_v22 }
 0x705   : > { %1770 = vrot.lane.b32.xlu0 %v1669_v6, %s3743_s16 }
 0x706   : > { %v1677_v32 = vpop.permute.xlu1 %1676  ;;  %v1679_v49 = vpop.permute.xlu0 %1678 }
 0x707   : > { %v1686_v0 = vmul.f32 %v1677_v32, %v4179_v18  ;;  %v1687_v13 = vmul.f32 %v1679_v49, %v4175_v8 }
 0x709   : > { %1774 = vrot.lane.b32.xlu0 %v1671_v61, %s3743_s16  ;;  %s5028_s16 = sld [smem:[#allocation22_spill]] }
 0x70a   : > { %v1733_v63 = vpop.permute.xlu1 %1732  ;;  %v1735_v5 = vpop.permute.xlu0 %1734 }
 0x70b   : > { %v1744_v34 = vadd.f32 %v1733_v63, %v1684_v28  ;;  %v1745_v17 = vadd.f32 %v1735_v5, %v1685_v62 }
 0x70d   : > { %1784 = vrot.lane.b32.xlu1 %v1744_v34, %s3744_s28  ;;  %1786 = vrot.lane.b32.xlu0 %v1745_v17, %s3744_s28 }
 0x70e   : > { %v1737_v25 = vpop.permute.xlu1 %1736  ;;  %v1739_v19 = vpop.permute.xlu0 %1738 }
 0x70f   : > { %v1746_v23 = vadd.f32 %v1737_v25, %v1686_v0  ;;  %v1747_v33 = vadd.f32 %v1739_v19, %v1687_v13  ;;  %v1954_v19 = vld [vmem:[%s5028_s16] sm:$0xff] }
 0x710   : > { %vm1970_vm10 = vcmp.ne.f32.partialorder %v1954_v19, 0.0 }
 0x711   : > { %1788 = vrot.lane.b32.xlu1 %v1746_v23, %s3744_s28  ;;  %1790 = vrot.lane.b32.xlu0 %v1747_v33, %s3744_s28  ;;  %v1957_v23 = vld [vmem:[%s5028_s16 + $0x18] sm:$0xff]  ;;  %v1955_v33 = vld [vmem:[%s5028_s16 + $0x8] sm:$0xff] }
 0x712   : > { %vm1973_vm11 = vcmp.ne.f32.partialorder %v1957_v23, 0.0  ;;  %vm1971_vm12 = vcmp.ne.f32.partialorder %v1955_v33, 0.0 }
 0x759   : > { %v1825_v47 = vpop.permute.xlu0 %1824 }
 0x75a   : > { %v1855_v30 = vsel %vm1826_vm9, %v1825_v47, 0 }
 0x75d   : > { %v1823_v39 = vpop.permute.xlu1 %1822  ;;  %v1507_v26 = vpop.permute.xlu0 %1506 }
 0x75e   : > { %v1852_v35 = vsel %vm1826_vm9, %v1823_v39, 0  ;;  %3318 = vmatprep.subr.msk.bf16.mxu1 %vm1826_vm9, %v1823_v39  ;;  %v1517_v44 = vadd.f32 %v1507_v26, %v1469_v51  ;;  %v1956_v39 = vld [vmem:[%s5028_s16 + $0x10] sm:$0xff] }
 0x75f   : > { %3239 = vmatpush3.bf16.xpose.msra.mxu1 %v1852_v35  ;;  %vm1972_vm13 = vcmp.ne.f32.partialorder %v1956_v39, 0.0 }
 0x760   : > { %3319 = vmatprep.subr.msk.bf16.mxu1 %vm1826_vm9, %v1825_v47  ;;  %v1797_v46 = vmul.f32 0.35355338, %v1517_v44 }
 0x761   : > { %v1505_v7 = vpop.permute.xlu1 %1504  ;;  %v1511_v16 = vpop.permute.xlu0 %1510 }
 0x762   : > { %v1516_v29 = vadd.f32 %v1505_v7, %v1468_v40  ;;  %v1519_v27 = vadd.f32 %v1511_v16, %v1471_v41 }
 0x764   : > { %v1796_v38 = vmul.f32 0.35355338, %v1516_v29  ;;  %v1799_v45 = vmul.f32 0.35355338, %v1519_v27  ;;  %v1961_v27 = vld [vmem:[%s5028_s16 + $0x38] sm:$0xff] }
 0x765   : > { %v1509_v43 = vpop.permute.xlu1 %1508  ;;  %vm1977_vm2 = vcmp.ne.f32.partialorder %v1961_v27, 0.0 }
 0x766   : > { %v1812_v20 = vpack.c.bf16 %v1797_v46, %v1796_v38  ;;  %v1518_v2 = vadd.f32 %v1509_v43, %v1470_v10  ;;  %v1958_v38 = vld [vmem:[%s5028_s16 + $0x20] sm:$0xff]  ;;  %v1960_v10 = vld [vmem:[%s5028_s16 + $0x30] sm:$0xff]  ;;  %v1959_v43 = vld [vmem:[%s5028_s16 + $0x28] sm:$0xff] }
 0x767   : > { %3241 = vmatpush3.bf16.xpose.msra.mxu1 %v1855_v30  ;;  %vm1974_vm14 = vcmp.ne.f32.partialorder %v1958_v38, 0.0  ;;  %vm1976_vm0 = vcmp.ne.f32.partialorder %v1960_v10, 0.0  ;;  %vm1975_vm1 = vcmp.ne.f32.partialorder %v1959_v43, 0.0 }
 0x768   : > { %v1798_v36 = vmul.f32 0.35355338, %v1518_v2  ;;  %3242 = vmatprep.mubr.msk.bf16.mxu1 %vm1826_vm9, %v1812_v20 }
 0x769   : > { %v1753_v3 = vpop.permute.xlu1 %1752 }
 0x76a   : > { %v1813_v48 = vpack.c.bf16 %v1799_v45, %v1798_v36  ;;  %v1800_v31 = vmul.f32 0.35355338, %v1753_v3 }
 0x76d   : > { %v1757_v52 = vpop.permute.xlu1 %1756 }
 0x76e   : > { %3243 = vmatmul.mubr.msk.bf16.vlgmr.msra.gmra.mrb[4].mxu1 %vm1826_vm9, %v1813_v48  ;;  %v1802_v53 = vmul.f32 0.35355338, %v1757_v52 }
 0x76f   : > { %v1755_v42 = vpop.permute.xlu0 %1754 }
 0x770   : > { %v1801_v11 = vmul.f32 0.35355338, %v1755_v42 }
 0x771   : > { %v1769_v24 = vpop.permute.xlu1 %1768 }
 0x772   : > { %v1814_v37 = vpack.c.bf16 %v1801_v11, %v1800_v31  ;;  %v1804_v59 = vmul.f32 0.35355338, %v1769_v24  ;;  %v1962_v31 = vld [vmem:[%s5028_s16 + $0x40] sm:$0xff]  ;;  %v1964_v24 = vld [vmem:[%s5028_s16 + $0x50] sm:$0xff] }
 0x773   : > { %v1759_v50 = vpop.permute.xlu0 %1758  ;;  %vm1978_vm3 = vcmp.ne.f32.partialorder %v1962_v31, 0.0  ;;  %vm1980_vm4 = vcmp.ne.f32.partialorder %v1964_v24, 0.0 }
 0x774   : > { %v1803_v55 = vmul.f32 0.35355338, %v1759_v50  ;;  %3246 = vmatprep.mubr.msk.bf16.mxu1 %vm1826_vm9, %v1814_v37  ;;  %v1963_v50 = vld [vmem:[%s5028_s16 + $0x48] sm:$0xff] }
 0x775   : > { %v1773_v54 = vpop.permute.xlu1 %1772  ;;  %vm1979_vm5 = vcmp.ne.f32.partialorder %v1963_v50, 0.0 }
 0x776   : > { %v1815_v56 = vpack.c.bf16 %v1803_v55, %v1802_v53  ;;  %v1806_v60 = vmul.f32 0.35355338, %v1773_v54 }
 0x777   : > { %v1771_v57 = vpop.permute.xlu0 %1770 }
 0x778   : > { %v1805_v21 = vmul.f32 0.35355338, %v1771_v57  ;;  %3247 = vmatmul.mubr.msk.bf16.gmra.mrb[8].mxu1 %vm1826_vm9, %v1815_v56  ;;  %v1965_v56 = vld [vmem:[%s5028_s16 + $0x58] sm:$0xff] }
 0x779   : > { %vm1981_vm6 = vcmp.ne.f32.partialorder %v1965_v56, 0.0 }
 0x77a   : > { %v1816_v58 = vpack.c.bf16 %v1805_v21, %v1804_v59 }
 0x77b   : > { %v1775_v6 = vpop.permute.xlu0 %1774 }
 0x77c   : > { %v1807_v32 = vmul.f32 0.35355338, %v1775_v6  ;;  %3250 = vmatprep.mubr.msk.bf16.mxu1 %vm1826_vm9, %v1816_v58 }
 0x77e   : > { %v1817_v49 = vpack.c.bf16 %v1807_v32, %v1806_v60 }
 0x77f   : > { %v1785_v61 = vpop.permute.xlu1 %1784  ;;  %v1787_v62 = vpop.permute.xlu0 %1786 }
 0x780   : > { %v1808_v28 = vmul.f32 0.35355338, %v1785_v61  ;;  %v1809_v63 = vmul.f32 0.35355338, %v1787_v62  ;;  %3251 = vmatmul.mubr.msk.bf16.gmra.mrb[12].mxu1 %vm1826_vm9, %v1817_v49  ;;  %v1966_v49 = vld [vmem:[%s5028_s16 + $0x60] sm:$0xff] }
 0x781   : > { %vm1982_vm7 = vcmp.ne.f32.partialorder %v1966_v49, 0.0 }
 0x782   : > { %v1818_v5 = vpack.c.bf16 %v1809_v63, %v1808_v28  ;;  %v1968_v28 = vld [vmem:[%s5028_s16 + $0x70] sm:$0xff]  ;;  %v1967_v63 = vld [vmem:[%s5028_s16 + $0x68] sm:$0xff] }
 0x783   : > { %v1789_v34 = vpop.permute.xlu1 %1788  ;;  %v1791_v17 = vpop.permute.xlu0 %1790  ;;  %vm1984_vm8 = vcmp.ne.f32.partialorder %v1968_v28, 0.0 }
 0x784   : > { %v1810_v0 = vmul.f32 0.35355338, %v1789_v34  ;;  %v1811_v13 = vmul.f32 0.35355338, %v1791_v17  ;;  %3254 = vmatprep.mubr.msk.bf16.mxu1 %vm1826_vm9, %v1818_v5  ;;  %v1969_v17 = vld [vmem:[%s5028_s16 + $0x78] sm:$0xff] }
 0x786   : > { %v1819_v25 = vpack.c.bf16 %v1811_v13, %v1810_v0 }
 0x788   : > { %3255 = vmatmul.mubr.msk.bf16.gmra.mrb[16].mxu1 %vm1826_vm9, %v1819_v25 }
 0x841   : > { %v3244_v47 = vpop.f32.mrb[4].mxu1 }
 0x842   : > { %v1891_v26 = vpop.f32.mrb[5].mxu1  ;;  %v4549_v46 = vsel %vm1972_vm13, -1e+30, %v3244_v47 }
 0x843   : > { %v4539_v35 = vsel %vm1970_vm10, -1e+30, %v1891_v26  ;;  %v3245_v51 = vpop.f32.mrb[6].mxu1  ;;  %v2008_v30 = vsel %vm1210_vm15, %v4549_v46, -inf  ;;  %vm1983_vm10 = vcmp.ne.f32.partialorder %v1967_v63, 0.0 }
 0x844   : > { %v2002_v44 = vsel %vm1210_vm15, %v4539_v35, -inf  ;;  %v1894_v40 = vpop.f32.mrb[7].mxu1  ;;  %v4543_v7 = vsel %vm1973_vm11, -1e+30, %v3245_v51  ;;  %vm1985_vm11 = vcmp.ne.f32.partialorder %v1969_v17, 0.0 }
 0x845   : > { %v4545_v29 = vsel %vm1971_vm12, -1e+30, %v1894_v40  ;;  %2003 = vmax.xlane.f32.xlu1 %v2002_v44  ;;  %v2011_v41 = vsel %vm1210_vm15, %v4543_v7, -inf }
 0x846   : > { %v2005_v16 = vsel %vm1210_vm15, %v4545_v29, -inf }
 0x847   : > { %2006 = vmax.xlane.f32.xlu0 %v2005_v16 }
 0x849   : > { %2012 = vmax.xlane.f32.xlu1 %v2011_v41 }
 0x84b   : > { %2009 = vmax.xlane.f32.xlu0 %v2008_v30  ;;  %v3248_v20 = vpop.f32.mrb[8].mxu1 }
 0x84c   : > { %v1907_v2 = vpop.f32.mrb[9].mxu1  ;;  %v4571_v52 = vsel %vm1976_vm0, -1e+30, %v3248_v20 }
 0x84d   : > { %v4567_v36 = vsel %vm1974_vm14, -1e+30, %v1907_v2  ;;  %v3249_v3 = vpop.f32.mrb[10].mxu1  ;;  %v2020_v53 = vsel %vm1210_vm15, %v4571_v52, -inf }
 0x84e   : > { %v2014_v45 = vsel %vm1210_vm15, %v4567_v36, -inf  ;;  %v1910_v48 = vpop.f32.mrb[11].mxu1  ;;  %v4580_v37 = vsel %vm1977_vm2, -1e+30, %v3249_v3  ;;  %vm2374_vm2 = vcmask 195584  }
 0x84f   : > { %v4573_v42 = vsel %vm1975_vm1, -1e+30, %v1910_v48  ;;  %2015 = vmax.xlane.f32.xlu0 %v2014_v45  ;;  %v2023_v57 = vsel %vm1210_vm15, %v4580_v37, -inf  ;;  %vm2369_vm1 = vcmask 130048  }
 0x850   : > { %v2017_v11 = vsel %vm1210_vm15, %v4573_v42, -inf }
 0x851   : > { %2018 = vmax.xlane.f32.xlu1 %v2017_v11 }
 0x853   : > { %2021 = vmax.xlane.f32.xlu0 %v2020_v53  ;;  %v3252_v55 = vpop.f32.mrb[12].mxu1 }
 0x854   : > { %v1923_v59 = vpop.f32.mrb[13].mxu1  ;;  %v4599_v60 = vsel %vm1980_vm4, -1e+30, %v3252_v55 }
 0x855   : > { %v4595_v21 = vsel %vm1978_vm3, -1e+30, %v1923_v59  ;;  %2024 = vmax.xlane.f32.xlu1 %v2023_v57  ;;  %v3253_v54 = vpop.f32.mrb[14].mxu1  ;;  %v2032_v5 = vsel %vm1210_vm15, %v4599_v60, -inf  ;;  %vm2614_vm3 = vcmask 523264  }
 0x856   : > { %v2026_v58 = vsel %vm1210_vm15, %v4595_v21, -inf  ;;  %v1926_v6 = vpop.f32.mrb[15].mxu1  ;;  %v4608_v62 = vsel %vm1981_vm6, -1e+30, %v3253_v54 }
 0x857   : > { %v4601_v32 = vsel %vm1979_vm5, -1e+30, %v1926_v6  ;;  %2027 = vmax.xlane.f32.xlu0 %v2026_v58  ;;  %v2035_v0 = vsel %vm1210_vm15, %v4608_v62, -inf }
 0x858   : > { %v2029_v61 = vsel %vm1210_vm15, %v4601_v32, -inf }
 0x859   : > { %2030 = vmax.xlane.f32.xlu1 %v2029_v61 }
 0x85b   : > { %2033 = vmax.xlane.f32.xlu0 %v2032_v5  ;;  %v3256_v34 = vpop.f32.mrb[16].mxu1 }
 0x85c   : > { %v1939_v13 = vpop.f32.mrb[17].mxu1  ;;  %v4627_v47 = vsel %vm1984_vm8, -1e+30, %v3256_v34 }
 0x85d   : > { %v4623_v25 = vsel %vm1982_vm7, -1e+30, %v1939_v13  ;;  %2036 = vmax.xlane.f32.xlu1 %v2035_v0  ;;  %v3257_v19 = vpop.f32.mrb[18].mxu1  ;;  %v2044_v44 = vsel %vm1210_vm15, %v4627_v47, -inf }
 0x85e   : > { %v2038_v23 = vsel %vm1210_vm15, %v4623_v25, -inf  ;;  %v1942_v33 = vpop.f32.mrb[19].mxu1  ;;  %v4633_v51 = vsel %vm1985_vm11, -1e+30, %v3257_v19 }
 0x85f   : > { %v4629_v39 = vsel %vm1983_vm10, -1e+30, %v1942_v33  ;;  %2039 = vmax.xlane.f32.xlu0 %v2038_v23  ;;  %v2047_v40 = vsel %vm1210_vm15, %v4633_v51, -inf }
 0x860   : > { %v2041_v26 = vsel %vm1210_vm15, %v4629_v39, -inf }
 0x861   : > { %2042 = vmax.xlane.f32.xlu1 %v2041_v26 }
 0x863   : > { %2045 = vmax.xlane.f32.xlu0 %v2044_v44 }
 0x865   : > { %2048 = vmax.xlane.f32.xlu1 %v2047_v40 }
 0x8d2   : > { %v2004_v16 = vpop.xlane.xlu1 %2003 }
 0x8d3   : > { %v2050_v43 = vsub.f32 %v4539_v35, %v2004_v16 }
 0x8d4   : > { %v2007_v38 = vpop.xlane.xlu0 %2006 }
 0x8d5   : > { %v2051_v41 = vsub.f32 %v4545_v29, %v2007_v38  ;;  %v2066_v45 = vmul.f32 1.442695, %v2050_v43 }
 0x8d6   : > { %v2013_v10 = vpop.xlane.xlu1 %2012 }
 0x8d7   : > { %v2053_v30 = vsub.f32 %v4543_v7, %v2013_v10  ;;  %v2068_v20 = vmul.f32 1.442695, %v2051_v41 }
 0x8d8   : > { %v2010_v27 = vpop.xlane.xlu0 %2009 }
 0x8d9   : > { %v2072_v2 = vmul.f32 1.442695, %v2053_v30  ;;  %v2052_v3 = vsub.f32 %v4549_v46, %v2010_v27 }
 0x8db   : > { %3543 = vpow2.f32 %v2072_v2  ;;  %v2070_v48 = vmul.f32 1.442695, %v2052_v3 }
 0x8dc   : > { %3545 = vpow2.f32 %v2068_v20  ;;  %v2016_v31 = vpop.xlane.xlu0 %2015 }
 0x8dd   : > { %3547 = vpow2.f32 %v2070_v48  ;;  %v2054_v11 = vsub.f32 %v4567_v36, %v2016_v31 }
 0x8de   : > { %v2019_v24 = vpop.xlane.xlu1 %2018  ;;  %3549 = vpow2.f32 %v2066_v45 }
 0x8df   : > { %v2055_v35 = vsub.f32 %v4573_v42, %v2019_v24  ;;  %v2074_v50 = vmul.f32 1.442695, %v2054_v11 }
 0x8e0   : > { %v2022_v29 = vpop.xlane.xlu0 %2021 }
 0x8e1   : > { %v2056_v7 = vsub.f32 %v4571_v52, %v2022_v29  ;;  %v2076_v59 = vmul.f32 1.442695, %v2055_v35 }
 0x8e2   : > { %v2025_v53 = vpop.xlane.xlu1 %2024 }
 0x8e3   : > { %v2078_v55 = vmul.f32 1.442695, %v2056_v7  ;;  %v2057_v46 = vsub.f32 %v4580_v37, %v2025_v53 }
 0x8e4   : > { %v2028_v56 = vpop.xlane.xlu0 %2027 }
 0x8e5   : > { %v4647_v57 = vpop.eup %3543  ;;  %3551 = vpow2.f32 %v2078_v55  ;;  %v2080_v54 = vmul.f32 1.442695, %v2057_v46  ;;  %v2058_v36 = vsub.f32 %v4595_v21, %v2028_v56 }
 0x8e6   : > { %v4649_v58 = vpop.eup %3545  ;;  %3553 = vpow2.f32 %v2074_v50  ;;  %v2031_v6 = vpop.xlane.xlu1 %2030  ;;  %v2107_v52 = vsel %vm1210_vm15, %v4647_v57, 0.0 }
 0x8e7   : > { %v4654_v42 = vpop.eup %3547  ;;  %3555 = vpow2.f32 %v2080_v54  ;;  %2108 = vadd.xlane.f32.xlu1 %v2107_v52  ;;  %v2059_v28 = vsub.f32 %v4601_v32, %v2031_v6  ;;  %v2082_v21 = vmul.f32 1.442695, %v2058_v36  ;;  %v2101_v34 = vsel %vm1210_vm15, %v4649_v58, 0.0 }
 0x8e8   : > { %v2034_v37 = vpop.xlane.xlu0 %2033  ;;  %v2104_v49 = vsel %vm1210_vm15, %v4654_v42, 0.0  ;;  %v4658_v61 = vpop.eup %3549  ;;  %3557 = vpow2.f32 %v2076_v59  ;;  %v2186_v36 = vpack.c.bf16 %v4171_v15, %v4169_v22  ;;  %v2187_v6 = vpack.c.bf16 %v4175_v8, %v4179_v18 }
 0x8e9   : > { %v2060_v63 = vsub.f32 %v4599_v60, %v2034_v37  ;;  %2105 = vadd.xlane.f32.xlu0 %v2104_v49  ;;  %v2098_v19 = vsel %vm1210_vm15, %v4658_v61, 0.0  ;;  %v2084_v23 = vmul.f32 1.442695, %v2059_v28 }
 0x8ea   : > { %v2037_v5 = vpop.xlane.xlu1 %2036 }
 0x8eb   : > { %v2086_v17 = vmul.f32 1.442695, %v2060_v63  ;;  %v2061_v0 = vsub.f32 %v4608_v62, %v2037_v5  ;;  %2102 = vadd.xlane.f32.xlu1 %v2101_v34 }
 0x8ec   : > { %v2040_v13 = vpop.xlane.xlu0 %2039 }
 0x8ed   : > { %3559 = vpow2.f32 %v2086_v17  ;;  %v2088_v33 = vmul.f32 1.442695, %v2061_v0  ;;  %2099 = vadd.xlane.f32.xlu0 %v2098_v19  ;;  %v2062_v16 = vsub.f32 %v4623_v25, %v2040_v13 }
 0x8ee   : > { %3561 = vpow2.f32 %v2082_v21  ;;  %v2043_v60 = vpop.xlane.xlu1 %2042 }
 0x8ef   : > { %v4667_v32 = vpop.eup %3551  ;;  %3563 = vpow2.f32 %v2088_v33  ;;  %v2090_v27 = vmul.f32 1.442695, %v2062_v16  ;;  %v2063_v31 = vsub.f32 %v4629_v39, %v2043_v60 }
 0x8f0   : > { %v4669_v26 = vpop.eup %3553  ;;  %v2046_v44 = vpop.xlane.xlu0 %2045  ;;  %v2116_v62 = vsel %vm1210_vm15, %v4667_v32, 0.0  ;;  %3565 = vpow2.f32 %v2084_v23 }
 0x8f1   : > { %v4673_v40 = vpop.eup %3555  ;;  %v2064_v38 = vsub.f32 %v4627_v47, %v2046_v44  ;;  %2117 = vadd.xlane.f32.xlu0 %v2116_v62  ;;  %v2110_v20 = vsel %vm1210_vm15, %v4669_v26, 0.0  ;;  %v2092_v35 = vmul.f32 1.442695, %v2063_v31 }
 0x8f2   : > { %v2049_v41 = vpop.xlane.xlu1 %2048  ;;  %v2119_v10 = vsel %vm1210_vm15, %v4673_v40, 0.0  ;;  %v4679_v43 = vpop.eup %3557 }
 0x8f3   : > { %v2094_v30 = vmul.f32 1.442695, %v2064_v38  ;;  %2120 = vadd.xlane.f32.xlu1 %v2119_v10  ;;  %v2065_v2 = vsub.f32 %v4633_v51, %v2049_v41  ;;  %v2113_v25 = vsel %vm1210_vm15, %v4679_v43, 0.0 }
 0x8f5   : > { %3567 = vpow2.f32 %v2094_v30  ;;  %2111 = vadd.xlane.f32.xlu0 %v2110_v20  ;;  %v2096_v11 = vmul.f32 1.442695, %v2065_v2 }
 0x8f6   : > { %3569 = vpow2.f32 %v2090_v27 }
 0x8f7   : > { %v4686_v47 = vpop.eup %3559  ;;  %2114 = vadd.xlane.f32.xlu1 %v2113_v25  ;;  %3571 = vpow2.f32 %v2096_v11 }
 0x8f8   : > { %v4688_v3 = vpop.eup %3561  ;;  %v2128_v45 = vsel %vm1210_vm15, %v4686_v47, 0.0  ;;  %3573 = vpow2.f32 %v2092_v35 }
 0x8f9   : > { %v4692_v48 = vpop.eup %3563  ;;  %2129 = vadd.xlane.f32.xlu0 %v2128_v45  ;;  %v2122_v29 = vsel %vm1210_vm15, %v4688_v3, 0.0 }
 0x8fa   : > { %v2131_v51 = vsel %vm1210_vm15, %v4692_v48, 0.0  ;;  %v4697_v24 = vpop.eup %3565 }
 0x8fb   : > { %2132 = vadd.xlane.f32.xlu1 %v2131_v51  ;;  %v2125_v7 = vsel %vm1210_vm15, %v4697_v24, 0.0 }
 0x8fd   : > { %2123 = vadd.xlane.f32.xlu0 %v2122_v29 }
 0x8ff   : > { %v4703_v50 = vpop.eup %3567  ;;  %2126 = vadd.xlane.f32.xlu1 %v2125_v7 }
 0x900   : > { %v2140_v39 = vsel %vm1210_vm15, %v4703_v50, 0.0  ;;  %v4707_v53 = vpop.eup %3569 }
 0x901   : > { %v2134_v55 = vsel %vm1210_vm15, %v4707_v53, 0.0  ;;  %v4711_v46 = vpop.eup %3571 }
 0x902   : > { %v2143_v56 = vsel %vm1210_vm15, %v4711_v46, 0.0  ;;  %v4715_v59 = vpop.eup %3573 }
 0x903   : > { %2141 = vadd.xlane.f32.xlu1 %v2140_v39  ;;  %v2137_v54 = vsel %vm1210_vm15, %v4715_v59, 0.0 }
 0x907   : > { %2135 = vadd.xlane.f32.xlu1 %v2134_v55 }
 0x90b   : > { %2144 = vadd.xlane.f32.xlu1 %v2143_v56 }
 0x90f   : > { %2138 = vadd.xlane.f32.xlu1 %v2137_v54 }
 0x913   : > { %2190 = vrot.lane.b32.xlu0 %v2186_v36, %s3754_s17 }
 0x920   : > { %2192 = vrot.lane.b32.xlu1 %v2187_v6, %s3754_s17 }
 0x974   : > { %v2109_v52 = vpop.xlane.xlu1 %2108 }
 0x976   : > { %v2106_v37 = vpop.xlane.xlu0 %2105 }
 0x978   : > { %v2103_v49 = vpop.xlane.xlu1 %2102 }
 0x979   : > { %3575 = vrcp.f32 %v2103_v49 }
 0x97a   : > { %v2100_v28 = vpop.xlane.xlu0 %2099 }
 0x97b   : > { %3577 = vrcp.f32 %v2100_v28 }
 0x97c   : > { %3579 = vrcp.f32 %v2106_v37 }
 0x97e   : > { %v2118_v63 = vpop.xlane.xlu0 %2117 }
 0x980   : > { %v2121_v21 = vpop.xlane.xlu1 %2120 }
 0x982   : > { %v2112_v5 = vpop.xlane.xlu0 %2111 }
 0x983   : > { %v3576_v34 = vpop.eup %3575 }
 0x984   : > { %v2115_v17 = vpop.xlane.xlu1 %2114  ;;  %v2163_v23 = vmul.f32 %v3576_v34, %v4649_v58 }
 0x985   : > { %v3578_v0 = vpop.eup %3577  ;;  %3581 = vrcp.f32 %v2115_v17 }
 0x986   : > { %v2130_v13 = vpop.xlane.xlu0 %2129  ;;  %v2162_v19 = vmul.f32 %v3578_v0, %v4658_v61  ;;  %3583 = vrcp.f32 %v2109_v52  ;;  %v3580_v61 = vpop.eup %3579  ;;  %v4756_v0 = vmul.f32 0.70710677, %v4179_v18 }
 0x987   : > { %3585 = vrcp.f32 %v2112_v5  ;;  %v2164_v2 = vmul.f32 %v3580_v61, %v4654_v42 }
 0x988   : > { %v2133_v33 = vpop.xlane.xlu1 %2132  ;;  %v2178_v60 = vpack.c.bf16 %v2163_v23, %v2162_v19  ;;  %3587 = vrcp.f32 %v2121_v21  ;;  %v2477_v19 = vand.u32 2147483647, %v4756_v0  ;;  %vm2469_vm14 = vcmp.ge.f32.partialorder %v4756_v0, 0.0 }
 0x98a   : > { %v2124_v44 = vpop.xlane.xlu0 %2123  ;;  %3262 = vmatprep.mubr.msk.bf16.mxu0 %vm1210_vm15, %v2178_v60 }
 0x98c   : > { %v2127_v62 = vpop.xlane.xlu1 %2126 }
 0x98d   : > { %3589 = vrcp.f32 %v2127_v62 }
 0x98e   : > { %v2191_v16 = vpop.permute.xlu0 %2190  ;;  %3591 = vrcp.f32 %v2118_v63 }
 0x98f   : > { %3258 = vmatprep.subr.bf16.mxu0 %v2191_v16  ;;  %v3582_v30 = vpop.eup %3581  ;;  %3593 = vrcp.f32 %v2124_v44  ;;  %v2481_v44 = vmul.f32 0.3275911, %v2477_v19 }
 0x990   : > { %3259 = vmatpush3.bf16.msra.mxu0 %v2191_v16  ;;  %v2142_v38 = vpop.xlane.xlu1 %2141  ;;  %v3584_v20 = vpop.eup %3583  ;;  %v2167_v45 = vmul.f32 %v3582_v30, %v4679_v43  ;;  %3595 = vrcp.f32 %v2133_v33 }
 0x991   : > { %v3586_v27 = vpop.eup %3585  ;;  %v2165_v31 = vmul.f32 %v3584_v20, %v4647_v57 }
 0x992   : > { %v2166_v11 = vmul.f32 %v3586_v27, %v4669_v26  ;;  %v3588_v29 = vpop.eup %3587 }
 0x993   : > { %v2179_v51 = vpack.c.bf16 %v2165_v31, %v2164_v2  ;;  %v2169_v57 = vmul.f32 %v3588_v29, %v4673_v40 }
 0x994   : > { %v2136_v41 = vpop.xlane.xlu1 %2135  ;;  %v2180_v35 = vpack.c.bf16 %v2167_v45, %v2166_v11 }
 0x997   : > { %v3590_v7 = vpop.eup %3589 }
 0x998   : > { %v2145_v10 = vpop.xlane.xlu1 %2144  ;;  %v3592_v42 = vpop.eup %3591  ;;  %v2171_v39 = vmul.f32 %v3590_v7, %v4697_v24 }
 0x999   : > { %v3594_v43 = vpop.eup %3593  ;;  %v2168_v55 = vmul.f32 %v3592_v42, %v4667_v32 }
 0x99a   : > { %v2170_v26 = vmul.f32 %v3594_v43, %v4688_v3  ;;  %v3596_v54 = vpop.eup %3595 }
 0x99b   : > { %v2181_v56 = vpack.c.bf16 %v2169_v57, %v2168_v55  ;;  %v2173_v40 = vmul.f32 %v3596_v54, %v4692_v48  ;;  %v3489_v48 = vld [vmem:[%s3953_s22] sm:$0xff]   ;;  %v2533_v54 = vsub.f32 0.0, %v2477_v19 }
 0x99c   : > { %v2139_v58 = vpop.xlane.xlu1 %2138  ;;  %v2182_v36 = vpack.c.bf16 %v2171_v39, %v2170_v26  ;;  %3278 = vmatprep.subr.bf16.mxu1 %v3489_v48 }
 0x99d   : > { %3597 = vrcp.f32 %v2139_v58  ;;  %3279 = vmatpush3.bf16.msra.mxu1 %v3489_v48 }
 0x99e   : > { %3599 = vrcp.f32 %v2130_v13 }
 0x99f   : > { %3601 = vrcp.f32 %v2136_v41  ;;  %v2485_v41 = vadd.f32 1.0, %v2481_v44 }
 0x9a0   : > { %v2193_v25 = vpop.permute.xlu1 %2192  ;;  %3603 = vrcp.f32 %v2145_v10 }
 0x9a1   : > { %3260 = vmatprep.subr.bf16.mxu0 %v2193_v25  ;;  %3605 = vrcp.f32 %v2142_v38 }
 0x9a2   : > { %3261 = vmatpush3.bf16.msra.mxu0 %v2193_v25 }
 0x9a5   : > { %3263 = vmatmul.mubr.msk.bf16.vlgmr.msra.gmra.mrb[8].mxu0 %vm1210_vm15, %v2179_v51 }
 0x9a6   : > { %3266 = vmatprep.mubr.msk.bf16.mxu0 %vm1210_vm15, %v2180_v35 }
 0x9a7   : > { %v3598_v6 = vpop.eup %3597 }
 0x9a8   : > { %v3600_v52 = vpop.eup %3599  ;;  %v2175_v32 = vmul.f32 %v3598_v6, %v4715_v59  ;;  %v3490_v59 = vld [vmem:[%s3962_s2] sm:$0xff]  }
 0x9a9   : > { %v3602_v37 = vpop.eup %3601  ;;  %v2172_v24 = vmul.f32 %v3600_v52, %v4686_v47  ;;  %3286 = vmatprep.subr.bf16.mxu0 %v3490_v59  ;;  %v4750_v47 = vmul.f32 0.70710677, %v4175_v8 }
 0x9aa   : > { %v2174_v3 = vmul.f32 %v3602_v37, %v4707_v53  ;;  %v3604_v28 = vpop.eup %3603  ;;  %3287 = vmatpush3.bf16.msra.mxu0 %v3490_v59  ;;  %v4753_v53 = vmul.f32 0.70710677, %v4171_v15 }
 0x9ab   : > { %v2183_v49 = vpack.c.bf16 %v2173_v40, %v2172_v24  ;;  %v3606_v21 = vpop.eup %3605  ;;  %v2177_v5 = vmul.f32 %v3604_v28, %v4711_v46  ;;  %v2478_v46 = vand.u32 2147483647, %v4750_v47  ;;  %vm2470_vm12 = vcmp.ge.f32.partialorder %v4750_v47, 0.0 }
 0x9ac   : > { %v2184_v63 = vpack.c.bf16 %v2175_v32, %v2174_v3  ;;  %v2176_v34 = vmul.f32 %v3606_v21, %v4703_v50  ;;  %v4759_v50 = vmul.f32 0.70710677, %v4169_v22  ;;  %v2476_v13 = vand.u32 2147483647, %v4753_v53 }
 0x9ad   : > { %3267 = vmatmul.mubr.msk.bf16.gmra.mrb[12].mxu0 %vm1210_vm15, %v2181_v56  ;;  %v2482_v33 = vmul.f32 0.3275911, %v2478_v46  ;;  %v2534_v39 = vsub.f32 0.0, %v2478_v46  ;;  %v2537_v3 = vmul.f32 %v2533_v54, %v2477_v19  ;;  %vm2468_vm13 = vcmp.ge.f32.partialorder %v4753_v53, 0.0 }
 0x9ae   : > { %3270 = vmatprep.mubr.msk.bf16.mxu0 %vm1210_vm15, %v2182_v36  ;;  %v2185_v17 = vpack.c.bf16 %v2177_v5, %v2176_v34  ;;  %v2475_v23 = vand.u32 2147483647, %v4759_v50  ;;  %v2480_v60 = vmul.f32 0.3275911, %v2476_v13  ;;  %v2532_v56 = vsub.f32 0.0, %v2476_v13 }
 0x9af   : > { %v2486_v16 = vadd.f32 1.0, %v2482_v33  ;;  %v2538_v37 = vmul.f32 %v2534_v39, %v2478_v46  ;;  %v2543_v48 = vmul.f32 1.442695, %v2537_v3  ;;  %vm2467_vm0 = vcmp.ge.f32.partialorder %v4759_v50, 0.0 }
 0x9b0   : > { %v2479_v62 = vmul.f32 0.3275911, %v2475_v23  ;;  %v2484_v38 = vadd.f32 1.0, %v2480_v60  ;;  %v2531_v52 = vsub.f32 0.0, %v2475_v23  ;;  %v2536_v24 = vmul.f32 %v2532_v56, %v2476_v13 }
 0x9b1   : > { %3607 = vrcp.f32 %v2486_v16  ;;  %v2545_v21 = vmul.f32 1.442695, %v2538_v37  ;;  %v3491_v16 = vld [vmem:[%s3962_s2 + $0x8] sm:$0xff]  }
 0x9b2   : > { %v2483_v10 = vadd.f32 1.0, %v2479_v62  ;;  %3609 = vrcp.f32 %v2484_v38  ;;  %3288 = vmatprep.subr.bf16.mxu0 %v3491_v16 }
 0x9b3   : > { %3611 = vrcp.f32 %v2485_v41  ;;  %3289 = vmatpush3.bf16.msra.mxu0 %v3491_v16  ;;  %v2460_v16 = vmul.f32 0.5, %v4171_v15 }
 0x9b4   : > { %3613 = vrcp.f32 %v2483_v10 }
 0x9b5   : > { %3271 = vmatmul.mubr.msk.bf16.gmra.mrb[16].mxu0 %vm1210_vm15, %v2183_v49  ;;  %3615 = vpow2.f32 %v2545_v21  ;;  %v2473_v21 = vsel %vm2469_vm14, 1.0, %v3740_v14 }
 0x9b6   : > { %3274 = vmatprep.mubr.msk.bf16.mxu0 %vm1210_vm15, %v2184_v63  ;;  %v2535_v63 = vmul.f32 %v2531_v52, %v2475_v23 }
 0x9b8   : > { %v2539_v60 = vmul.f32 1.442695, %v2535_v63  ;;  %v2472_v63 = vsel %vm2468_vm13, 1.0, %v3740_v14 }
 0x9bb   : > { %v3608_v61 = vpop.eup %3607 }
 0x9bc   : > { %v3610_v58 = vpop.eup %3609  ;;  %v2498_v27 = vmul.f32 1.0614054, %v3608_v61 }
 0x9bd   : > { %3275 = vmatmul.mubr.msk.bf16.gmra.mrb[20].mxu0 %vm1210_vm15, %v2185_v17  ;;  %v4765_v30 = vpop.eup %3611  ;;  %v2496_v2 = vmul.f32 1.0614054, %v3610_v58  ;;  %v2541_v17 = vmul.f32 1.442695, %v2536_v24  ;;  %v2474_v24 = vsel %vm2470_vm12, 1.0, %v3740_v14 }
 0x9be   : > { %v4767_v20 = vpop.eup %3613  ;;  %v2497_v25 = vmul.f32 1.0614054, %v4765_v30  ;;  %v2502_v31 = vadd.f32 -1.4531521, %v2498_v27 }
 0x9bf   : > { %v2495_v45 = vmul.f32 1.0614054, %v4767_v20  ;;  %v2500_v11 = vadd.f32 -1.4531521, %v2496_v2  ;;  %3617 = vpow2.f32 %v2541_v17  ;;  %v2471_v17 = vsel %vm2467_vm0, 1.0, %v3740_v14 }
 0x9c0   : > { %v2501_v51 = vadd.f32 -1.4531521, %v2497_v25  ;;  %v2506_v35 = vmul.f32 %v3608_v61, %v2502_v31  ;;  %3619 = vpow2.f32 %v2543_v48  ;;  %v3492_v25 = vld [vmem:[%s3953_s22 + $0x8] sm:$0xff]   ;;  %v2461_v14 = vmul.f32 0.5, %v4179_v18 }
 0x9c1   : > { %v2499_v29 = vadd.f32 -1.4531521, %v2495_v45  ;;  %v2504_v7 = vmul.f32 %v3610_v58, %v2500_v11  ;;  %3621 = vpow2.f32 %v2539_v60  ;;  %3280 = vmatprep.subr.bf16.mxu1 %v3492_v25 }
 0x9c2   : > { %v2505_v42 = vmul.f32 %v4765_v30, %v2501_v51  ;;  %v2510_v57 = vadd.f32 1.4214138, %v2506_v35  ;;  %3281 = vmatpush3.bf16.msra.mxu1 %v3492_v25  ;;  %v3616_v35 = vpop.eup %3615 }
 0x9c3   : > { %v2503_v43 = vmul.f32 %v4767_v20, %v2499_v29  ;;  %v2508_v55 = vadd.f32 1.4214138, %v2504_v7 }
 0x9c4   : > { %v2509_v26 = vadd.f32 1.4214138, %v2505_v42  ;;  %v2514_v6 = vmul.f32 %v3608_v61, %v2510_v57 }
 0x9c5   : > { %v2507_v36 = vadd.f32 1.4214138, %v2503_v43  ;;  %v2512_v40 = vmul.f32 %v3610_v58, %v2508_v55  ;;  %v3493_v43 = vld [vmem:[%s3962_s2 + $0x10] sm:$0xff]  }
 0x9c6   : > { %v2513_v32 = vmul.f32 %v4765_v30, %v2509_v26  ;;  %v2518_v28 = vadd.f32 -0.28449672, %v2514_v6  ;;  %3290 = vmatprep.subr.bf16.mxu0 %v3493_v43 }
 0x9c7   : > { %v2511_v49 = vmul.f32 %v4767_v20, %v2507_v36  ;;  %v2516_v5 = vadd.f32 -0.28449672, %v2512_v40  ;;  %3291 = vmatpush3.bf16.msra.mxu0 %v3493_v43 }
 0x9c8   : > { %v2517_v34 = vadd.f32 -0.28449672, %v2513_v32  ;;  %v2522_v33 = vmul.f32 %v3608_v61, %v2518_v28 }
 0x9c9   : > { %v2515_v59 = vadd.f32 -0.28449672, %v2511_v49  ;;  %v2520_v46 = vmul.f32 %v3610_v58, %v2516_v5  ;;  %v3618_v57 = vpop.eup %3617 }
 0x9ca   : > { %v2521_v19 = vmul.f32 %v4765_v30, %v2517_v34  ;;  %v2526_v41 = vadd.f32 0.2548296, %v2522_v33  ;;  %v3620_v56 = vpop.eup %3619  ;;  %v3494_v34 = vld [vmem:[%s3962_s2 + $0x18] sm:$0xff]   ;;  %s3755_s2 = smov 80  }
 0x9cb   : > { %v2519_v62 = vmul.f32 %v4767_v20, %v2515_v59  ;;  %v2524_v10 = vadd.f32 0.2548296, %v2520_v46  ;;  %3292 = vmatprep.subr.bf16.mxu0 %v3494_v34  ;;  %v2462_v46 = vmul.f32 0.5, %v4175_v8 }
 0x9cc   : > { %v2525_v27 = vadd.f32 0.2548296, %v2521_v19  ;;  %v2530_v45 = vmul.f32 %v3608_v61, %v2526_v41  ;;  %v3622_v61 = vpop.eup %3621  ;;  %3293 = vmatpush3.bf16.msra.mxu0 %v3494_v34 }
 0x9cd   : > { %v2523_v2 = vadd.f32 0.2548296, %v2519_v62  ;;  %v2528_v11 = vmul.f32 %v3610_v58, %v2524_v10 }
 0x9ce   : > { %v2529_v29 = vmul.f32 %v4765_v30, %v2525_v27  ;;  %v2550_v26 = vmul.f32 %v3616_v35, %v2530_v45  ;;  %v2459_v45 = vmul.f32 0.5, %v4169_v22 }
 0x9cf   : > { %v2527_v42 = vmul.f32 %v4767_v20, %v2523_v2  ;;  %v2548_v36 = vmul.f32 %v3618_v57, %v2528_v11 }
 0x9d0   : > { %v2549_v58 = vmul.f32 %v3620_v56, %v2529_v29  ;;  %v2554_v6 = vsub.f32 1.0, %v2550_v26 }
 0x9d1   : > { %v2547_v30 = vmul.f32 %v3622_v61, %v2527_v42  ;;  %v2552_v20 = vsub.f32 1.0, %v2548_v36 }
 0x9d2   : > { %v2553_v40 = vsub.f32 1.0, %v2549_v58  ;;  %v2558_v28 = vmul.f32 %v2554_v6, %v2474_v24 }
 0x9d3   : > { %v2551_v3 = vsub.f32 1.0, %v2547_v30  ;;  %v2556_v5 = vmul.f32 %v2552_v20, %v2472_v63 }
 0x9d4   : > { %v2557_v0 = vmul.f32 %v2553_v40, %v2473_v21  ;;  %v2562_v59 = vadd.f32 1.0, %v2558_v28  ;;  %v3113_v21 = vld [vmem:[%s679_s13] ss:$0 sm:$0xff]  ;;  %s5029_s13 = sld [smem:[#allocation24_spill]] (!%p3125_p1) }
 0x9d5   : > { %v2555_v48 = vmul.f32 %v2551_v3, %v2471_v17  ;;  %v2560_v33 = vadd.f32 1.0, %v2556_v5 }
 0x9d6   : > { %v2561_v19 = vadd.f32 1.0, %v2557_v0  ;;  %v2566_v2 = vmul.f32 %v2562_v59, %v2462_v46 }
 0x9d7   : > { %v2559_v41 = vadd.f32 1.0, %v2555_v48 }
 0x9d8   : > { %v2565_v11 = vmul.f32 %v2561_v19, %v2461_v14 }
 0x9d9   : > { %v2563_v8 = vmul.f32 %v2559_v41, %v2459_v45 }
 0xa78   : > { %v4775_v44 = vpop.f32.mrb[8].mxu0 }
 0xa79   : > { %v4777_v13 = vpop.f32.mrb[9].mxu0 }
 0xa7a   : > { %v4780_v23 = vpop.f32.mrb[10].mxu0 }
 0xa7b   : > { %v4784_v38 = vpop.f32.mrb[11].mxu0 }
 0xa80   : > { %v3268_v31 = vpop.f32.mrb[12].mxu0 }
 0xa81   : > { %v2270_v51 = vpop.f32.mrb[13].mxu0 }
 0xa82   : > { %v3269_v7 = vpop.f32.mrb[14].mxu0 }
 0xa83   : > { %v3453_v39 = vpack.i.bf16 %v3269_v7, %v3268_v31  ;;  %v2273_v55 = vpop.f32.mrb[15].mxu0  ;;  %v2564_v31 = vmul.f32 %v2560_v33, %v2460_v16 }
 0xa84   : > { %v3458_v54 = vpack.i.bf16 %v2273_v55, %v2270_v51  ;;  %v2568_v51 = vpack.c.bf16 %v2566_v2, %v2565_v11 }
 0xa85   : > { %3454 = vrot.lane.b32.xlu0 %v3453_v39, %s3745_s25  ;;  %v2567_v29 = vpack.c.bf16 %v2564_v31, %v2563_v8 }
 0xa88   : > { %v3272_v52 = vpop.f32.mrb[16].mxu0 }
 0xa89   : > { %3459 = vrot.lane.b32.xlu0 %v3458_v54, %s3745_s25  ;;  %v2286_v37 = vpop.f32.mrb[17].mxu0 }
 0xa8a   : > { %v3273_v32 = vpop.f32.mrb[18].mxu0 }
 0xa8b   : > { %v3463_v49 = vpack.i.bf16 %v3273_v32, %v3272_v52  ;;  %v2289_v47 = vpop.f32.mrb[19].mxu0 }
 0xa8c   : > { %v3468_v53 = vpack.i.bf16 %v2289_v47, %v2286_v37 }
 0xa8d   : > { %3464 = vrot.lane.b32.xlu0 %v3463_v49, %s3749_s30 }
 0xa90   : > { %v3276_v50 = vpop.f32.mrb[20].mxu0 }
 0xa91   : > { %3469 = vrot.lane.b32.xlu0 %v3468_v53, %s3749_s30  ;;  %v2302_v60 = vpop.f32.mrb[21].mxu0 }
 0xa92   : > { %v3277_v62 = vpop.f32.mrb[22].mxu0 }
 0xa93   : > { %v3478_v10 = vpack.i.bf16 %v3277_v62, %v3276_v50  ;;  %v2305_v27 = vpop.f32.mrb[23].mxu0  ;;  %v3118_v50 = vld [vmem:[%s687_s20] ss:$0 sm:$0xff] }
 0xa94   : > { %v3473_v25 = vpack.i.bf16 %v2305_v27, %v2302_v60 }
 0xa95   : > { %3479 = vrot.lane.b32.xlu0 %v3478_v10, %s3751_s10 }
 0xa96   : > { %3474 = vrot.lane.b32.xlu1 %v3473_v25, %s3751_s10 }
 0xa99   : > { %2588 = vrot.lane.b32.xlu0 %v2568_v51, %s3755_s2 }
 0xa9a   : > { %2586 = vrot.lane.b32.xlu1 %v2567_v29, %s3755_s2 }
 0xaf7   : > { %v3455_v15 = vpop.permute.xlu0 %3454 }
 0xaf8   : > { %v3457_v18 = vunpack.i.h.bf16 %v3455_v15  ;;  %v3456_v42 = vunpack.i.l.bf16 %v3455_v15 }
 0xafa   : > { %v2368_v54 = vsel %vm1826_vm9, %v4780_v23, %v3457_v18  ;;  %v2367_v36 = vsel %vm1826_vm9, %v4775_v44, %v3456_v42  ;;  %v3623_v42 = vld [vmem:[%s5029_s13] sm:$0xff] (!%p3125_p1)  }
 0xafb   : > { %v3460_v35 = vpop.permute.xlu0 %3459  ;;  %3298 = vmatprep.subr.bf16.mxu0 (!%p3125_p1), %v3623_v42 }
 0xafc   : > { %v3462_v57 = vunpack.i.h.bf16 %v3460_v35  ;;  %v3461_v22 = vunpack.i.l.bf16 %v3460_v35 }
 0xafe   : > { %v2366_v58 = vsel %vm1826_vm9, %v4784_v38, %v3462_v57  ;;  %v2365_v30 = vsel %vm1826_vm9, %v4777_v13, %v3461_v22 }
 0xaff   : > { %v3465_v7 = vpop.permute.xlu0 %3464 }
 0xb00   : > { %v3467_v39 = vunpack.i.h.bf16 %v3465_v7  ;;  %v3466_v55 = vunpack.i.l.bf16 %v3465_v7 }
 0xb02   : > { %v2373_v37 = vsel %vm2369_vm1, %v2368_v54, %v3467_v39  ;;  %v2372_v40 = vsel %vm2369_vm1, %v2367_v36, %v3466_v55 }
 0xb03   : > { %v3470_v43 = vpop.permute.xlu0 %3469 }
 0xb04   : > { %v3472_v26 = vunpack.i.h.bf16 %v3470_v43  ;;  %v3471_v56 = vunpack.i.l.bf16 %v3470_v43  ;;  %v3624_v43 = vld [vmem:[%s5029_s13 + $0x8] sm:$0xff] (!%p3125_p1)  }
 0xb06   : > { %v2371_v44 = vsel %vm2369_vm1, %v2366_v58, %v3472_v26  ;;  %v2370_v24 = vsel %vm2369_vm1, %v2365_v30, %v3471_v56 }
 0xb07   : > { %v3480_v61 = vpop.permute.xlu0 %3479 }
 0xb08   : > { %v3482_v6 = vunpack.i.h.bf16 %v3480_v61  ;;  %v3481_v52 = vunpack.i.l.bf16 %v3480_v61  ;;  %v3475_v20 = vpop.permute.xlu1 %3474 }
 0xb09   : > { %v3477_v23 = vunpack.i.h.bf16 %v3475_v20  ;;  %v3476_v32 = vunpack.i.l.bf16 %v3475_v20 }
 0xb0a   : > { %v2378_v3 = vsel %vm2374_vm2, %v2373_v37, %v3482_v6  ;;  %v2377_v38 = vsel %vm2374_vm2, %v2372_v40, %v3481_v52 }
 0xb0b   : > { %v2380_v49 = vpack.c.bf16 %v2378_v3, %v2377_v38  ;;  %v2376_v13 = vsel %vm2374_vm2, %v2371_v44, %v3477_v23  ;;  %v2375_v47 = vsel %vm2374_vm2, %v2370_v24, %v3476_v32  ;;  %v2589_v53 = vpop.permute.xlu0 %2588 }
 0xb0c   : > { %v2379_v28 = vpack.c.bf16 %v2376_v13, %v2375_v47  ;;  %v2587_v63 = vpop.permute.xlu1 %2586 }
 0xb0d   : > { %3294 = vmatprep.mubr.msk.bf16.mxu0 %vm2614_vm3, %v2587_v63 }
 0xb0e   : > { %3282 = vmatprep.mubr.msk.bf16.mxu1 %vm1210_vm15, %v2379_v28  ;;  %3295 = vmatmul.mubr.msk.bf16.vlgmr.msra.gmra.mrb[24].mxu0 %vm2614_vm3, %v2589_v53 }
 0xb0f   : > { %3283 = vmatmul.mubr.msk.bf16.vlgmr.msra.gmra.mrb[20].mxu1 %vm1210_vm15, %v2380_v49  ;;  %3299 = vmatpush3.bf16.msra.mxu0 (!%p3125_p1), %v3623_v42 }
 0xb10   : > { %3300 = vmatprep.subr.bf16.mxu0 (!%p3125_p1), %v3624_v43 }
 0xb13   : > { %3301 = vmatpush3.bf16.msra.mxu0 (!%p3125_p1), %v3624_v43 }
 0xbe1   : > { %v3296_v5 = vpop.f32.mrb[24].mxu0 }
 0xbe2   : > { %v3284_v34 = vpop.f32.mrb[20].mxu1  ;;  %v2655_v0 = vpop.f32.mrb[25].mxu0 }
 0xbe3   : > { %v2453_v17 = vadd.f32 %v3284_v34, %v3113_v21  ;;  %v2444_v48 = vpop.f32.mrb[21].mxu1  ;;  %v3297_v59 = vpop.f32.mrb[26].mxu0 }
 0xbe4   : > { %v2445_v33 = vadd.f32 %v3113_v21, %v2444_v48  ;;  %v3285_v60 = vpop.f32.mrb[22].mxu1  ;;  %v2658_v46 = vpop.f32.mrb[27].mxu0 }
 0xbe5   : > { %v3307_v19 = vadd.f32 %v3296_v5, %v2453_v17  ;;  %v2456_v62 = vadd.f32 %v3285_v60, %v3113_v21  ;;  %v2447_v16 = vpop.f32.mrb[23].mxu1 }
 0xbe6   : > { %v3310_v41 = vadd.f32 %v2655_v0, %v2445_v33  ;;  %v2448_v10 = vadd.f32 %v3113_v21, %v2447_v16  ;;  %v3126_v33 = vld [vmem:[%s5030_s15] ss:$0 sm:$0xff] (!%p3125_p1) }
 0xbe7   : > { %v3308_v27 = vadd.f32 %v3307_v19, %v3118_v50  ;;  %v3313_v14 = vadd.f32 %v3118_v50, %v2456_v62 }
 0xbe8   : > { %v3311_v2 = vadd.f32 %v3310_v41, %v3118_v50  ;;  %v3316_v25 = vadd.f32 %v3118_v50, %v2448_v10  ;;  %2685 = sbr.rel (%p3125_p1) target bundleno = 3456 (0xd80), region = 92 }
 0xbe9   : > { %v4840_v45 = vadd.f32 %v3308_v27, %v4142_v12  ;;  %v3314_v31 = vadd.f32 %v3313_v14, %v3297_v59 }
 0xbea   : > { %v4843_v11 = vadd.f32 %v3311_v2, %v4125_v1  ;;  %v3317_v8 = vadd.f32 %v3316_v25, %v2658_v46  ;;  %v3127_v25 = vld [vmem:[%s5031_s0] ss:$0 sm:$0xff] (!%p3125_p1) }
 0xbeb   : > { %2680 = vst.msk [vmem:[#allocation2 + $0x10] sm:$0xff] %vm1210_vm15, %v4840_v45  ;;  %v4848_v51 = vadd.f32 %v3314_v31, %v4133_v9  ;;  %v2689_v1 = vmul.f32 (!%p3125_p1), %v4840_v45, %v4840_v45 }
 0xbec   : > { %2678 = vst.msk [vmem:[#allocation2] sm:$0xff] %vm1210_vm15, %v4843_v11  ;;  %v4853_v29 = vadd.f32 %v3317_v8, %v4137_v4  ;;  %v2687_v9 = vmul.f32 (!%p3125_p1), %v4843_v11, %v4843_v11 }
 0xbed   : > { %2681 = vst.msk [vmem:[#allocation2 + $0x18] sm:$0xff] %vm1210_vm15, %v4848_v51  ;;  %v2690_v12 = vmul.f32 (!%p3125_p1), %v4848_v51, %v4848_v51  ;;  %v2697_v15 = vsel (!%p3125_p1), %vm1210_vm15, %v2689_v1, 0.0 }
 0xbee   : > { %2679 = vst.msk [vmem:[#allocation2 + $0x8] sm:$0xff] %vm1210_vm15, %v4853_v29  ;;  %v2688_v4 = vmul.f32 (!%p3125_p1), %v4853_v29, %v4853_v29  ;;  %v2691_v35 = vsel (!%p3125_p1), %vm1210_vm15, %v2687_v9, 0.0  ;;  %2698 = vadd.xlane.f32.xlu1 (!%p3125_p1), %v2697_v15 }
 0xbef   : > { %2692 = vadd.xlane.f32.xlu0 %v2691_v35  ;;  %v2700_v7 = vsel %vm1210_vm15, %v2690_v12, 0.0 }
 0xbf0   : > { %v2694_v18 = vsel %vm1210_vm15, %v2688_v4, 0.0 }
 0xbf2   : > { %2701 = vadd.xlane.f32.xlu1 %v2700_v7 }
 0xbf3   : > { %2695 = vadd.xlane.f32.xlu0 %v2694_v18 }
 0xc7b   : > { %v2699_v57 = vpop.xlane.xlu1 %2698 }
 0xc7c   : > { %v2693_v22 = vpop.xlane.xlu0 %2692  ;;  %3625 = vrsqrt.f32 %v2699_v57  ;;  %vm2719_vm9 = vcmp.eq.f32.partialorder %v2699_v57, inf  ;;  %v2722_v36 = vand.u32 2147483648, %v2699_v57  ;;  %vm2721_vm4 = vcmp.eq.f32.partialorder %v2699_v57, 0.0 }
 0xc7d   : > { %3627 = vrsqrt.f32 %v2693_v22  ;;  %vm2705_vm5 = vcmp.eq.f32.partialorder %v2693_v22, inf  ;;  %v2708_v30 = vand.u32 2147483648, %v2693_v22  ;;  %vm2707_vm6 = vcmp.eq.f32.partialorder %v2693_v22, 0.0 }
 0xc7f   : > { %v2702_v39 = vpop.xlane.xlu1 %2701 }
 0xc80   : > { %v2696_v55 = vpop.xlane.xlu0 %2695  ;;  %3629 = vrsqrt.f32 %v2702_v39  ;;  %vm2726_vm7 = vcmp.eq.f32.partialorder %v2702_v39, inf  ;;  %vm2728_vm8 = vcmp.eq.f32.partialorder %v2702_v39, 0.0  ;;  %v2729_v44 = vand.u32 2147483648, %v2702_v39 }
 0xc81   : > { %3631 = vrsqrt.f32 %v2696_v55  ;;  %vm2712_vm10 = vcmp.eq.f32.partialorder %v2696_v55, inf  ;;  %v2715_v49 = vand.u32 2147483648, %v2696_v55  ;;  %vm2714_vm11 = vcmp.eq.f32.partialorder %v2696_v55, 0.0 }
 0xc86   : > { %v3626_v26 = vpop.eup %3625 }
 0xc87   : > { %v3628_v56 = vpop.eup %3627  ;;  %v2718_v54 = vmul.f32 %v3626_v26, %v2699_v57 }
 0xc88   : > { %v2704_v61 = vmul.f32 %v3628_v56, %v2693_v22 }
 0xc89   : > { %v2720_v58 = vsel %vm2719_vm9, %v2699_v57, %v2718_v54 }
 0xc8a   : > { %v3630_v6 = vpop.eup %3629  ;;  %v2706_v52 = vsel %vm2705_vm5, %v2693_v22, %v2704_v61  ;;  %v2723_v20 = vsel %vm2721_vm4, %v2722_v36, %v2720_v58 }
 0xc8b   : > { %v3632_v37 = vpop.eup %3631  ;;  %v2725_v40 = vmul.f32 %v3630_v6, %v2702_v39  ;;  %v2709_v23 = vsel %vm2707_vm6, %v2708_v30, %v2706_v52  ;;  %v2733_v32 = vmul.f32 0.17677669, %v2723_v20 }
 0xc8c   : > { %v2711_v24 = vmul.f32 %v3632_v37, %v2696_v55  ;;  %v2731_v3 = vmul.f32 0.17677669, %v2709_v23 }
 0xc8d   : > { %v2727_v38 = vsel %vm2726_vm7, %v2702_v39, %v2725_v40  ;;  %v2737_v13 = vmax.f32 %v2733_v32, 1e-08 }
 0xc8e   : > { %v2730_v47 = vsel %vm2728_vm8, %v2729_v44, %v2727_v38  ;;  %v2713_v28 = vsel %vm2712_vm10, %v2696_v55, %v2711_v24  ;;  %v2735_v63 = vmax.f32 %v2731_v3, 1e-08 }
 0xc8f   : > { %v2734_v53 = vmul.f32 0.17677669, %v2730_v47  ;;  %v2716_v21 = vsel %vm2714_vm11, %v2715_v49, %v2713_v28  ;;  %3633 = vrcp.f32 %v2737_v13 }
 0xc90   : > { %v2732_v5 = vmul.f32 0.17677669, %v2716_v21  ;;  %3635 = vrcp.f32 %v2735_v63 }
 0xc91   : > { %v2738_v34 = vmax.f32 %v2734_v53, 1e-08 }
 0xc92   : > { %v2736_v0 = vmax.f32 %v2732_v5, 1e-08 }
 0xc93   : > { %3637 = vrcp.f32 %v2738_v34 }
 0xc94   : > { %3639 = vrcp.f32 %v2736_v0 }
 0xc99   : > { %v3634_v17 = vpop.eup %3633 }
 0xc9a   : > { %v3636_v48 = vpop.eup %3635  ;;  %v2744_v59 = vmul.f32 %v3634_v17, %v4840_v45 }
 0xc9b   : > { %v2740_v60 = vmul.f32 %v3636_v48, %v4843_v11 }
 0xc9c   : > { %v2755_v16 = vmul.f32 %v3126_v33, %v2744_v59 }
 0xc9d   : > { %v3638_v50 = vpop.eup %3637  ;;  %v2753_v10 = vmul.f32 %v3126_v33, %v2740_v60 }
 0xc9e   : > { %v3640_v46 = vpop.eup %3639  ;;  %v2746_v19 = vmul.f32 %v3638_v50, %v4848_v51 }
 0xc9f   : > { %v2742_v62 = vmul.f32 %v3640_v46, %v4853_v29 }
 0xca0   : > { %v2756_v41 = vmul.f32 %v3126_v33, %v2746_v19 }
 0xca1   : > { %v2754_v27 = vmul.f32 %v3126_v33, %v2742_v62 }
 0xca2   : > { %v2758_v14 = vpack.c.bf16 %v2756_v41, %v2755_v16 }
 0xca3   : > { %v2757_v2 = vpack.c.bf16 %v2754_v27, %v2753_v10 }
 0xca5   : > { %3302 = vmatprep.mubr.msk.bf16.mxu0 %vm1210_vm15, %v2757_v2 }
 0xca6   : > { %3303 = vmatmul.mubr.msk.bf16.vlgmr.msra.gmra.mrb[0].mxu0 %vm1210_vm15, %v2758_v14 }
 0xd79   : > { %v3304_v45 = vpop.f32.mrb[0].mxu0 }
 0xd7a   : > { %v2831_v31 = vadd.f32 %v3304_v45, %v3127_v25  ;;  %v2822_v11 = vpop.f32.mrb[1].mxu0 }
 0xd7b   : > { %v2823_v8 = vadd.f32 %v3127_v25, %v2822_v11  ;;  %v3305_v51 = vpop.f32.mrb[2].mxu0 }
 0xd7c   : > { %2839 = vst.msk [vmem:[%s3968_s29 + $0x10] sm:$0xff] %vm2614_vm3, %v2831_v31  ;;  %v2834_v29 = vadd.f32 %v3305_v51, %v3127_v25  ;;  %v2825_v1 = vpop.f32.mrb[3].mxu0 }
 0xd7d   : > { %2837 = vst.msk [vmem:[%s3968_s29] sm:$0xff] %vm2614_vm3, %v2823_v8  ;;  %v2826_v9 = vadd.f32 %v3127_v25, %v2825_v1 }
 0xd7e   : > { %2840 = vst.msk [vmem:[%s3968_s29 + $0x18] sm:$0xff] %vm2614_vm3, %v2834_v29 }
 0xd7f   : > { %2838 = vst.msk [vmem:[%s3968_s29 + $0x8] sm:$0xff] %vm2614_vm3, %v2826_v9 }
 0xd80 PF: > { %s5032_s14 = sld [smem:[#allocation9_spill]]  ;;  %s5035_s10 = sld [smem:[#allocation26_spill]] }
 0xd81   : > { %s5033_s1 = sld [smem:[#allocation7_spill]]  ;;  %s2855_s24 = sshll.u32 %s3968_s29, 4  ;;  %s4905_s24 = int_to_ptr.vmem [resolvable:$true] %s2855_s24 }
 0xd82   : > { %s3641_s27 = scalar_lea.vmem %s4905_s24, 512  ;;  %s3756_s28 = smov [#allocation3]  }
 0xd83   : > { %p3642_p2 = scmp.ne.s32.totalorder %s4905_s24, %s3641_s27  ;;  %s3645_s12 = sshll.u32 %s3756_s28, 4  ;;  %s3646_s12 = int_to_ptr.vmem [resolvable:$false] %s3645_s12 }
 0xd84   : > { %s3647_s15 = scalar_lea.vmem %s3646_s12, 1024  ;;  %p3648_p6 = scmp.lt.s32.totalorder %s4905_s24, %s3646_s12 }
 0xd85   : > { %p3643_p4 = pnand %p3642_p2, %p3892_p3  ;;  %p3649_p7 = scmp.lt.s32.totalorder %s3647_s15, %s3641_s27 }
 0xd86   : > { %s3143_s2 = sshll.u32 %s5032_s14, 9 }
 0xd87   : > { %s4902_s21 = scalar_lea.hbm %s5035_s10, %s3143_s2  ;;  %s5036_s19 = sand.u32 1, %s5033_s1  }
 0xd88   : > { %s4909_s20 = scalar_lea.sflag [#allocation4], %s5036_s19  ;;  %p3644_p5 = pneg %p3643_p4 }
 0xd89   : > { %p3650_p8 = por %p3649_p7, %p3648_p6 }
 0xd8b   : > { %p3651_p10 = pnand %p3650_p8, %p3644_p5 }
 0xd8d   : > { %3654 = shalt.err (!%p3651_p10)
}
 0xd8e   : > { %s3655_s29 = scalar_lea.hbm %s4902_s21, 512  ;;  %s3659_s0 = scalar_lea.hbm %s5035_s10, 1024 }
 0xd8f   : > { %p3656_p11 = scmp.ne.s32.totalorder %s4902_s21, %s3655_s29  ;;  %p3660_p0 = scmp.lt.u32.totalorder %s4902_s21, %s5035_s10 }
 0xd90   : > { %p3661_p1 = scmp.lt.u32.totalorder %s3659_s0, %s3655_s29  ;;  %p3663_p4 = scmp.lt.u32.totalorder %s3655_s29, %s4902_s21 }
 0xd91   : > { %p3657_p12 = pnand %p3656_p11, %p3892_p3 }
 0xd92   : > { %p3662_p2 = por %p3661_p1, %p3660_p0 }
 0xd93   : > { %p3658_p13 = pneg %p3657_p12 }
 0xd94   : > { %p3664_p5 = por %p3663_p4, %p3662_p2 }
 0xd96   : > { %p3665_p6 = pnand %p3664_p5, %p3658_p13 }
 0xd98   : > { %3668 = shalt.err (!%p3665_p6)
}
 0xd99   : > { %s3757_s2 = smov 128  }
 0xd9a   : > { %3320 = dma.vmem_to_hbm [thread:$0]  (%p3892_p3), %s4905_s24, 512, %s4902_s21, %s4909_s20, %s3757_s2, %s3757_s2, %s3745_s25  }
 0xd9b PF: > { %s5037_s22 = sld [smem:[#allocation12_spill]]  ;;  %s5038_s30 = sld [smem:[#allocation6_spill]] }
 0xda1   : > { %p3326_p7 = scmp.ge.s32.totalorder %s5037_s22, 2  ;;  %s2870_s27 = sand.u32 1, %s5038_s30  }
 0xda2   : > { %s2871_s28 = scalar_lea.sflag [#allocation4], %s2870_s27 }
 0xda3   : > { %p3323_p8 = pnand %p3326_p7, %p3902_p9 }
 0xda5   : > { %3702 = dma.done.wait (!%p3323_p8), %s2871_s28, 512  }
 0xda6   : > { %3704 = vsyncadd (!%p3323_p8), %s2871_s28, 4294966784  ;;  %s29_s28 = sadd.s32 1, %s5037_s22   ;;  %s5040_s21 = sld [smem:[#allocation7_spill]] }
 0xda7   : > { %p26_p10 = scmp.ge.s32.totalorder %s29_s28, 6   ;;  %s5041_s22 = sld [smem:[#allocation8_spill]] }
 0xda8   : > { %s5042_s23 = sld [smem:[#allocation17_spill]]  ;;  %s5043_s24 = sld [smem:[#allocation10_spill]] }
 0xda9   : > { %s5044_s25 = sld [smem:[#allocation11_spill]]  ;;  %s5045_s26 = sld [smem:[#allocation13_spill]] }
 0xdaa   : > { %s5046_s27 = sld [smem:[#allocation15_spill]]  ;;  %28 = sbr.rel (!%p26_p10) target bundleno = 15 (0xf), region = 156 }
 0xdb1   :  { %2876 = vsyncpa [#allocation4], 1 }
 0xdb2   :  { %2878 = vsyncpa [#allocation4 + $0x1], 1 }

</bundles_post_ra>
